<compile_context>
chip_gen: v6e
topology: v6e:2x2x1
jax: 0.10.0
libtpu: 0.0.40
codegen_flags: <defaults>
</compile_context>

<pallas_src>
import jax
import jax.numpy as jnp
from jax.experimental import pallas as pl
from jax.experimental.pallas import tpu as pltpu

_BN_EPS = 1e-5


def _round_up(x, m):
    return (x + m - 1) // m * m


def _pick_tile_rows(oh, owp):
    """Output rows per grid step: divides oh, keeps the out block 128-lane
    aligned, prefers <=16 rows (v7x VMEM friendly).  Falls back to a single
    tile (block == full dim, always legal)."""
    cands = [t for t in range(1, oh + 1)
             if oh % t == 0 and (t * owp) % 128 == 0]
    small = [t for t in cands if t <= 16]
    if small:
        return max(small)
    if cands:
        return min(cands)
    return oh


# ----------------------------------------------------------------------------
# Trace-time weight preparation: BN folding, branch fusion, K packing
# ----------------------------------------------------------------------------
def _fold_bn(bn):
    gamma, beta, mean, var = bn
    s = gamma * jax.lax.rsqrt(var + _BN_EPS)
    return s, beta - mean * s


def _prep_params(p):
    f32, bf16 = jnp.float32, jnp.bfloat16

    # --- StemBlock1: one (128, 64) weight over the 5x5 tap grid (K packed) --
    s1, c1 = _fold_bn(p["b1_bn1"])
    s2, c2 = _fold_bn(p["b1_bn2"])
    w33 = jnp.transpose(p["b1_conv1_w"], (2, 3, 1, 0)) * s1          # (3,3,3,32)
    w55 = jnp.transpose(p["b1_conv2_w"], (2, 3, 1, 0)) * s2          # (5,5,3,32)
    w33e = jnp.zeros((5, 5, 3, 32), f32).at[1:4, 1:4].set(w33)
    wb1 = jnp.concatenate([w33e, w55], axis=-1).reshape(75, 64)      # k=(kh,kw,c)
    w1 = jnp.zeros((128, 64), f32).at[:75].set(wb1).astype(bf16)
    bb1 = jnp.concatenate([c1, c2]).reshape(1, 64).astype(f32)

    # --- StemBlock2: every branch widened into the 192-channel cat layout ---
    sA, cA = _fold_bn(p["b2_bn1"])
    s2b, c2b = _fold_bn(p["b2_bn2"])
    s3b, c3b = _fold_bn(p["b2_bn3"])
    s4, c4 = _fold_bn(p["b2_bn4"])
    sD, cD = _fold_bn(p["b2_ds_bn"])
    s5, c5 = _fold_bn(p["b2_bn5"])

    a21 = p["b2_conv2_1_w"].reshape(16, 64)
    a31 = p["b2_conv3_1_w"].reshape(16, 64)
    e2 = jnp.einsum("oikl,ic->klco", p["b2_conv2_2_w"], a21) * s2b   # (3,3,64,64)
    e3 = jnp.einsum("oikl,ic->klco", p["b2_conv3_2_w"], a31) * s3b   # (5,5,64,64)

    w_eff = jnp.zeros((5, 5, 64, 192), f32)                          # per-tap 64->192
    w_eff = w_eff.at[1:4, 1:4, :, 32:96].set(e2)
    w_eff = w_eff.at[:, :, :, 96:160].set(e3)
    w_eff = w_eff.at[2, 2, :, :32].add(p["b2_conv1_w"].reshape(32, 64).T * sA)
    w_eff = w_eff.at[2, 2].add(p["b2_ds_w"].reshape(192, 64).T * sD)

    # K-pack the 4 parity blocks per spatial offset (dh, dw): K = 4*64 = 256.
    w2 = jnp.zeros((9, 256, 192), f32)
    for dh in range(3):
        for dw in range(3):
            for rp in range(2):
                for cp in range(2):
                    kh, kw = 2 * dh + rp, 2 * dw + cp
                    if kh < 5 and kw < 5:
                        blk = rp * 2 + cp
                        w2 = w2.at[dh * 3 + dw,
                                   blk * 64:(blk + 1) * 64, :].set(w_eff[kh, kw])
    w2 = w2.astype(bf16)

    w4 = (p["b2_conv4_w"].reshape(32, 64).T * s4).astype(bf16)       # (64, 32)
    bcat = (jnp.concatenate([cA, c2b, c3b, c4]) + cD).reshape(1, 192).astype(f32)
    w5t = (p["b2_conv5_w"].reshape(64, 192) * s5[:, None]).astype(bf16)  # (64,192)
    b5 = c5.reshape(64, 1).astype(f32)
    return w1, bb1, w2, bcat, w4, w5t, b5


# ----------------------------------------------------------------------------
# Fused RichStem kernel: one grid step == one (image, output-row-tile)
# ----------------------------------------------------------------------------
def _make_kernel(tr, owp, ow):
    trp2 = tr + 2
    m1 = trp2 * owp          # block1 positions per parity phase
    m2 = tr * owp            # block2 output positions per tile (full width)
    f32 = jnp.float32

    def kernel(im_ref, w1_ref, bb1_ref, w2_ref, bcat_ref, w4_ref, w5t_ref,
               b5_ref, o_ref, yb, acc):
        t = pl.program_id(1)

        # ---------------- StemBlock1: one K=128 matmul for all 4 phases -----
        a = im_ref[0, 0]                                     # (4*m1, 128) bf16
        r = jnp.dot(a, w1_ref[...], preferred_element_type=f32) + bb1_ref[...]
        r = jnp.maximum(r, 0.0).astype(yb.dtype)             # (4*m1, 64) bf16
        for ph in range(4):                                  # blk = rp*2 + cp
            yb[:, :, ph * 64:(ph + 1) * 64] = (
                r[ph * m1:(ph + 1) * m1].reshape(trp2, owp, 64))

        # conv padding: left column, right columns; halo rows on first/last
        # tile only (interior rows are always fully overwritten above).
        yb[:, 0:1, :] = jnp.zeros((trp2, 1, 256), yb.dtype)
        yb[:, ow + 1:, :] = jnp.zeros((trp2, owp - ow - 1, 256), yb.dtype)

        @pl.when(t == 0)
        def _():
            yb[0:1, :, :] = jnp.zeros((1, owp, 256), yb.dtype)

        @pl.when(t == pl.num_programs(1) - 1)
        def _():
            yb[tr + 1:tr + 2, :, :] = jnp.zeros((1, owp, 256), yb.dtype)

        # ---------------- StemBlock2: 9 K=256 matmuls over full-width slabs -
        ops = [yb[dh:dh + tr, :, :].reshape(m2, 256) for dh in range(3)]

        def shift_rows(v, d):                # flat column alignment by d
            if d == 0:
                return v
            pad = jnp.zeros((d,) + v.shape[1:], v.dtype)
            return jnp.concatenate([v[d:], pad], axis=0)

        for dw in range(3):
            part = (
                jnp.dot(ops[0], w2_ref[0 * 3 + dw], preferred_element_type=f32)
                + jnp.dot(ops[1], w2_ref[1 * 3 + dw], preferred_element_type=f32)
                + jnp.dot(ops[2], w2_ref[2 * 3 + dw], preferred_element_type=f32))
            if dw == 0:
                acc[...] = part
            else:
                acc[...] += shift_rows(part, dw)

        # maxpool branch (3x3 / stride 2 over post-ReLU y: zero padding is
        # equivalent to -inf here), then the exact (64, 32) conv4 matmul.
        def tap(kh, kw):
            rp, dh = kh % 2, kh // 2
            cp, dw = kw % 2, kw // 2
            blk = rp * 2 + cp
            return ops[dh][:, blk * 64:(blk + 1) * 64], dw

        g0 = None
        g1 = None
        for kh in (1, 2, 3):
            for kw in (1, 2, 3):
                v, dw = tap(kh, kw)
                if dw == 0:
                    g0 = v if g0 is None else jnp.maximum(g0, v)
                else:
                    g1 = v if g1 is None else jnp.maximum(g1, v)
        mx = jnp.maximum(g0, shift_rows(g1, 1))              # (m2, 64) bf16
        acc[:, 160:192] += jnp.dot(mx, w4_ref[...], preferred_element_type=f32)

        # epilogue: bias+ReLU, conv5 emitted channel-major (lane-dense out),
        # bias+ReLU.  All elementwise math stays f32.
        pre = jnp.maximum(acc[...] + bcat_ref[...], 0.0).astype(jnp.bfloat16)
        out = jax.lax.dot_general(
            w5t_ref[...], pre, (((1,), (1,)), ((), ())),
            preferred_element_type=f32) + b5_ref[...]        # (64, m2)
        out = jnp.maximum(out, 0.0)
        o_ref[...] = out.reshape(1, 64, m2)

    return kernel


# ----------------------------------------------------------------------------
# Public forward: NCHW in / NCHW out (matches the PyTorch module)
# ----------------------------------------------------------------------------
def rich_stem_forward(x_nchw, params):
    n, cin, h, w = x_nchw.shape
    assert cin == 3 and h % 2 == 0 and w % 2 == 0, x_nchw.shape
    oh, ow = h // 2, w // 2

    owp = _round_up(ow + 2, 16)              # lane/sublane-friendly scratch width
    tr = _pick_tile_rows(oh, owp)            # output rows per grid step
    assert oh % tr == 0 and ((tr * owp) % 128 == 0 or tr == oh), (oh, tr, owp)
    n_tiles = oh // tr
    trp2 = tr + 2
    m1 = trp2 * owp

    w1, bb1, w2, bcat, w4, w5t, b5 = _prep_params(params)

    # ---- lane-dense block1 im2col, split by output parity phase, row-tiled --
    x = jnp.transpose(x_nchw, (0, 2, 3, 1)).astype(jnp.float32)      # NHWC
    w_pb = 2 * owp + 4
    x_pb = jnp.pad(x, ((0, 0), (4, 4), (4, w_pb - 4 - w), (0, 0)))   # (n,h+8,w_pb,3)

    phases = []
    for rp in range(2):
        for cp in range(2):
            slabs = [x_pb[:, rp + kh: rp + kh + 2 * (oh + 2): 2,
                             cp + kw: cp + kw + 2 * owp: 2, :]
                     for kh in range(5) for kw in range(5)]
            phases.append(jnp.concatenate(slabs, axis=-1))           # (n,oh+2,owp,75)
    phx = jnp.stack(phases, axis=1)                                  # (n,4,oh+2,owp,75)
    phx = jnp.pad(phx, ((0, 0), (0, 0), (0, 0), (0, 0), (0, 128 - 75)))
    tiles = [phx[:, :, t * tr: t * tr + trp2] for t in range(n_tiles)]
    imcol = jnp.stack(tiles, axis=1).reshape(
        n, n_tiles, 4 * m1, 128).astype(jnp.bfloat16)

    kernel = _make_kernel(tr, owp, ow)

    out = pl.pallas_call(
        kernel,
        out_shape=jax.ShapeDtypeStruct((n, 64, oh * owp), jnp.float32),
        grid=(n, n_tiles),
        in_specs=[
            pl.BlockSpec((1, 1, 4 * m1, 128), lambda b, t: (b, t, 0, 0)),
            pl.BlockSpec((128, 64), lambda b, t: (0, 0)),
            pl.BlockSpec((1, 64), lambda b, t: (0, 0)),
            pl.BlockSpec((9, 256, 192), lambda b, t: (0, 0, 0)),
            pl.BlockSpec((1, 192), lambda b, t: (0, 0)),
            pl.BlockSpec((64, 32), lambda b, t: (0, 0)),
            pl.BlockSpec((64, 192), lambda b, t: (0, 0)),
            pl.BlockSpec((64, 1), lambda b, t: (0, 0)),
        ],
        out_specs=pl.BlockSpec((1, 64, tr * owp), lambda b, t: (b, 0, t)),
        scratch_shapes=[
            pltpu.VMEM((trp2, owp, 256), jnp.bfloat16),   # channel-fused y phases
            pltpu.VMEM((tr * owp, 192), jnp.float32),     # block2 accumulator
        ],
        compiler_params=pltpu.CompilerParams(
            dimension_semantics=("parallel", "parallel"),
            vmem_limit_bytes=48 * 1024 * 1024),
    )(imcol, w1, bb1, w2, bcat, w4, w5t, b5)

    out = out.reshape(n, 64, oh, owp)[:, :, :, :ow]       # drop lane padding
    return out                                            # already NCHW


# ----------------------------------------------------------------------------
# Pure-JAX reference (faithful to the PyTorch module, eval-mode BatchNorm)
# ----------------------------------------------------------------------------
def _bn_eval(x, bn):
    gamma, beta, mean, var = bn
    return (x - mean) * jax.lax.rsqrt(var + _BN_EPS) * gamma + beta


def _conv_ref(x, w_oihw, stride, pad):
    return jax.lax.conv_general_dilated(
        x, jnp.transpose(w_oihw, (2, 3, 1, 0)),
        window_strides=(stride, stride), padding=((pad, pad), (pad, pad)),
        dimension_numbers=("NHWC", "HWIO", "NHWC"),
        precision=jax.lax.Precision.HIGHEST)


def rich_stem_reference(x_nchw, p):
    x = jnp.transpose(x_nchw, (0, 2, 3, 1)).astype(jnp.float32)
    o1 = _bn_eval(_conv_ref(x, p["b1_conv1_w"], 1, 1), p["b1_bn1"])
    o2 = _bn_eval(_conv_ref(x, p["b1_conv2_w"], 1, 2), p["b1_bn2"])
    y = jax.nn.relu(jnp.concatenate([o1, o2], axis=-1))

    b1 = _bn_eval(_conv_ref(y, p["b2_conv1_w"], 2, 0), p["b2_bn1"])
    b2 = _conv_ref(y, p["b2_conv2_1_w"], 1, 0)
    b2 = _bn_eval(_conv_ref(b2, p["b2_conv2_2_w"], 2, 1), p["b2_bn2"])
    b3 = _conv_ref(y, p["b2_conv3_1_w"], 1, 0)
    b3 = _bn_eval(_conv_ref(b3, p["b2_conv3_2_w"], 2, 2), p["b2_bn3"])
    mp = jax.lax.reduce_window(y, -jnp.inf, jax.lax.max,
                               (1, 3, 3, 1), (1, 2, 2, 1),
                               ((0, 0), (1, 1), (1, 1), (0, 0)))
    b4 = _bn_eval(_conv_ref(mp, p["b2_conv4_w"], 1, 0), p["b2_bn4"])
    cat = jnp.concatenate([b1, b2, b3, b4], axis=-1)
    ds = _bn_eval(_conv_ref(y, p["b2_ds_w"], 2, 0), p["b2_ds_bn"])
    out = jax.nn.relu(cat + ds)
    out = jax.nn.relu(_bn_eval(_conv_ref(out, p["b2_conv5_w"], 1, 0), p["b2_bn5"]))
    return jnp.transpose(out, (0, 3, 1, 2))


# ----------------------------------------------------------------------------
# Deterministic parameter initialization (shapes from RichStem.__init__)
# ----------------------------------------------------------------------------
def init_params(key):
    def nxt():
        nonlocal key
        key, sub = jax.random.split(key)
        return sub

    def conv_w(cout, cin, k):
        fan_in = cin * k * k
        return (jax.random.normal(nxt(), (cout, cin, k, k), jnp.float32)
                / jnp.sqrt(jnp.float32(fan_in)))

    def bn(c):
        gamma = 1.0 + 0.1 * jax.random.normal(nxt(), (c,), jnp.float32)
        beta = 0.05 * jax.random.normal(nxt(), (c,), jnp.float32)
        mean = 0.02 * jax.random.normal(nxt(), (c,), jnp.float32)
        var = 1.0 + 0.1 * jnp.abs(jax.random.normal(nxt(), (c,), jnp.float32))
        return (gamma, beta, mean, var)

    p = {}
    # StemBlock1(3, [32, 32], stride=1)
    p["b1_conv1_w"] = conv_w(32, 3, 3);   p["b1_bn1"] = bn(32)
    p["b1_conv2_w"] = conv_w(32, 3, 5);   p["b1_bn2"] = bn(32)
    # StemBlock2(64, [32, 64, 64, 32], channel_reduction=16, stride=2)
    p["b2_conv1_w"] = conv_w(32, 64, 1);    p["b2_bn1"] = bn(32)
    p["b2_conv2_1_w"] = conv_w(16, 64, 1)
    p["b2_conv2_2_w"] = conv_w(64, 16, 3);  p["b2_bn2"] = bn(64)
    p["b2_conv3_1_w"] = conv_w(16, 64, 1)
    p["b2_conv3_2_w"] = conv_w(64, 16, 5);  p["b2_bn3"] = bn(64)
    p["b2_conv4_w"] = conv_w(32, 64, 1);    p["b2_bn4"] = bn(32)
    p["b2_ds_w"] = conv_w(192, 64, 1);      p["b2_ds_bn"] = bn(192)
    p["b2_conv5_w"] = conv_w(64, 192, 1);   p["b2_bn5"] = bn(64)
    return p


if __name__ == "__main__":
    key = jax.random.PRNGKey(0)
    pkey, xkey = jax.random.split(key)
    params = init_params(pkey)
    x = jax.random.normal(xkey, (2, 3, 16, 16), jnp.float32)   # NCHW like PyTorch

    fwd = jax.jit(lambda xx: rich_stem_forward(xx, params))
    out = jax.block_until_ready(fwd(x))
    assert out.shape == (2, 64, 8, 8), out.shape
    assert bool(jnp.all(jnp.isfinite(out)))

    ref = jax.block_until_ready(jax.jit(lambda xx: rich_stem_reference(xx, params))(x))
    err = float(jnp.max(jnp.abs(out - ref)))
    assert err < 0.15, f"max abs err vs reference: {err}"
    print("KERNEL_OK")
</pallas_src>

<mosaic_0001>
module attributes {stable_mosaic.version = 11 : i64} {
  func.func @kernel(%arg0: i32, %arg1: i32, %arg2: memref<1x1x640x128xbf16, #tpu.memory_space<vmem>>, %arg3: memref<128x64xbf16, #tpu.memory_space<vmem>>, %arg4: memref<1x64xf32, #tpu.memory_space<vmem>>, %arg5: memref<9x256x192xbf16, #tpu.memory_space<vmem>>, %arg6: memref<1x192xf32, #tpu.memory_space<vmem>>, %arg7: memref<64x32xbf16, #tpu.memory_space<vmem>>, %arg8: memref<64x192xbf16, #tpu.memory_space<vmem>>, %arg9: memref<64x1xf32, #tpu.memory_space<vmem>>, %arg10: memref<1x64x128xf32, #tpu.memory_space<vmem>>, %arg11: memref<10x16x256xbf16, #tpu.memory_space<vmem>>, %arg12: memref<128x192xf32, #tpu.memory_space<vmem>>) attributes {dimension_semantics = [#tpu.dimension_semantics<parallel>, #tpu.dimension_semantics<parallel>], iteration_bounds = array<i64: 2, 1>, scalar_prefetch = 0 : i64, scratch_operands = 2 : i64, tpu.core_type = #tpu.core_type<tc>, window_params = [{transform_indices = @transform_0, window_bounds = array<i64: 1, 1, 640, 128>}, {pipeline_mode = #tpu.pipeline_mode<synchronous>, transform_indices = @transform_1, window_bounds = array<i64: 128, 64>}, {pipeline_mode = #tpu.pipeline_mode<synchronous>, transform_indices = @transform_2, window_bounds = array<i64: 1, 64>}, {pipeline_mode = #tpu.pipeline_mode<synchronous>, transform_indices = @transform_3, window_bounds = array<i64: 9, 256, 192>}, {pipeline_mode = #tpu.pipeline_mode<synchronous>, transform_indices = @transform_4, window_bounds = array<i64: 1, 192>}, {pipeline_mode = #tpu.pipeline_mode<synchronous>, transform_indices = @transform_5, window_bounds = array<i64: 64, 32>}, {pipeline_mode = #tpu.pipeline_mode<synchronous>, transform_indices = @transform_6, window_bounds = array<i64: 64, 192>}, {pipeline_mode = #tpu.pipeline_mode<synchronous>, transform_indices = @transform_7, window_bounds = array<i64: 64, 1>}, {transform_indices = @transform_8, window_bounds = array<i64: 1, 64, 128>}]} {
    %c0 = arith.constant 0 : index
    %c0_0 = arith.constant 0 : index
    %c0_1 = arith.constant 0 : index
    %c0_2 = arith.constant 0 : index
    %0 = vector.load %arg2[%c0, %c0_0, %c0_1, %c0_2] : memref<1x1x640x128xbf16, #tpu.memory_space<vmem>>, vector<1x1x640x128xbf16>
    %1 = vector.shape_cast %0 : vector<1x1x640x128xbf16> to vector<640x128xbf16>
    %c0_3 = arith.constant 0 : index
    %c0_4 = arith.constant 0 : index
    %2 = vector.load %arg3[%c0_3, %c0_4] : memref<128x64xbf16, #tpu.memory_space<vmem>>, vector<128x64xbf16>
    %cst = arith.constant dense<0.000000e+00> : vector<640x64xf32>
    %3 = tpu.matmul %1, %2, %cst {dimension_numbers = #tpu.dot_dimension_numbers<[1], [0], [0], [1], [0, 0, 1, 1], [], []>} : vector<640x128xbf16>, vector<128x64xbf16>, vector<640x64xf32> -> vector<640x64xf32>
    %c0_5 = arith.constant 0 : index
    %c0_6 = arith.constant 0 : index
    %4 = vector.load %arg4[%c0_5, %c0_6] : memref<1x64xf32, #tpu.memory_space<vmem>>, vector<1x64xf32>
    %5 = vector.broadcast %4 : vector<1x64xf32> to vector<640x64xf32>
    %6 = arith.addf %3, %5 : vector<640x64xf32>
    %cst_7 = arith.constant 0.000000e+00 : f32
    %7 = vector.broadcast %cst_7 : f32 to vector<640x64xf32>
    %8 = arith.maximumf %6, %7 : vector<640x64xf32>
    %9 = arith.truncf %8 : vector<640x64xf32> to vector<640x64xbf16>
    %10 = vector.extract_strided_slice %9 {offsets = [0, 0], sizes = [160, 64], strides = [1, 1]} : vector<640x64xbf16> to vector<160x64xbf16>
    %11 = vector.shape_cast %10 : vector<160x64xbf16> to vector<10x16x64xbf16>
    %c0_8 = arith.constant 0 : index
    %c0_9 = arith.constant 0 : index
    %c0_10 = arith.constant 0 : index
    %12 = vector.load %arg11[%c0_8, %c0_9, %c0_10] : memref<10x16x256xbf16, #tpu.memory_space<vmem>>, vector<10x16x64xbf16>
    tpu.vector_store %arg11[%c0_8, %c0_9, %c0_10], %11 {strides = array<i32>} : memref<10x16x256xbf16, #tpu.memory_space<vmem>>, vector<10x16x64xbf16>,
    %13 = vector.extract_strided_slice %9 {offsets = [160, 0], sizes = [160, 64], strides = [1, 1]} : vector<640x64xbf16> to vector<160x64xbf16>
    %14 = vector.shape_cast %13 : vector<160x64xbf16> to vector<10x16x64xbf16>
    %c0_11 = arith.constant 0 : index
    %c0_12 = arith.constant 0 : index
    %c64 = arith.constant 64 : index
    %15 = vector.load %arg11[%c0_11, %c0_12, %c64] : memref<10x16x256xbf16, #tpu.memory_space<vmem>>, vector<10x16x64xbf16>
    tpu.vector_store %arg11[%c0_11, %c0_12, %c64], %14 {strides = array<i32>} : memref<10x16x256xbf16, #tpu.memory_space<vmem>>, vector<10x16x64xbf16>,
    %16 = vector.extract_strided_slice %9 {offsets = [320, 0], sizes = [160, 64], strides = [1, 1]} : vector<640x64xbf16> to vector<160x64xbf16>
    %17 = vector.shape_cast %16 : vector<160x64xbf16> to vector<10x16x64xbf16>
    %c0_13 = arith.constant 0 : index
    %c0_14 = arith.constant 0 : index
    %c128 = arith.constant 128 : index
    %18 = vector.load %arg11[%c0_13, %c0_14, %c128] : memref<10x16x256xbf16, #tpu.memory_space<vmem>>, vector<10x16x64xbf16>
    tpu.vector_store %arg11[%c0_13, %c0_14, %c128], %17 {strides = array<i32>} : memref<10x16x256xbf16, #tpu.memory_space<vmem>>, vector<10x16x64xbf16>,
    %19 = vector.extract_strided_slice %9 {offsets = [480, 0], sizes = [160, 64], strides = [1, 1]} : vector<640x64xbf16> to vector<160x64xbf16>
    %20 = vector.shape_cast %19 : vector<160x64xbf16> to vector<10x16x64xbf16>
    %c0_15 = arith.constant 0 : index
    %c0_16 = arith.constant 0 : index
    %c192 = arith.constant 192 : index
    %21 = vector.load %arg11[%c0_15, %c0_16, %c192] : memref<10x16x256xbf16, #tpu.memory_space<vmem>>, vector<10x16x64xbf16>
    tpu.vector_store %arg11[%c0_15, %c0_16, %c192], %20 {strides = array<i32>} : memref<10x16x256xbf16, #tpu.memory_space<vmem>>, vector<10x16x64xbf16>,
    %cst_17 = arith.constant 0.000000e+00 : bf16
    %22 = vector.broadcast %cst_17 : bf16 to vector<10x1x256xbf16>
    %c0_18 = arith.constant 0 : index
    %c0_19 = arith.constant 0 : index
    %c0_20 = arith.constant 0 : index
    %23 = vector.load %arg11[%c0_18, %c0_19, %c0_20] : memref<10x16x256xbf16, #tpu.memory_space<vmem>>, vector<10x1x256xbf16>
    tpu.vector_store %arg11[%c0_18, %c0_19, %c0_20], %22 {strides = array<i32>} : memref<10x16x256xbf16, #tpu.memory_space<vmem>>, vector<10x1x256xbf16>,
    %cst_21 = arith.constant 0.000000e+00 : bf16
    %24 = vector.broadcast %cst_21 : bf16 to vector<10x7x256xbf16>
    %c0_22 = arith.constant 0 : index
    %c9 = arith.constant 9 : index
    %c0_23 = arith.constant 0 : index
    %25 = vector.load %arg11[%c0_22, %c9, %c0_23] : memref<10x16x256xbf16, #tpu.memory_space<vmem>>, vector<10x7x256xbf16>
    tpu.vector_store %arg11[%c0_22, %c9, %c0_23], %24 {strides = array<i32>} : memref<10x16x256xbf16, #tpu.memory_space<vmem>>, vector<10x7x256xbf16>,
    %c0_i32 = arith.constant 0 : i32
    %26 = arith.cmpi eq, %arg1, %c0_i32 : i32
    %27 = arith.extui %26 : i1 to i32
    %c0_i32_24 = arith.constant 0 : i32
    %28 = arith.cmpi ne, %27, %c0_i32_24 : i32
    scf.if %28 {
      %cst_97 = arith.constant 0.000000e+00 : bf16
      %125 = vector.broadcast %cst_97 : bf16 to vector<1x16x256xbf16>
      %c0_98 = arith.constant 0 : index
      %c0_99 = arith.constant 0 : index
      %c0_100 = arith.constant 0 : index
      %126 = vector.load %arg11[%c0_98, %c0_99, %c0_100] : memref<10x16x256xbf16, #tpu.memory_space<vmem>>, vector<1x16x256xbf16>
      tpu.vector_store %arg11[%c0_98, %c0_99, %c0_100], %125 {strides = array<i32>} : memref<10x16x256xbf16, #tpu.memory_space<vmem>>, vector<1x16x256xbf16>,
    } else {
    }
    %c0_i32_25 = arith.constant 0 : i32
    %29 = arith.cmpi eq, %arg1, %c0_i32_25 : i32
    %30 = arith.extui %29 : i1 to i32
    %c0_i32_26 = arith.constant 0 : i32
    %31 = arith.cmpi ne, %30, %c0_i32_26 : i32
    scf.if %31 {
      %cst_97 = arith.constant 0.000000e+00 : bf16
      %125 = vector.broadcast %cst_97 : bf16 to vector<1x16x256xbf16>
      %c9_98 = arith.constant 9 : index
      %c0_99 = arith.constant 0 : index
      %c0_100 = arith.constant 0 : index
      %126 = vector.load %arg11[%c9_98, %c0_99, %c0_100] : memref<10x16x256xbf16, #tpu.memory_space<vmem>>, vector<1x16x256xbf16>
      tpu.vector_store %arg11[%c9_98, %c0_99, %c0_100], %125 {strides = array<i32>} : memref<10x16x256xbf16, #tpu.memory_space<vmem>>, vector<1x16x256xbf16>,
    } else {
    }
    %c0_27 = arith.constant 0 : index
    %c0_28 = arith.constant 0 : index
    %c0_29 = arith.constant 0 : index
    %32 = vector.load %arg11[%c0_27, %c0_28, %c0_29] : memref<10x16x256xbf16, #tpu.memory_space<vmem>>, vector<8x16x256xbf16>
    %33 = vector.shape_cast %32 : vector<8x16x256xbf16> to vector<128x256xbf16>
    %c1 = arith.constant 1 : index
    %c0_30 = arith.constant 0 : index
    %c0_31 = arith.constant 0 : index
    %34 = vector.load %arg11[%c1, %c0_30, %c0_31] : memref<10x16x256xbf16, #tpu.memory_space<vmem>>, vector<8x16x256xbf16>
    %35 = vector.shape_cast %34 : vector<8x16x256xbf16> to vector<128x256xbf16>
    %c2 = arith.constant 2 : index
    %c0_32 = arith.constant 0 : index
    %c0_33 = arith.constant 0 : index
    %36 = vector.load %arg11[%c2, %c0_32, %c0_33] : memref<10x16x256xbf16, #tpu.memory_space<vmem>>, vector<8x16x256xbf16>
    %37 = vector.shape_cast %36 : vector<8x16x256xbf16> to vector<128x256xbf16>
    %c0_34 = arith.constant 0 : index
    %c0_35 = arith.constant 0 : index
    %c0_36 = arith.constant 0 : index
    %38 = vector.load %arg5[%c0_34, %c0_35, %c0_36] : memref<9x256x192xbf16, #tpu.memory_space<vmem>>, vector<1x256x192xbf16>
    %39 = vector.shape_cast %38 : vector<1x256x192xbf16> to vector<256x192xbf16>
    %cst_37 = arith.constant dense<0.000000e+00> : vector<128x192xf32>
    %40 = tpu.matmul %33, %39, %cst_37 {dimension_numbers = #tpu.dot_dimension_numbers<[1], [0], [0], [1], [0, 0, 1, 1], [], []>} : vector<128x256xbf16>, vector<256x192xbf16>, vector<128x192xf32> -> vector<128x192xf32>
    %c3 = arith.constant 3 : index
    %c0_38 = arith.constant 0 : index
    %c0_39 = arith.constant 0 : index
    %41 = vector.load %arg5[%c3, %c0_38, %c0_39] : memref<9x256x192xbf16, #tpu.memory_space<vmem>>, vector<1x256x192xbf16>
    %42 = vector.shape_cast %41 : vector<1x256x192xbf16> to vector<256x192xbf16>
    %cst_40 = arith.constant dense<0.000000e+00> : vector<128x192xf32>
    %43 = tpu.matmul %35, %42, %cst_40 {dimension_numbers = #tpu.dot_dimension_numbers<[1], [0], [0], [1], [0, 0, 1, 1], [], []>} : vector<128x256xbf16>, vector<256x192xbf16>, vector<128x192xf32> -> vector<128x192xf32>
    %44 = arith.addf %40, %43 : vector<128x192xf32>
    %c6 = arith.constant 6 : index
    %c0_41 = arith.constant 0 : index
    %c0_42 = arith.constant 0 : index
    %45 = vector.load %arg5[%c6, %c0_41, %c0_42] : memref<9x256x192xbf16, #tpu.memory_space<vmem>>, vector<1x256x192xbf16>
    %46 = vector.shape_cast %45 : vector<1x256x192xbf16> to vector<256x192xbf16>
    %cst_43 = arith.constant dense<0.000000e+00> : vector<128x192xf32>
    %47 = tpu.matmul %37, %46, %cst_43 {dimension_numbers = #tpu.dot_dimension_numbers<[1], [0], [0], [1], [0, 0, 1, 1], [], []>} : vector<128x256xbf16>, vector<256x192xbf16>, vector<128x192xf32> -> vector<128x192xf32>
    %48 = arith.addf %44, %47 : vector<128x192xf32>
    %c0_44 = arith.constant 0 : index
    %c0_45 = arith.constant 0 : index
    %49 = vector.load %arg12[%c0_44, %c0_45] : memref<128x192xf32, #tpu.memory_space<vmem>>, vector<128x192xf32>
    tpu.vector_store %arg12[%c0_44, %c0_45], %48 {strides = array<i32>} : memref<128x192xf32, #tpu.memory_space<vmem>>, vector<128x192xf32>,
    %c1_46 = arith.constant 1 : index
    %c0_47 = arith.constant 0 : index
    %c0_48 = arith.constant 0 : index
    %50 = vector.load %arg5[%c1_46, %c0_47, %c0_48] : memref<9x256x192xbf16, #tpu.memory_space<vmem>>, vector<1x256x192xbf16>
    %51 = vector.shape_cast %50 : vector<1x256x192xbf16> to vector<256x192xbf16>
    %cst_49 = arith.constant dense<0.000000e+00> : vector<128x192xf32>
    %52 = tpu.matmul %33, %51, %cst_49 {dimension_numbers = #tpu.dot_dimension_numbers<[1], [0], [0], [1], [0, 0, 1, 1], [], []>} : vector<128x256xbf16>, vector<256x192xbf16>, vector<128x192xf32> -> vector<128x192xf32>
    %c4 = arith.constant 4 : index
    %c0_50 = arith.constant 0 : index
    %c0_51 = arith.constant 0 : index
    %53 = vector.load %arg5[%c4, %c0_50, %c0_51] : memref<9x256x192xbf16, #tpu.memory_space<vmem>>, vector<1x256x192xbf16>
    %54 = vector.shape_cast %53 : vector<1x256x192xbf16> to vector<256x192xbf16>
    %cst_52 = arith.constant dense<0.000000e+00> : vector<128x192xf32>
    %55 = tpu.matmul %35, %54, %cst_52 {dimension_numbers = #tpu.dot_dimension_numbers<[1], [0], [0], [1], [0, 0, 1, 1], [], []>} : vector<128x256xbf16>, vector<256x192xbf16>, vector<128x192xf32> -> vector<128x192xf32>
    %56 = arith.addf %52, %55 : vector<128x192xf32>
    %c7 = arith.constant 7 : index
    %c0_53 = arith.constant 0 : index
    %c0_54 = arith.constant 0 : index
    %57 = vector.load %arg5[%c7, %c0_53, %c0_54] : memref<9x256x192xbf16, #tpu.memory_space<vmem>>, vector<1x256x192xbf16>
    %58 = vector.shape_cast %57 : vector<1x256x192xbf16> to vector<256x192xbf16>
    %cst_55 = arith.constant dense<0.000000e+00> : vector<128x192xf32>
    %59 = tpu.matmul %37, %58, %cst_55 {dimension_numbers = #tpu.dot_dimension_numbers<[1], [0], [0], [1], [0, 0, 1, 1], [], []>} : vector<128x256xbf16>, vector<256x192xbf16>, vector<128x192xf32> -> vector<128x192xf32>
    %60 = arith.addf %56, %59 : vector<128x192xf32>
    %c0_56 = arith.constant 0 : index
    %c0_57 = arith.constant 0 : index
    %61 = vector.load %arg12[%c0_56, %c0_57] : memref<128x192xf32, #tpu.memory_space<vmem>>, vector<128x192xf32>
    %cst_58 = arith.constant 0.000000e+00 : f32
    %62 = vector.broadcast %cst_58 : f32 to vector<1x192xf32>
    %63 = vector.extract_strided_slice %60 {offsets = [1, 0], sizes = [127, 192], strides = [1, 1]} : vector<128x192xf32> to vector<127x192xf32>
    %64 = tpu.concatenate %63, %62 in 0 : vector<127x192xf32>, vector<1x192xf32> -> vector<128x192xf32>
    %65 = arith.addf %61, %64 : vector<128x192xf32>
    %c0_59 = arith.constant 0 : index
    %c0_60 = arith.constant 0 : index
    %66 = vector.load %arg12[%c0_59, %c0_60] : memref<128x192xf32, #tpu.memory_space<vmem>>, vector<128x192xf32>
    tpu.vector_store %arg12[%c0_59, %c0_60], %65 {strides = array<i32>} : memref<128x192xf32, #tpu.memory_space<vmem>>, vector<128x192xf32>,
    %c2_61 = arith.constant 2 : index
    %c0_62 = arith.constant 0 : index
    %c0_63 = arith.constant 0 : index
    %67 = vector.load %arg5[%c2_61, %c0_62, %c0_63] : memref<9x256x192xbf16, #tpu.memory_space<vmem>>, vector<1x256x192xbf16>
    %68 = vector.shape_cast %67 : vector<1x256x192xbf16> to vector<256x192xbf16>
    %cst_64 = arith.constant dense<0.000000e+00> : vector<128x192xf32>
    %69 = tpu.matmul %33, %68, %cst_64 {dimension_numbers = #tpu.dot_dimension_numbers<[1], [0], [0], [1], [0, 0, 1, 1], [], []>} : vector<128x256xbf16>, vector<256x192xbf16>, vector<128x192xf32> -> vector<128x192xf32>
    %c5 = arith.constant 5 : index
    %c0_65 = arith.constant 0 : index
    %c0_66 = arith.constant 0 : index
    %70 = vector.load %arg5[%c5, %c0_65, %c0_66] : memref<9x256x192xbf16, #tpu.memory_space<vmem>>, vector<1x256x192xbf16>
    %71 = vector.shape_cast %70 : vector<1x256x192xbf16> to vector<256x192xbf16>
    %cst_67 = arith.constant dense<0.000000e+00> : vector<128x192xf32>
    %72 = tpu.matmul %35, %71, %cst_67 {dimension_numbers = #tpu.dot_dimension_numbers<[1], [0], [0], [1], [0, 0, 1, 1], [], []>} : vector<128x256xbf16>, vector<256x192xbf16>, vector<128x192xf32> -> vector<128x192xf32>
    %73 = arith.addf %69, %72 : vector<128x192xf32>
    %c8 = arith.constant 8 : index
    %c0_68 = arith.constant 0 : index
    %c0_69 = arith.constant 0 : index
    %74 = vector.load %arg5[%c8, %c0_68, %c0_69] : memref<9x256x192xbf16, #tpu.memory_space<vmem>>, vector<1x256x192xbf16>
    %75 = vector.shape_cast %74 : vector<1x256x192xbf16> to vector<256x192xbf16>
    %cst_70 = arith.constant dense<0.000000e+00> : vector<128x192xf32>
    %76 = tpu.matmul %37, %75, %cst_70 {dimension_numbers = #tpu.dot_dimension_numbers<[1], [0], [0], [1], [0, 0, 1, 1], [], []>} : vector<128x256xbf16>, vector<256x192xbf16>, vector<128x192xf32> -> vector<128x192xf32>
    %77 = arith.addf %73, %76 : vector<128x192xf32>
    %c0_71 = arith.constant 0 : index
    %c0_72 = arith.constant 0 : index
    %78 = vector.load %arg12[%c0_71, %c0_72] : memref<128x192xf32, #tpu.memory_space<vmem>>, vector<128x192xf32>
    %cst_73 = arith.constant 0.000000e+00 : f32
    %79 = vector.broadcast %cst_73 : f32 to vector<2x192xf32>
    %80 = vector.extract_strided_slice %77 {offsets = [2, 0], sizes = [126, 192], strides = [1, 1]} : vector<128x192xf32> to vector<126x192xf32>
    %81 = tpu.concatenate %80, %79 in 0 : vector<126x192xf32>, vector<2x192xf32> -> vector<128x192xf32>
    %82 = arith.addf %78, %81 : vector<128x192xf32>
    %c0_74 = arith.constant 0 : index
    %c0_75 = arith.constant 0 : index
    %83 = vector.load %arg12[%c0_74, %c0_75] : memref<128x192xf32, #tpu.memory_space<vmem>>, vector<128x192xf32>
    tpu.vector_store %arg12[%c0_74, %c0_75], %82 {strides = array<i32>} : memref<128x192xf32, #tpu.memory_space<vmem>>, vector<128x192xf32>,
    %84 = vector.extract_strided_slice %33 {offsets = [0, 192], sizes = [128, 64], strides = [1, 1]} : vector<128x256xbf16> to vector<128x64xbf16>
    %85 = vector.extract_strided_slice %33 {offsets = [0, 128], sizes = [128, 64], strides = [1, 1]} : vector<128x256xbf16> to vector<128x64xbf16>
    %86 = vector.extract_strided_slice %33 {offsets = [0, 192], sizes = [128, 64], strides = [1, 1]} : vector<128x256xbf16> to vector<128x64xbf16>
    %87 = arith.maximumf %85, %86 : vector<128x64xbf16>
    %88 = vector.extract_strided_slice %35 {offsets = [0, 64], sizes = [128, 64], strides = [1, 1]} : vector<128x256xbf16> to vector<128x64xbf16>
    %89 = arith.maximumf %84, %88 : vector<128x64xbf16>
    %90 = vector.extract_strided_slice %35 {offsets = [0, 0], sizes = [128, 64], strides = [1, 1]} : vector<128x256xbf16> to vector<128x64xbf16>
    %91 = arith.maximumf %87, %90 : vector<128x64xbf16>
    %92 = vector.extract_strided_slice %35 {offsets = [0, 64], sizes = [128, 64], strides = [1, 1]} : vector<128x256xbf16> to vector<128x64xbf16>
    %93 = arith.maximumf %91, %92 : vector<128x64xbf16>
    %94 = vector.extract_strided_slice %35 {offsets = [0, 192], sizes = [128, 64], strides = [1, 1]} : vector<128x256xbf16> to vector<128x64xbf16>
    %95 = arith.maximumf %89, %94 : vector<128x64xbf16>
    %96 = vector.extract_strided_slice %35 {offsets = [0, 128], sizes = [128, 64], strides = [1, 1]} : vector<128x256xbf16> to vector<128x64xbf16>
    %97 = arith.maximumf %93, %96 : vector<128x64xbf16>
    %98 = vector.extract_strided_slice %35 {offsets = [0, 192], sizes = [128, 64], strides = [1, 1]} : vector<128x256xbf16> to vector<128x64xbf16>
    %99 = arith.maximumf %97, %98 : vector<128x64xbf16>
    %cst_76 = arith.constant 0.000000e+00 : bf16
    %100 = vector.broadcast %cst_76 : bf16 to vector<1x64xbf16>
    %101 = vector.extract_strided_slice %99 {offsets = [1, 0], sizes = [127, 64], strides = [1, 1]} : vector<128x64xbf16> to vector<127x64xbf16>
    %102 = tpu.concatenate %101, %100 in 0 : vector<127x64xbf16>, vector<1x64xbf16> -> vector<128x64xbf16>
    %103 = arith.maximumf %95, %102 : vector<128x64xbf16>
    %c0_77 = arith.constant 0 : index
    %c160 = arith.constant 160 : index
    %104 = vector.load %arg12[%c0_77, %c160] : memref<128x192xf32, #tpu.memory_space<vmem>>, vector<128x32xf32>
    %c0_78 = arith.constant 0 : index
    %c0_79 = arith.constant 0 : index
    %105 = vector.load %arg7[%c0_78, %c0_79] : memref<64x32xbf16, #tpu.memory_space<vmem>>, vector<64x32xbf16>
    %cst_80 = arith.constant dense<0.000000e+00> : vector<128x32xf32>
    %106 = tpu.matmul %103, %105, %cst_80 {dimension_numbers = #tpu.dot_dimension_numbers<[1], [0], [0], [1], [0, 0, 1, 1], [], []>} : vector<128x64xbf16>, vector<64x32xbf16>, vector<128x32xf32> -> vector<128x32xf32>
    %107 = arith.addf %104, %106 : vector<128x32xf32>
    %c0_81 = arith.constant 0 : index
    %c160_82 = arith.constant 160 : index
    %108 = vector.load %arg12[%c0_81, %c160_82] : memref<128x192xf32, #tpu.memory_space<vmem>>, vector<128x32xf32>
    tpu.vector_store %arg12[%c0_81, %c160_82], %107 {strides = array<i32>} : memref<128x192xf32, #tpu.memory_space<vmem>>, vector<128x32xf32>,
    %c0_83 = arith.constant 0 : index
    %c0_84 = arith.constant 0 : index
    %109 = vector.load %arg12[%c0_83, %c0_84] : memref<128x192xf32, #tpu.memory_space<vmem>>, vector<128x192xf32>
    %c0_85 = arith.constant 0 : index
    %c0_86 = arith.constant 0 : index
    %110 = vector.load %arg6[%c0_85, %c0_86] : memref<1x192xf32, #tpu.memory_space<vmem>>, vector<1x192xf32>
    %111 = vector.broadcast %110 : vector<1x192xf32> to vector<128x192xf32>
    %112 = arith.addf %109, %111 : vector<128x192xf32>
    %cst_87 = arith.constant 0.000000e+00 : f32
    %113 = vector.broadcast %cst_87 : f32 to vector<128x192xf32>
    %114 = arith.maximumf %112, %113 : vector<128x192xf32>
    %115 = arith.truncf %114 : vector<128x192xf32> to vector<128x192xbf16>
    %c0_88 = arith.constant 0 : index
    %c0_89 = arith.constant 0 : index
    %116 = vector.load %arg8[%c0_88, %c0_89] : memref<64x192xbf16, #tpu.memory_space<vmem>>, vector<64x192xbf16>
    %cst_90 = arith.constant dense<0.000000e+00> : vector<64x128xf32>
    %117 = tpu.matmul %116, %115, %cst_90 {dimension_numbers = #tpu.dot_dimension_numbers<[1], [1], [0], [0], [0, 0, 1, 0], [], []>} : vector<64x192xbf16>, vector<128x192xbf16>, vector<64x128xf32> -> vector<64x128xf32>
    %c0_91 = arith.constant 0 : index
    %c0_92 = arith.constant 0 : index
    %118 = vector.load %arg9[%c0_91, %c0_92] : memref<64x1xf32, #tpu.memory_space<vmem>>, vector<64x1xf32>
    %119 = vector.broadcast %118 : vector<64x1xf32> to vector<64x128xf32>
    %120 = arith.addf %117, %119 : vector<64x128xf32>
    %cst_93 = arith.constant 0.000000e+00 : f32
    %121 = vector.broadcast %cst_93 : f32 to vector<64x128xf32>
    %122 = arith.maximumf %120, %121 : vector<64x128xf32>
    %123 = vector.shape_cast %122 : vector<64x128xf32> to vector<1x64x128xf32>
    %c0_94 = arith.constant 0 : index
    %c0_95 = arith.constant 0 : index
    %c0_96 = arith.constant 0 : index
    %124 = vector.load %arg10[%c0_94, %c0_95, %c0_96] : memref<1x64x128xf32, #tpu.memory_space<vmem>>, vector<1x64x128xf32>
    tpu.vector_store %arg10[%c0_94, %c0_95, %c0_96], %123 {strides = array<i32>} : memref<1x64x128xf32, #tpu.memory_space<vmem>>, vector<1x64x128xf32>,
    return
  }
  func.func @transform_0(%arg0: i32, %arg1: i32) -> (i32, i32, i32, i32) {
    %c0_i32 = arith.constant 0 : i32
    %c0_i32_0 = arith.constant 0 : i32
    %c0_i32_1 = arith.constant 0 : i32
    return %arg0, %arg1, %c0_i32, %c0_i32_0 : i32, i32, i32, i32
  }
  func.func @transform_1(%arg0: i32, %arg1: i32) -> (i32, i32) {
    %c0_i32 = arith.constant 0 : i32
    %c0_i32_0 = arith.constant 0 : i32
    %c0_i32_1 = arith.constant 0 : i32
    return %c0_i32, %c0_i32_0 : i32, i32
  }
  func.func @transform_2(%arg0: i32, %arg1: i32) -> (i32, i32) {
    %c0_i32 = arith.constant 0 : i32
    %c0_i32_0 = arith.constant 0 : i32
    %c0_i32_1 = arith.constant 0 : i32
    return %c0_i32, %c0_i32_0 : i32, i32
  }
  func.func @transform_3(%arg0: i32, %arg1: i32) -> (i32, i32, i32) {
    %c0_i32 = arith.constant 0 : i32
    %c0_i32_0 = arith.constant 0 : i32
    %c0_i32_1 = arith.constant 0 : i32
    %c0_i32_2 = arith.constant 0 : i32
    return %c0_i32, %c0_i32_0, %c0_i32_1 : i32, i32, i32
  }
  func.func @transform_4(%arg0: i32, %arg1: i32) -> (i32, i32) {
    %c0_i32 = arith.constant 0 : i32
    %c0_i32_0 = arith.constant 0 : i32
    %c0_i32_1 = arith.constant 0 : i32
    return %c0_i32, %c0_i32_0 : i32, i32
  }
  func.func @transform_5(%arg0: i32, %arg1: i32) -> (i32, i32) {
    %c0_i32 = arith.constant 0 : i32
    %c0_i32_0 = arith.constant 0 : i32
    %c0_i32_1 = arith.constant 0 : i32
    return %c0_i32, %c0_i32_0 : i32, i32
  }
  func.func @transform_6(%arg0: i32, %arg1: i32) -> (i32, i32) {
    %c0_i32 = arith.constant 0 : i32
    %c0_i32_0 = arith.constant 0 : i32
    %c0_i32_1 = arith.constant 0 : i32
    return %c0_i32, %c0_i32_0 : i32, i32
  }
  func.func @transform_7(%arg0: i32, %arg1: i32) -> (i32, i32) {
    %c0_i32 = arith.constant 0 : i32
    %c0_i32_0 = arith.constant 0 : i32
    %c0_i32_1 = arith.constant 0 : i32
    return %c0_i32, %c0_i32_0 : i32, i32
  }
  func.func @transform_8(%arg0: i32, %arg1: i32) -> (i32, i32, i32) {
    %c0_i32 = arith.constant 0 : i32
    %c0_i32_0 = arith.constant 0 : i32
    return %arg0, %c0_i32, %arg1 : i32, i32, i32
  }
}

</mosaic_0001>

<bundles_post_ra>
// kernel: _lambda_.1
= control target key start
LH: loop header
LB: loop body
LE: loop exit
PB: predicated region body
PF: predicated region fallthrough
CT: control target
= control target key end

     0   :  { %s8263_s27 = smov 0   ;;  %s8265_s28 = smov 0   ;;  %s11217_s0 = inlined_call_operand.vmem [shape: bf16[2,1,640,128], index: 0, kind: input, shape index: {}]   ;;  %s11218_s1 = inlined_call_operand.vmem [shape: bf16[128,64], index: 1, kind: input, shape index: {}]   ;;  %s11219_s2 = inlined_call_operand.vmem [shape: f32[1,64], index: 2, kind: input, shape index: {}]   ;;  %s11220_s3 = inlined_call_operand.vmem [shape: bf16[9,256,192], index: 3, kind: input, shape index: {}]   ;;  %s11221_s4 = inlined_call_operand.vmem [shape: f32[1,192], index: 4, kind: input, shape index: {}]   ;;  %s11222_s5 = inlined_call_operand.vmem [shape: bf16[64,32], index: 5, kind: input, shape index: {}]   ;;  %s11223_s6 = inlined_call_operand.vmem [shape: bf16[64,192], index: 6, kind: input, shape index: {}]   ;;  %s11224_s7 = inlined_call_operand.vmem [shape: f32[64,1], index: 7, kind: input, shape index: {}]   ;;  %s11225_s8 = inlined_call_operand.vmem [shape: f32[2,64,128], index: 8, kind: output, shape index: {}]  }
   0x1   :  { %s8267_s29 = smov 0  }
   0x2 LB: > { %s30_s30 = sadd.s32 1, %s8209_s28  ;;  %p6574_p0 = scmp.ge.s32.totalorder %s8213_s29, 1  ;;  %s8213_s29 = sphi %s8267_s29, %s18_s29   ;;  %s8209_s28 = sphi %s8265_s28, %s11547_s28   ;;  %s8205_s27 = sphi %s8263_s27, %s11546_s27  }
   0x3   : > { %p32_p1 = scmp.ge.s32.totalorder %s30_s30, 2  ;;  %p282_p2 = scmp.lt.s32.totalorder %s8213_s29, 3 }
   0x5   : > { %s11549_s30 = smov (%p32_p1, %s30_s30), 0  ;;  %p283_p3 = pnand %p6574_p0, %p282_p2 }
   0x7   : > { %286 = sbr.rel (%p283_p3) target bundleno = 1459 (0x5b3), region = 52 }
   0xc   : > { %v7677_v0 = vld [vmem:[%s11218_s1 + $0x38] sm:$0xff]   ;;  %p323_p4 = scmp.lt.s32.totalorder %s8205_s27, 1  ;;  %v7678_v1 = vld [vmem:[%s11218_s1 + $0x30] sm:$0xff]   ;;  %v7679_v2 = vld [vmem:[%s11218_s1 + $0x28] sm:$0xff]   ;;  %vm1275_vm0 = vcmask 519168   ;;  %s8215_s13 = smov 64  }
   0xd   : > { %7506 = vmatprep.subr.bf16.mxu0 %v7677_v0  ;;  %v7680_v3 = vld [vmem:[%s11218_s1 + $0x20] sm:$0xff]   ;;  %v7681_v5 = vld [vmem:[%s11218_s1 + $0x18] sm:$0xff]   ;;  %v7682_v6 = vld [vmem:[%s11218_s1 + $0x10] sm:$0xff]   ;;  %vm1406_vm1 = vcmask 1043968   ;;  %vm1647_vm2 = vcmask 1040384   ;;  %vm1650_vm4 = vcmask 1044484  }
   0xe   : > { %s11551_s27 = smov (!%p323_p4, %s8205_s27), 1  ;;  %7507 = vmatpush3.bf16.msra.mxu0 %v7677_v0  ;;  %v7683_v7 = vld [vmem:[%s11218_s1 + $0x8] sm:$0xff]   ;;  %v7684_v8 = vld [vmem:[%s11218_s1] sm:$0xff]   ;;  %vm1648_vm3 = vsmask.f32 256  ;;  %vm1684_vm8 = vcmask 1043456  }
   0xf   : > { %7508 = vmatprep.subr.bf16.mxu0 %v7678_v1  ;;  %s7642_s15 = smul.u32 320, %s11551_s27  ;;  %v8356_v48 = vld [vmem:[%s11219_s2] ss:$0 sm:$0xff]  ;;  %vm1651_vm5 = vsmask.f32 4352  ;;  %vm1649_vm6 = vmand %vm1647_vm2, %vm1648_vm3  ;;  %vm1687_vm10 = vcmask 1047556  }
  0x10   : > { %vm1652_vm7 = vmand %vm1650_vm4, %vm1651_vm5  ;;  %vm1685_vm9 = vsmask.f32 7938  ;;  %vm1688_vm11 = vsmask.f32 7954  ;;  %vm5777_vm2 = vcmask 1047552   ;;  %vm4016_vm4 = vcmask 1046528  }
  0x11   : > { %s8296_s18 = scalar_lea.vmem %s11217_s0, %s7642_s15  ;;  %vm8776_vm12 = vmor %vm1652_vm7, %vm1649_vm6  ;;  %vm5191_vm5 = vcmask 1045504   ;;  %s8217_s25 = smov 32   ;;  %vm6134_vm6 = vcmask 523520  }
  0x12   : > { %7509 = vmatpush3.bf16.msra.mxu0 %v7678_v1  ;;  %v7685_v4 = vld [vmem:[%s8296_s18] sm:$0xff]   ;;  %v7686_v9 = vld [vmem:[%s8296_s18 + $0x8] sm:$0xff]   ;;  %v7687_v10 = vld [vmem:[%s8296_s18 + $0x10] sm:$0xff]   ;;  %s7365_s23 = sshll.u32 %s11551_s27, 6 }
  0x13   : > { %7510 = vmatprep.subr.bf16.mxu0 %v7679_v2  ;;  %7522 = vmatprep.mubr.bf16.mxu0 %v7685_v4  ;;  %v7688_v11 = vld [vmem:[%s8296_s18 + $0x18] sm:$0xff]   ;;  %v7689_v12 = vld [vmem:[%s8296_s18 + $0x20] sm:$0xff]   ;;  %v7690_v13 = vld [vmem:[%s8296_s18 + $0x28] sm:$0xff]  }
  0x14   : > { %v7691_v14 = vld [vmem:[%s8296_s18 + $0x30] sm:$0xff]   ;;  %v7692_v15 = vld [vmem:[%s8296_s18 + $0x38] sm:$0xff]   ;;  %v7693_v16 = vld [vmem:[%s8296_s18 + $0x40] sm:$0xff]  }
  0x15   : > { %v7694_v17 = vld [vmem:[%s8296_s18 + $0x48] sm:$0xff]   ;;  %v7695_v18 = vld [vmem:[%s8296_s18 + $0x50] sm:$0xff]   ;;  %v7696_v19 = vld [vmem:[%s8296_s18 + $0x58] sm:$0xff]  }
  0x16   : > { %7511 = vmatpush3.bf16.msra.mxu0 %v7679_v2  ;;  %v7697_v20 = vld [vmem:[%s8296_s18 + $0x60] sm:$0xff]   ;;  %v7698_v21 = vld [vmem:[%s8296_s18 + $0x68] sm:$0xff]   ;;  %v7699_v22 = vld [vmem:[%s8296_s18 + $0x70] sm:$0xff]  }
  0x17   : > { %7512 = vmatprep.subr.bf16.mxu0 %v7680_v3  ;;  %v7700_v23 = vld [vmem:[%s8296_s18 + $0x78] sm:$0xff]   ;;  %v7701_v24 = vld [vmem:[%s8296_s18 + $0x80] sm:$0xff]   ;;  %v7702_v25 = vld [vmem:[%s8296_s18 + $0x88] sm:$0xff]  }
  0x18   : > { %v7703_v26 = vld [vmem:[%s8296_s18 + $0x90] sm:$0xff]   ;;  %v7704_v27 = vld [vmem:[%s8296_s18 + $0x98] sm:$0xff]   ;;  %v7705_v28 = vld [vmem:[%s8296_s18 + $0xa0] sm:$0xff]  }
  0x19   : > { %v7706_v29 = vld [vmem:[%s8296_s18 + $0xa8] sm:$0xff]   ;;  %v7707_v30 = vld [vmem:[%s8296_s18 + $0xb0] sm:$0xff]   ;;  %v7708_v31 = vld [vmem:[%s8296_s18 + $0xb8] sm:$0xff]  }
  0x1a   : > { %7513 = vmatpush3.bf16.msra.mxu0 %v7680_v3  ;;  %v7709_v32 = vld [vmem:[%s8296_s18 + $0xc0] sm:$0xff]   ;;  %v7710_v33 = vld [vmem:[%s8296_s18 + $0xc8] sm:$0xff]   ;;  %v7711_v34 = vld [vmem:[%s8296_s18 + $0xd0] sm:$0xff]  }
  0x1b   : > { %7514 = vmatprep.subr.bf16.mxu0 %v7681_v5  ;;  %v7712_v35 = vld [vmem:[%s8296_s18 + $0xd8] sm:$0xff]   ;;  %v7713_v36 = vld [vmem:[%s8296_s18 + $0xe0] sm:$0xff]   ;;  %v7714_v37 = vld [vmem:[%s8296_s18 + $0xe8] sm:$0xff]  }
  0x1c   : > { %v7715_v38 = vld [vmem:[%s8296_s18 + $0xf0] sm:$0xff]   ;;  %v7716_v39 = vld [vmem:[%s8296_s18 + $0xf8] sm:$0xff]   ;;  %v7717_v40 = vld [vmem:[%s8296_s18 + $0x100] sm:$0xff]  }
  0x1d   : > { %v7718_v41 = vld [vmem:[%s8296_s18 + $0x108] sm:$0xff]   ;;  %v7719_v42 = vld [vmem:[%s8296_s18 + $0x110] sm:$0xff]   ;;  %v7720_v43 = vld [vmem:[%s8296_s18 + $0x118] sm:$0xff]  }
  0x1e   : > { %7515 = vmatpush3.bf16.msra.mxu0 %v7681_v5  ;;  %v7721_v44 = vld [vmem:[%s8296_s18 + $0x120] sm:$0xff]   ;;  %v7722_v45 = vld [vmem:[%s8296_s18 + $0x128] sm:$0xff]   ;;  %v7723_v46 = vld [vmem:[%s8296_s18 + $0x130] sm:$0xff]  }
  0x1f   : > { %7516 = vmatprep.subr.bf16.mxu0 %v7682_v6  ;;  %v7724_v47 = vld [vmem:[%s8296_s18 + $0x138] sm:$0xff]   ;;  %vm1686_vm13 = vmand %vm1684_vm8, %vm1685_vm9 }
  0x20   : > { %vm1689_vm14 = vmand %vm1687_vm10, %vm1688_vm11 }
  0x21   : > { %vm8784_vm15 = vmor %vm1689_vm14, %vm1686_vm13 }
  0x22   : > { %7517 = vmatpush3.bf16.msra.mxu0 %v7682_v6 }
  0x23   : > { %7518 = vmatprep.subr.bf16.mxu0 %v7683_v7 }
  0x26   : > { %7519 = vmatpush3.bf16.msra.mxu0 %v7683_v7 }
  0x27   : > { %7520 = vmatprep.subr.bf16.mxu0 %v7684_v8 }
  0x2a   : > { %7521 = vmatpush3.bf16.msra.mxu0 %v7684_v8 }
  0x2d   : > { %7523 = vmatmul.mubr.bf16.vlgmr.msra.gmra.mxu0 %v7686_v9 }
  0x2e   : > { %7526 = vmatprep.mubr.bf16.mxu0 %v7687_v10 }
  0x35   : > { %7527 = vmatmul.mubr.bf16.gmra.mxu0 %v7688_v11 }
  0x36   : > { %7530 = vmatprep.mubr.bf16.mxu0 %v7689_v12 }
  0x3d   : > { %7531 = vmatmul.mubr.bf16.gmra.mxu0 %v7690_v13 }
  0x3e   : > { %7534 = vmatprep.mubr.bf16.mxu0 %v7691_v14 }
  0x45   : > { %7535 = vmatmul.mubr.bf16.gmra.mxu0 %v7692_v15 }
  0x46   : > { %7538 = vmatprep.mubr.bf16.mxu0 %v7693_v16 }
  0x4d   : > { %7539 = vmatmul.mubr.bf16.gmra.mxu0 %v7694_v17 }
  0x4e   : > { %7542 = vmatprep.mubr.bf16.mxu0 %v7695_v18 }
  0x55   : > { %7543 = vmatmul.mubr.bf16.gmra.mxu0 %v7696_v19 }
  0x56   : > { %7546 = vmatprep.mubr.bf16.mxu0 %v7697_v20 }
  0x5d   : > { %7547 = vmatmul.mubr.bf16.gmra.mxu0 %v7698_v21 }
  0x5e   : > { %7550 = vmatprep.mubr.bf16.mxu0 %v7699_v22 }
  0x65   : > { %7551 = vmatmul.mubr.bf16.gmra.mxu0 %v7700_v23 }
  0x66   : > { %7554 = vmatprep.mubr.bf16.mxu0 %v7701_v24 }
  0x6d   : > { %7555 = vmatmul.mubr.bf16.gmra.mxu0 %v7702_v25 }
  0x6e   : > { %7558 = vmatprep.mubr.bf16.mxu0 %v7703_v26 }
  0x75   : > { %7559 = vmatmul.mubr.bf16.gmra.mxu0 %v7704_v27 }
  0x76   : > { %7562 = vmatprep.mubr.bf16.mxu0 %v7705_v28 }
  0x7d   : > { %7563 = vmatmul.mubr.bf16.gmra.mxu0 %v7706_v29 }
  0x7e   : > { %7566 = vmatprep.mubr.bf16.mxu0 %v7707_v30 }
  0x85   : > { %7567 = vmatmul.mubr.bf16.gmra.mxu0 %v7708_v31 }
  0x86   : > { %7570 = vmatprep.mubr.bf16.mxu0 %v7709_v32 }
  0x8d   : > { %7571 = vmatmul.mubr.bf16.gmra.mxu0 %v7710_v33 }
  0x8e   : > { %7574 = vmatprep.mubr.bf16.mxu0 %v7711_v34 }
  0x95   : > { %7575 = vmatmul.mubr.bf16.gmra.mxu0 %v7712_v35 }
  0x96   : > { %7578 = vmatprep.mubr.bf16.mxu0 %v7713_v36 }
  0x9d   : > { %7579 = vmatmul.mubr.bf16.gmra.mxu0 %v7714_v37 }
  0x9e   : > { %7582 = vmatprep.mubr.bf16.mxu0 %v7715_v38 }
  0xa5   : > { %7583 = vmatmul.mubr.bf16.gmra.mxu0 %v7716_v39 }
  0xa6   : > { %7586 = vmatprep.mubr.bf16.mxu0 %v7717_v40 }
  0xad   : > { %7587 = vmatmul.mubr.bf16.gmra.mxu0 %v7718_v41 }
  0xae   : > { %7590 = vmatprep.mubr.bf16.mxu0 %v7719_v42 }
  0xb5   : > { %7591 = vmatmul.mubr.bf16.gmra.mxu0 %v7720_v43 }
  0xb6   : > { %7594 = vmatprep.mubr.bf16.mxu0 %v7721_v44 }
  0xbd   : > { %7595 = vmatmul.mubr.bf16.gmra.mxu0 %v7722_v45 }
  0xbe   : > { %7598 = vmatprep.mubr.bf16.mxu0 %v7723_v46 }
  0xc5   : > { %7599 = vmatmul.mubr.bf16.gmra.mxu0 %v7724_v47 }
  0xed   : > { %v7524_v49 = vpop.f32.mrf.mxu0 }
  0xee   : > { %v775_v50 = vadd.f32 %v7524_v49, %v8356_v48 }
  0xef   : > { %v766_v51 = vpop.f32.mrf.mxu0 }
  0xf0   : > { %v1087_v52 = vmax.f32 %v775_v50, 0.0  ;;  %v767_v53 = vadd.f32 %v8356_v48, %v766_v51 }
  0xf1   : > { %v7525_v54 = vpop.f32.mrf.mxu0 }
  0xf2   : > { %v7368_v55 = vpack.c.bf16 %v1087_v52, %v1087_v52  ;;  %v1085_v56 = vmax.f32 %v767_v53, 0.0  ;;  %v778_v57 = vadd.f32 %v7525_v54, %v8356_v48 }
  0xf3   : > { %v769_v58 = vpop.f32.mrf.mxu0 }
  0xf4   : > { %1278 = vst.msk [vmem:[#allocation2 + $0x10] sm:$0xf] %vm1275_vm0, %v7368_v55  ;;  %v7366_v59 = vpack.c.bf16 %v1085_v56, %v1085_v56  ;;  %v1088_v60 = vmax.f32 %v778_v57, 0.0  ;;  %v770_v61 = vadd.f32 %v8356_v48, %v769_v58 }
  0xf5   : > { %v7528_v62 = vpop.f32.mrf.mxu0 }
  0xf6   : > { %1276 = vst.msk [vmem:[#allocation2] sm:$0xf] %vm1275_vm0, %v7366_v59  ;;  %v7369_v63 = vpack.c.bf16 %v1088_v60, %v1088_v60  ;;  %v1086_v0 = vmax.f32 %v770_v61, 0.0  ;;  %v791_v1 = vadd.f32 %v7528_v62, %v8356_v48 }
  0xf7   : > { %v782_v2 = vpop.f32.mrf.mxu0 }
  0xf8   : > { %1279 = vst.msk [vmem:[#allocation2 + $0x18] sm:$0xf] %vm1275_vm0, %v7369_v63  ;;  %v7367_v3 = vpack.c.bf16 %v1086_v0, %v1086_v0  ;;  %v1091_v4 = vmax.f32 %v791_v1, 0.0  ;;  %v783_v5 = vadd.f32 %v8356_v48, %v782_v2 }
  0xf9   : > { %v7529_v6 = vpop.f32.mrf.mxu0 }
  0xfa   : > { %1277 = vst.msk [vmem:[#allocation2 + $0x8] sm:$0xf] %vm1275_vm0, %v7367_v3  ;;  %v7372_v7 = vpack.c.bf16 %v1091_v4, %v1091_v4  ;;  %v1089_v8 = vmax.f32 %v783_v5, 0.0  ;;  %v794_v9 = vadd.f32 %v7529_v6, %v8356_v48 }
  0xfb   : > { %v785_v10 = vpop.f32.mrf.mxu0 }
  0xfc   : > { %1282 = vst.msk [vmem:[#allocation2 + $0x30] sm:$0xf] %vm1275_vm0, %v7372_v7  ;;  %v7370_v11 = vpack.c.bf16 %v1089_v8, %v1089_v8  ;;  %v1092_v12 = vmax.f32 %v794_v9, 0.0  ;;  %v786_v13 = vadd.f32 %v8356_v48, %v785_v10 }
  0xfd   : > { %v7532_v14 = vpop.f32.mrf.mxu0 }
  0xfe   : > { %1280 = vst.msk [vmem:[#allocation2 + $0x20] sm:$0xf] %vm1275_vm0, %v7370_v11  ;;  %v7373_v15 = vpack.c.bf16 %v1092_v12, %v1092_v12  ;;  %v1090_v16 = vmax.f32 %v786_v13, 0.0  ;;  %v807_v17 = vadd.f32 %v7532_v14, %v8356_v48 }
  0xff   : > { %v798_v18 = vpop.f32.mrf.mxu0 }
 0x100   : > { %1283 = vst.msk [vmem:[#allocation2 + $0x38] sm:$0xf] %vm1275_vm0, %v7373_v15  ;;  %v7371_v19 = vpack.c.bf16 %v1090_v16, %v1090_v16  ;;  %v1095_v20 = vmax.f32 %v807_v17, 0.0  ;;  %v799_v21 = vadd.f32 %v8356_v48, %v798_v18 }
 0x101   : > { %v7533_v22 = vpop.f32.mrf.mxu0 }
 0x102   : > { %1281 = vst.msk [vmem:[#allocation2 + $0x28] sm:$0xf] %vm1275_vm0, %v7371_v19  ;;  %v7376_v23 = vpack.c.bf16 %v1095_v20, %v1095_v20  ;;  %v1093_v24 = vmax.f32 %v799_v21, 0.0  ;;  %v810_v25 = vadd.f32 %v7533_v22, %v8356_v48 }
 0x103   : > { %v801_v26 = vpop.f32.mrf.mxu0 }
 0x104   : > { %1286 = vst.msk [vmem:[#allocation2 + $0x50] sm:$0xf] %vm1275_vm0, %v7376_v23  ;;  %v7374_v27 = vpack.c.bf16 %v1093_v24, %v1093_v24  ;;  %v1096_v28 = vmax.f32 %v810_v25, 0.0  ;;  %v802_v29 = vadd.f32 %v8356_v48, %v801_v26  ;;  %v7725_v23 = vld [vmem:[%s11220_s3 + $0x374] ss:$8 sps:$4 sm:$0xff]  }
 0x105   : > { %v7536_v30 = vpop.f32.mrf.mxu0  ;;  %v7727_v24 = vld [vmem:[%s11220_s3 + $0x370] ss:$8 sps:$4 sm:$0xff]   ;;  %2085 = vmatprep.subr.bf16.mxu1 %v7725_v23 }
 0x106   : > { %1284 = vst.msk [vmem:[#allocation2 + $0x40] sm:$0xf] %vm1275_vm0, %v7374_v27  ;;  %v7377_v31 = vpack.c.bf16 %v1096_v28, %v1096_v28  ;;  %v1094_v32 = vmax.f32 %v802_v29, 0.0  ;;  %v823_v33 = vadd.f32 %v7536_v30, %v8356_v48  ;;  %2086 = vmatpush1.bf16.msra.mxu1 %v7727_v24  ;;  %v7728_v27 = vld [vmem:[%s11220_s3 + $0x364] ss:$8 sps:$4 sm:$0xff]  }
 0x107   : > { %v814_v34 = vpop.f32.mrf.mxu0  ;;  %v7730_v28 = vld [vmem:[%s11220_s3 + $0x360] ss:$8 sps:$4 sm:$0xff]   ;;  %2087 = vmatprep.subr.bf16.mxu1 %v7728_v27 }
 0x108   : > { %1287 = vst.msk [vmem:[#allocation2 + $0x58] sm:$0xf] %vm1275_vm0, %v7377_v31  ;;  %v7375_v35 = vpack.c.bf16 %v1094_v32, %v1094_v32  ;;  %v1099_v36 = vmax.f32 %v823_v33, 0.0  ;;  %v815_v37 = vadd.f32 %v8356_v48, %v814_v34  ;;  %v7731_v31 = vld [vmem:[%s11220_s3 + $0x354] ss:$8 sps:$4 sm:$0xff]  }
 0x109   : > { %v7537_v38 = vpop.f32.mrf.mxu0  ;;  %v7733_v32 = vld [vmem:[%s11220_s3 + $0x350] ss:$8 sps:$4 sm:$0xff]  }
 0x10a   : > { %1285 = vst.msk [vmem:[#allocation2 + $0x48] sm:$0xf] %vm1275_vm0, %v7375_v35  ;;  %v7380_v39 = vpack.c.bf16 %v1099_v36, %v1099_v36  ;;  %v1097_v40 = vmax.f32 %v815_v37, 0.0  ;;  %v826_v41 = vadd.f32 %v7537_v38, %v8356_v48  ;;  %2088 = vmatpush1.bf16.msra.mxu1 %v7730_v28  ;;  %v7734_v33 = vld [vmem:[%s11220_s3 + $0x670] ss:$8 sps:$4 sm:$0xff]  }
 0x10b   : > { %v817_v42 = vpop.f32.mrf.mxu0  ;;  %2089 = vmatprep.subr.bf16.mxu1 %v7731_v31  ;;  %v7736_v35 = vld [vmem:[%s11220_s3 + $0x674] ss:$8 sps:$4 sm:$0xff]   ;;  %v7737_v36 = vld [vmem:[%s11220_s3 + $0x344] ss:$8 sps:$4 sm:$0xff]   ;;  %v7739_v37 = vld [vmem:[%s11220_s3 + $0x340] ss:$8 sps:$4 sm:$0xff]  }
 0x10c   : > { %1290 = vst.msk [vmem:[#allocation2 + $0x70] sm:$0xf] %vm1275_vm0, %v7380_v39  ;;  %v7378_v43 = vpack.c.bf16 %v1097_v40, %v1097_v40  ;;  %v1100_v44 = vmax.f32 %v826_v41, 0.0  ;;  %v818_v45 = vadd.f32 %v8356_v48, %v817_v42  ;;  %v7742_v38 = vld [vmem:[%s11220_s3 + $0x664] ss:$8 sps:$4 sm:$0xff]   ;;  %2824 = vmatprep.subr.bf16.mxu0 %v7736_v35 }
 0x10d   : > { %v7540_v46 = vpop.f32.mrf.mxu0  ;;  %v7743_v40 = vld [vmem:[%s11220_s3 + $0x334] ss:$8 sps:$4 sm:$0xff]   ;;  %2825 = vmatpush1.bf16.msra.mxu0 %v7734_v33  ;;  %v7740_v42 = vld [vmem:[%s11220_s3 + $0x660] ss:$8 sps:$4 sm:$0xff]   ;;  %v7758_v28 = vld [vmem:[%s11220_s3 + $0x630] ss:$8 sps:$4 sm:$0xff]  }
 0x10e   : > { %1288 = vst.msk [vmem:[#allocation2 + $0x60] sm:$0xf] %vm1275_vm0, %v7378_v43  ;;  %v7381_v47 = vpack.c.bf16 %v1100_v44, %v1100_v44  ;;  %v1098_v49 = vmax.f32 %v818_v45, 0.0  ;;  %v839_v50 = vadd.f32 %v7540_v46, %v8356_v48  ;;  %2090 = vmatpush1.bf16.msra.mxu1 %v7733_v32  ;;  %2826 = vmatprep.subr.bf16.mxu0 %v7742_v38  ;;  %v7748_v44 = vld [vmem:[%s11220_s3 + $0x654] ss:$8 sps:$4 sm:$0xff]  }
 0x10f   : > { %v830_v51 = vpop.f32.mrf.mxu0  ;;  %2091 = vmatprep.subr.bf16.mxu1 %v7737_v36  ;;  %v7766_v32 = vld [vmem:[%s11220_s3 + $0x624] ss:$8 sps:$4 sm:$0xff]  }
 0x110   : > { %1291 = vst.msk [vmem:[#allocation2 + $0x78] sm:$0xf] %vm1275_vm0, %v7381_v47  ;;  %v7379_v52 = vpack.c.bf16 %v1098_v49, %v1098_v49  ;;  %v1103_v53 = vmax.f32 %v839_v50, 0.0  ;;  %v831_v54 = vadd.f32 %v8356_v48, %v830_v51  ;;  %v7745_v47 = vld [vmem:[%s11220_s3 + $0x330] ss:$8 sps:$4 sm:$0xff]  }
 0x111   : > { %v7541_v55 = vpop.f32.mrf.mxu0  ;;  %v7749_v50 = vld [vmem:[%s11220_s3 + $0x324] ss:$8 sps:$4 sm:$0xff]   ;;  %2827 = vmatpush1.bf16.msra.mxu0 %v7740_v42 }
 0x112   : > { %1289 = vst.msk [vmem:[#allocation2 + $0x68] sm:$0xf] %vm1275_vm0, %v7379_v52  ;;  %v7384_v56 = vpack.c.bf16 %v1103_v53, %v1103_v53  ;;  %v1101_v57 = vmax.f32 %v831_v54, 0.0  ;;  %2092 = vmatpush1.bf16.msra.mxu1 %v7739_v37  ;;  %v7746_v54 = vld [vmem:[%s11220_s3 + $0x650] ss:$8 sps:$4 sm:$0xff]   ;;  %2828 = vmatprep.subr.bf16.mxu0 %v7748_v44 }
 0x113   : > { %v833_v58 = vpop.f32.mrf.mxu0  ;;  %2093 = vmatprep.subr.bf16.mxu1 %v7743_v40  ;;  %v7763_v37 = vld [vmem:[%s11220_s3 + $0x300] ss:$8 sps:$4 sm:$0xff]  }
 0x114   : > { %1294 = vst.msk [vmem:[#allocation2 + $0x90] sm:$0xf] %vm1275_vm0, %v7384_v56  ;;  %v7382_v59 = vpack.c.bf16 %v1101_v57, %v1101_v57  ;;  %v834_v60 = vadd.f32 %v8356_v48, %v833_v58  ;;  %v7754_v56 = vld [vmem:[%s11220_s3 + $0x644] ss:$8 sps:$4 sm:$0xff]  }
 0x115   : > { %v7544_v61 = vpop.f32.mrf.mxu0  ;;  %2829 = vmatpush1.bf16.msra.mxu0 %v7746_v54 }
 0x116   : > { %1292 = vst.msk [vmem:[#allocation2 + $0x80] sm:$0xf] %vm1275_vm0, %v7382_v59  ;;  %v1102_v62 = vmax.f32 %v834_v60, 0.0  ;;  %v855_v63 = vadd.f32 %v7544_v61, %v8356_v48  ;;  %2094 = vmatpush1.bf16.msra.mxu1 %v7745_v47  ;;  %v7751_v60 = vld [vmem:[%s11220_s3 + $0x320] ss:$8 sps:$4 sm:$0xff]   ;;  %2830 = vmatprep.subr.bf16.mxu0 %v7754_v56 }
 0x117   : > { %v8396_v0 = vpop.f32.mrf.mxu0  ;;  %2095 = vmatprep.subr.bf16.mxu1 %v7749_v50  ;;  %v7769_v50 = vld [vmem:[%s11220_s3 + $0x3f0] ss:$8 sps:$4 sm:$0xff]  }
 0x118   : > { %v7383_v1 = vpack.c.bf16 %v1102_v62, %v1102_v62  ;;  %v1107_v2 = vmax.f32 %v855_v63, 0.0  ;;  %v7755_v62 = vld [vmem:[%s11220_s3 + $0x314] ss:$8 sps:$4 sm:$0xff]   ;;  %v7770_v56 = vld [vmem:[%s11220_s3 + $0x610] ss:$8 sps:$4 sm:$0xff]  }
 0x119   : > { %v7545_v3 = vpop.f32.mrf.mxu0 }
 0x11a   : > { %1293 = vst.msk [vmem:[#allocation2 + $0x88] sm:$0xf] %vm1275_vm0, %v7383_v1  ;;  %v858_v4 = vadd.f32 %v7545_v3, %v8356_v48  ;;  %v7388_v5 = vpack.c.bf16 %v1107_v2, %v1107_v2  ;;  %v7752_v3 = vld [vmem:[%s11220_s3 + $0x640] ss:$8 sps:$4 sm:$0xff]   ;;  %2096 = vmatpush1.bf16.msra.mxu1 %v7751_v60 }
 0x11b   : > { %v8400_v6 = vpop.f32.mrf.mxu0  ;;  %2097 = vmatprep.subr.bf16.mxu1 %v7755_v62  ;;  %2831 = vmatpush1.bf16.msra.mxu0 %v7752_v3  ;;  %v7775_v62 = vld [vmem:[%s11220_s3 + $0x3e0] ss:$8 sps:$4 sm:$0xff]  }
 0x11c   : > { %v1108_v7 = vmax.f32 %v858_v4, 0.0  ;;  %1350 = vrot.lane.b32.xlu0 %v7388_v5, %s8215_s13  ;;  %v7760_v5 = vld [vmem:[%s11220_s3 + $0x634] ss:$8 sps:$4 sm:$0xff]  }
 0x11d   : > { %v8403_v8 = vpop.f32.mrf.mxu0  ;;  %2832 = vmatprep.subr.bf16.mxu0 %v7760_v5 }
 0x11e   : > { %v7389_v9 = vpack.c.bf16 %v1108_v7, %v1108_v7 }
 0x11f   : > { %v862_v10 = vpop.f32.mrf.mxu0  ;;  %2833 = vmatpush1.bf16.msra.mxu0 %v7758_v28 }
 0x120   : > { %v863_v11 = vadd.f32 %v8356_v48, %v862_v10  ;;  %1352 = vrot.lane.b32.xlu0 %v7389_v9, %s8215_s13  ;;  %2834 = vmatprep.subr.bf16.mxu0 %v7766_v32 }
 0x121   : > { %v8407_v12 = vpop.f32.mrf.mxu0 }
 0x122   : > { %v1109_v13 = vmax.f32 %v863_v11, 0.0  ;;  %v7757_v11 = vld [vmem:[%s11220_s3 + $0x310] ss:$8 sps:$4 sm:$0xff]  }
 0x123   : > { %v8409_v14 = vpop.f32.mrf.mxu0  ;;  %2098 = vmatpush1.bf16.msra.mxu1 %v7757_v11 }
 0x124   : > { %v7390_v15 = vpack.c.bf16 %v1109_v13, %v1109_v13 }
 0x125   : > { %v8411_v16 = vpop.f32.mrf.mxu0 }
 0x126   : > { %1354 = vrot.lane.b32.xlu0 %v7390_v15, %s8215_s13  ;;  %v7761_v15 = vld [vmem:[%s11220_s3 + $0x304] ss:$8 sps:$4 sm:$0xff]  }
 0x127   : > { %v8414_v17 = vpop.f32.mrf.mxu0  ;;  %2099 = vmatprep.subr.bf16.mxu1 %v7761_v15 }
 0x128   : > { %2100 = vmatpush1.bf16.msra.mxu1 %v7763_v37 }
 0x129   : > { %v8416_v18 = vpop.f32.mrf.mxu0 }
 0x12b   : > { %v8418_v19 = vpop.f32.mrf.mxu0 }
 0x12d   : > { %v8420_v20 = vpop.f32.mrf.mxu0 }
 0x12f   : > { %v8422_v21 = vpop.f32.mrf.mxu0 }
 0x131   : > { %v8424_v22 = vpop.f32.mrf.mxu0 }
 0x133   : > { %v8432_v25 = vpop.f32.mrf.mxu0 }
 0x135   : > { %v8434_v26 = vpop.f32.mrf.mxu0 }
 0x137   : > { %v8442_v29 = vpop.f32.mrf.mxu0 }
 0x139   : > { %v8444_v30 = vpop.f32.mrf.mxu0 }
 0x13b   : > { %v8455_v34 = vpop.f32.mrf.mxu0 }
 0x13d   : > { %v7564_v39 = vpop.f32.mrf.mxu0 }
 0x13e   : > { %v935_v41 = vadd.f32 %v7564_v39, %v8356_v48  ;;  %v7767_v39 = vld [vmem:[%s11220_s3 + $0x3f4] ss:$8 sps:$4 sm:$0xff]  }
 0x13f   : > { %v926_v43 = vpop.f32.mrf.mxu0  ;;  %2101 = vmatprep.subr.bf16.mxu1 %v7767_v39 }
 0x140   : > { %v1127_v45 = vmax.f32 %v935_v41, 0.0  ;;  %v927_v46 = vadd.f32 %v8356_v48, %v926_v43  ;;  %v7764_v43 = vld [vmem:[%s11220_s3 + $0x620] ss:$8 sps:$4 sm:$0xff]   ;;  %2102 = vmatpush2.bf16.msra.mxu1 %v7769_v50 }
 0x141   : > { %v7565_v49 = vpop.f32.mrf.mxu0  ;;  %2835 = vmatpush1.bf16.msra.mxu0 %v7764_v43 }
 0x142   : > { %v7408_v51 = vpack.c.bf16 %v1127_v45, %v1127_v45  ;;  %v1125_v52 = vmax.f32 %v927_v46, 0.0  ;;  %v938_v53 = vadd.f32 %v7565_v49, %v8356_v48  ;;  %v7772_v45 = vld [vmem:[%s11220_s3 + $0x614] ss:$8 sps:$4 sm:$0xff]  }
 0x143   : > { %v929_v55 = vpop.f32.mrf.mxu0  ;;  %2836 = vmatprep.subr.bf16.mxu0 %v7772_v45 }
 0x144   : > { %1499 = vst.msk [vmem:[#allocation2 + $0x14] sm:$0xf] %vm1275_vm0, %v7408_v51  ;;  %v7406_v57 = vpack.c.bf16 %v1125_v52, %v1125_v52  ;;  %v1128_v58 = vmax.f32 %v938_v53, 0.0  ;;  %v930_v59 = vadd.f32 %v8356_v48, %v929_v55  ;;  %v7773_v52 = vld [vmem:[%s11220_s3 + $0x3e4] ss:$8 sps:$4 sm:$0xff]  }
 0x145   : > { %v7568_v61 = vpop.f32.mrf.mxu0  ;;  %2103 = vmatprep.subr.bf16.mxu1 %v7773_v52  ;;  %2837 = vmatpush1.bf16.msra.mxu0 %v7770_v56  ;;  %v7796_v56 = vld [vmem:[%s11220_s3 + $0x6d4] ss:$8 sps:$4 sm:$0xff]  }
 0x146   : > { %1497 = vst.msk [vmem:[#allocation2 + $0x4] sm:$0xf] %vm1275_vm0, %v7406_v57  ;;  %v7409_v63 = vpack.c.bf16 %v1128_v58, %v1128_v58  ;;  %v1126_v1 = vmax.f32 %v930_v59, 0.0  ;;  %v951_v2 = vadd.f32 %v7568_v61, %v8356_v48  ;;  %v7778_v58 = vld [vmem:[%s11220_s3 + $0x604] ss:$8 sps:$4 sm:$0xff]   ;;  %2104 = vmatpush2.bf16.msra.mxu1 %v7775_v62 }
 0x147   : > { %v942_v4 = vpop.f32.mrf.mxu0  ;;  %2838 = vmatprep.subr.bf16.mxu0 %v7778_v58 }
 0x148   : > { %1500 = vst.msk [vmem:[#allocation2 + $0x1c] sm:$0xf] %vm1275_vm0, %v7409_v63  ;;  %v7407_v7 = vpack.c.bf16 %v1126_v1, %v1126_v1  ;;  %v1131_v9 = vmax.f32 %v951_v2, 0.0  ;;  %v943_v10 = vadd.f32 %v8356_v48, %v942_v4  ;;  %v7776_v4 = vld [vmem:[%s11220_s3 + $0x600] ss:$8 sps:$4 sm:$0xff]  }
 0x149   : > { %v7569_v13 = vpop.f32.mrf.mxu0  ;;  %2839 = vmatpush1.bf16.msra.mxu0 %v7776_v4 }
 0x14a   : > { %1498 = vst.msk [vmem:[#allocation2 + $0xc] sm:$0xf] %vm1275_vm0, %v7407_v7  ;;  %v7412_v23 = vpack.c.bf16 %v1131_v9, %v1131_v9  ;;  %v1129_v24 = vmax.f32 %v943_v10, 0.0  ;;  %v954_v27 = vadd.f32 %v7569_v13, %v8356_v48  ;;  %v7779_v13 = vld [vmem:[%s11220_s3 + $0x3d4] ss:$8 sps:$4 sm:$0xff]  }
 0x14b   : > { %v945_v31 = vpop.f32.mrf.mxu0  ;;  %2105 = vmatprep.subr.bf16.mxu1 %v7779_v13 }
 0x14c   : > { %1503 = vst.msk [vmem:[#allocation2 + $0x34] sm:$0xf] %vm1275_vm0, %v7412_v23  ;;  %v7410_v33 = vpack.c.bf16 %v1129_v24, %v1129_v24  ;;  %v1132_v35 = vmax.f32 %v954_v27, 0.0  ;;  %v946_v36 = vadd.f32 %v8356_v48, %v945_v31  ;;  %v7781_v27 = vld [vmem:[%s11220_s3 + $0x3d0] ss:$8 sps:$4 sm:$0xff]  }
 0x14d   : > { %v7572_v38 = vpop.f32.mrf.mxu0  ;;  %v7784_v31 = vld [vmem:[%s11220_s3 + $0x6f4] ss:$8 sps:$4 sm:$0xff]   ;;  %2106 = vmatpush2.bf16.msra.mxu1 %v7781_v27 }
 0x14e   : > { %1501 = vst.msk [vmem:[#allocation2 + $0x24] sm:$0xf] %vm1275_vm0, %v7410_v33  ;;  %v7413_v40 = vpack.c.bf16 %v1132_v35, %v1132_v35  ;;  %v1130_v41 = vmax.f32 %v946_v36, 0.0  ;;  %v967_v42 = vadd.f32 %v7572_v38, %v8356_v48  ;;  %v7782_v36 = vld [vmem:[%s11220_s3 + $0x6f0] ss:$8 sps:$4 sm:$0xff]   ;;  %2840 = vmatprep.subr.bf16.mxu0 %v7784_v31 }
 0x14f   : > { %v958_v44 = vpop.f32.mrf.mxu0  ;;  %v7785_v38 = vld [vmem:[%s11220_s3 + $0x3c4] ss:$8 sps:$4 sm:$0xff]   ;;  %2841 = vmatpush2.bf16.msra.mxu0 %v7782_v36  ;;  %v7811_v36 = vld [vmem:[%s11220_s3 + $0x380] ss:$8 sps:$4 sm:$0xff]  }
 0x150   : > { %1504 = vst.msk [vmem:[#allocation2 + $0x3c] sm:$0xf] %vm1275_vm0, %v7413_v40  ;;  %v7411_v46 = vpack.c.bf16 %v1130_v41, %v1130_v41  ;;  %v1135_v47 = vmax.f32 %v967_v42, 0.0  ;;  %v959_v49 = vadd.f32 %v8356_v48, %v958_v44  ;;  %v7787_v42 = vld [vmem:[%s11220_s3 + $0x3c0] ss:$8 sps:$4 sm:$0xff]   ;;  %2107 = vmatprep.subr.bf16.mxu1 %v7785_v38 }
 0x151   : > { %v7573_v51 = vpop.f32.mrf.mxu0  ;;  %v7790_v44 = vld [vmem:[%s11220_s3 + $0x6e4] ss:$8 sps:$4 sm:$0xff]   ;;  %2108 = vmatpush2.bf16.msra.mxu1 %v7787_v42 }
 0x152   : > { %1502 = vst.msk [vmem:[#allocation2 + $0x2c] sm:$0xf] %vm1275_vm0, %v7411_v46  ;;  %v7416_v53 = vpack.c.bf16 %v1135_v47, %v1135_v47  ;;  %v1133_v54 = vmax.f32 %v959_v49, 0.0  ;;  %v970_v55 = vadd.f32 %v7573_v51, %v8356_v48  ;;  %v7788_v49 = vld [vmem:[%s11220_s3 + $0x6e0] ss:$8 sps:$4 sm:$0xff]   ;;  %2842 = vmatprep.subr.bf16.mxu0 %v7790_v44 }
 0x153   : > { %v961_v57 = vpop.f32.mrf.mxu0  ;;  %v7791_v51 = vld [vmem:[%s11220_s3 + $0x3b4] ss:$8 sps:$4 sm:$0xff]   ;;  %2843 = vmatpush2.bf16.msra.mxu0 %v7788_v49  ;;  %v7814_v38 = vld [vmem:[%s11220_s3 + $0x6a4] ss:$8 sps:$4 sm:$0xff]  }
 0x154   : > { %1507 = vst.msk [vmem:[#allocation2 + $0x54] sm:$0xf] %vm1275_vm0, %v7416_v53  ;;  %v7414_v59 = vpack.c.bf16 %v1133_v54, %v1133_v54  ;;  %v1136_v60 = vmax.f32 %v970_v55, 0.0  ;;  %v962_v61 = vadd.f32 %v8356_v48, %v961_v57  ;;  %v7793_v54 = vld [vmem:[%s11220_s3 + $0x3b0] ss:$8 sps:$4 sm:$0xff]   ;;  %2109 = vmatprep.subr.bf16.mxu1 %v7791_v51  ;;  %2844 = vmatprep.subr.bf16.mxu0 %v7796_v56 }
 0x155   : > { %v7576_v63 = vpop.f32.mrf.mxu0  ;;  %2110 = vmatpush2.bf16.msra.mxu1 %v7793_v54  ;;  %v879_v56 = vadd.f32 %v8356_v48, %v8414_v17 }
 0x156   : > { %1505 = vst.msk [vmem:[#allocation2 + $0x44] sm:$0xf] %vm1275_vm0, %v7414_v59  ;;  %v7417_v1 = vpack.c.bf16 %v1136_v60, %v1136_v60  ;;  %v1134_v2 = vmax.f32 %v962_v61, 0.0  ;;  %v983_v3 = vadd.f32 %v7576_v63, %v8356_v48  ;;  %v7794_v59 = vld [vmem:[%s11220_s3 + $0x6d0] ss:$8 sps:$4 sm:$0xff]  }
 0x157   : > { %v974_v5 = vpop.f32.mrf.mxu0  ;;  %v7797_v61 = vld [vmem:[%s11220_s3 + $0x3a4] ss:$8 sps:$4 sm:$0xff]   ;;  %2845 = vmatpush2.bf16.msra.mxu0 %v7794_v59 }
 0x158   : > { %1508 = vst.msk [vmem:[#allocation2 + $0x5c] sm:$0xf] %vm1275_vm0, %v7417_v1  ;;  %v7415_v7 = vpack.c.bf16 %v1134_v2, %v1134_v2  ;;  %v1139_v9 = vmax.f32 %v983_v3, 0.0  ;;  %v975_v10 = vadd.f32 %v8356_v48, %v974_v5  ;;  %v7799_v1 = vld [vmem:[%s11220_s3 + $0x3a0] ss:$8 sps:$4 sm:$0xff]   ;;  %2111 = vmatprep.subr.bf16.mxu1 %v7797_v61 }
 0x159   : > { %v7577_v11 = vpop.f32.mrf.mxu0  ;;  %v7802_v3 = vld [vmem:[%s11220_s3 + $0x6c4] ss:$8 sps:$4 sm:$0xff]   ;;  %2112 = vmatpush2.bf16.msra.mxu1 %v7799_v1  ;;  %v8216_v1 = vmov 0  }
 0x15a   : > { %1506 = vst.msk [vmem:[#allocation2 + $0x4c] sm:$0xf] %vm1275_vm0, %v7415_v7  ;;  %v7420_v15 = vpack.c.bf16 %v1139_v9, %v1139_v9  ;;  %v1137_v23 = vmax.f32 %v975_v10, 0.0  ;;  %v986_v24 = vadd.f32 %v7577_v11, %v8356_v48  ;;  %v7800_v7 = vld [vmem:[%s11220_s3 + $0x6c0] ss:$8 sps:$4 sm:$0xff]   ;;  %2846 = vmatprep.subr.bf16.mxu0 %v7802_v3  ;;  %v866_v10 = vadd.f32 %v8356_v48, %v8409_v14 }
 0x15b   : > { %v977_v28 = vpop.f32.mrf.mxu0  ;;  %2847 = vmatpush2.bf16.msra.mxu0 %v7800_v7  ;;  %v7808_v14 = vld [vmem:[%s11220_s3 + $0x6b4] ss:$8 sps:$4 sm:$0xff]   ;;  %7675 = vset.pattern.permute.xlu1 %v8216_v1  ;;  %v882_v7 = vadd.f32 %v8356_v48, %v8418_v19 }
 0x15c   : > { %1511 = vst.msk [vmem:[#allocation2 + $0x74] sm:$0xf] %vm1275_vm0, %v7420_v15  ;;  %v7418_v32 = vpack.c.bf16 %v1137_v23, %v1137_v23  ;;  %v1140_v33 = vmax.f32 %v986_v24, 0.0  ;;  %v978_v35 = vadd.f32 %v8356_v48, %v977_v28  ;;  %v7803_v15 = vld [vmem:[%s11220_s3 + $0x394] ss:$8 sps:$4 sm:$0xff]   ;;  %2848 = vmatprep.subr.bf16.mxu0 %v7808_v14  ;;  %7676 = vset.pattern.permute.xlu0 %v8216_v1 }
 0x15d   : > { %v7580_v37 = vpop.f32.mrf.mxu0  ;;  %v7805_v23 = vld [vmem:[%s11220_s3 + $0x390] ss:$8 sps:$4 sm:$0xff]   ;;  %2113 = vmatprep.subr.bf16.mxu1 %v7803_v15  ;;  %v887_v15 = vadd.f32 %v8411_v16, %v8356_v48  ;;  %v1114_v14 = vmax.f32 %v882_v7, 0.0 }
 0x15e   : > { %1509 = vst.msk [vmem:[#allocation2 + $0x64] sm:$0xf] %vm1275_vm0, %v7418_v32  ;;  %v7421_v39 = vpack.c.bf16 %v1140_v33, %v1140_v33  ;;  %v1138_v40 = vmax.f32 %v978_v35, 0.0  ;;  %v999_v41 = vadd.f32 %v7580_v37, %v8356_v48  ;;  %v7806_v28 = vld [vmem:[%s11220_s3 + $0x6b0] ss:$8 sps:$4 sm:$0xff]   ;;  %2114 = vmatpush2.bf16.msra.mxu1 %v7805_v23  ;;  %v1110_v33 = vmax.f32 %v866_v10, 0.0 }
 0x15f   : > { %v990_v43 = vpop.f32.mrf.mxu0  ;;  %v7809_v32 = vld [vmem:[%s11220_s3 + $0x384] ss:$8 sps:$4 sm:$0xff]   ;;  %2849 = vmatpush2.bf16.msra.mxu0 %v7806_v28 }
 0x160   : > { %1512 = vst.msk [vmem:[#allocation2 + $0x7c] sm:$0xf] %vm1275_vm0, %v7421_v39  ;;  %v7419_v45 = vpack.c.bf16 %v1138_v40, %v1138_v40  ;;  %v1143_v46 = vmax.f32 %v999_v41, 0.0  ;;  %v991_v47 = vadd.f32 %v8356_v48, %v990_v43  ;;  %2115 = vmatprep.subr.bf16.mxu1 %v7809_v32  ;;  %v871_v39 = vadd.f32 %v8403_v8, %v8356_v48  ;;  %v7812_v41 = vld [vmem:[%s11220_s3 + $0x6a0] ss:$8 sps:$4 sm:$0xff]  }
 0x161   : > { %v7581_v50 = vpop.f32.mrf.mxu0  ;;  %2850 = vmatprep.subr.bf16.mxu0 %v7814_v38  ;;  %v7391_v43 = vpack.c.bf16 %v1110_v33, %v1110_v33  ;;  %v7817_v8 = vld [vmem:[%s11220_s3 + $0x694] ss:$8 sps:$4 sm:$0xff]   ;;  %v1115_v32 = vmax.f32 %v887_v15, 0.0  ;;  %v890_v33 = vadd.f32 %v8416_v18, %v8356_v48  ;;  %v914_v15 = vadd.f32 %v8356_v48, %v8455_v34 }
 0x162   : > { %1510 = vst.msk [vmem:[#allocation2 + $0x6c] sm:$0xf] %vm1275_vm0, %v7419_v45  ;;  %v7424_v52 = vpack.c.bf16 %v1143_v46, %v1143_v46  ;;  %v1141_v53 = vmax.f32 %v991_v47, 0.0  ;;  %2116 = vmatpush2.bf16.msra.mxu1 %v7811_v36  ;;  %v874_v45 = vadd.f32 %v8407_v12, %v8356_v48  ;;  %v7820_v47 = vld [vmem:[%s11220_s3 + $0x74] ss:$8 sps:$4 sm:$0xff]   ;;  %v1111_v49 = vmax.f32 %v871_v39, 0.0 }
 0x163   : > { %v993_v55 = vpop.f32.mrf.mxu0  ;;  %2851 = vmatpush2.bf16.msra.mxu0 %v7812_v41  ;;  %v7815_v12 = vld [vmem:[%s11220_s3 + $0x690] ss:$8 sps:$4 sm:$0xff]   ;;  %2438 = vmatprep.subr.bf16.mxu1 %v7820_v47  ;;  %v1116_v39 = vmax.f32 %v890_v33, 0.0  ;;  %v7396_v41 = vpack.c.bf16 %v1115_v32, %v1115_v32 }
 0x164   : > { %1515 = vst.msk [vmem:[#allocation2 + $0x94] sm:$0xf] %vm1275_vm0, %v7424_v52  ;;  %v7422_v57 = vpack.c.bf16 %v1141_v53, %v1141_v53  ;;  %v994_v58 = vadd.f32 %v8356_v48, %v993_v55  ;;  %2852 = vmatprep.subr.bf16.mxu0 %v7817_v8  ;;  %v1112_v55 = vmax.f32 %v874_v45, 0.0  ;;  %v7392_v59 = vpack.c.bf16 %v1111_v49, %v1111_v49 }
 0x165   : > { %v7584_v60 = vpop.f32.mrf.mxu0  ;;  %v7397_v45 = vpack.c.bf16 %v1116_v39, %v1116_v39  ;;  %v898_v8 = vadd.f32 %v8356_v48, %v8432_v25 }
 0x166   : > { %1513 = vst.msk [vmem:[#allocation2 + $0x84] sm:$0xf] %vm1275_vm0, %v7422_v57  ;;  %v1142_v62 = vmax.f32 %v994_v58, 0.0  ;;  %v1015_v63 = vadd.f32 %v7584_v60, %v8356_v48  ;;  %v7823_v58 = vld [vmem:[%s11220_s3 + $0x684] ss:$8 sps:$4 sm:$0xff]   ;;  %v7393_v3 = vpack.c.bf16 %v1112_v55, %v1112_v55 }
 0x167   : > { %v8624_v2 = vpop.f32.mrf.mxu0  ;;  %2853 = vmatpush2.bf16.msra.mxu0 %v7815_v12 }
 0x168   : > { %v7423_v4 = vpack.c.bf16 %v1142_v62, %v1142_v62  ;;  %v1147_v5 = vmax.f32 %v1015_v63, 0.0  ;;  %v7821_v63 = vld [vmem:[%s11220_s3 + $0x680] ss:$8 sps:$4 sm:$0xff]   ;;  %2854 = vmatprep.subr.bf16.mxu0 %v7823_v58 }
 0x169   : > { %v7585_v9 = vpop.f32.mrf.mxu0 }
 0x16a   : > { %1514 = vst.msk [vmem:[#allocation2 + $0x8c] sm:$0xf] %vm1275_vm0, %v7423_v4  ;;  %v1018_v11 = vadd.f32 %v7585_v9, %v8356_v48  ;;  %v7428_v13 = vpack.c.bf16 %v1147_v5, %v1147_v5  ;;  %v1113_v4 = vmax.f32 %v879_v56, 0.0  ;;  %v7838_v5 = vld [vmem:[%s11220_s3 + $0x174] ss:$8 sps:$4 sm:$0xff]   ;;  %vm2970_vm0 = vcmask 523264  }
 0x16b   : > { %v8642_v24 = vpop.f32.mrf.mxu0  ;;  %2855 = vmatpush2.bf16.msra.mxu0 %v7821_v63 }
 0x16c   : > { %v1148_v27 = vmax.f32 %v1018_v11, 0.0  ;;  %1571 = vrot.lane.b32.xlu1 %v7428_v13, %s8215_s13  ;;  %3501 = vmatprep.subr.bf16.mxu0 %v7838_v5  ;;  %v7394_v23 = vpack.c.bf16 %v1113_v4, %v1113_v4 }
 0x16d   : > { %v7588_v31 = vpop.f32.mrf.mxu0 }
 0x16e   : > { %v7429_v35 = vpack.c.bf16 %v1148_v27, %v1148_v27  ;;  %v1031_v50 = vadd.f32 %v7588_v31, %v8356_v48 }
 0x16f   : > { %v1022_v37 = vpop.f32.mrf.mxu0 }
 0x170   : > { %v1023_v40 = vadd.f32 %v8356_v48, %v1022_v37  ;;  %1573 = vrot.lane.b32.xlu1 %v7429_v35, %s8215_s13  ;;  %v1151_v60 = vmax.f32 %v1031_v50, 0.0  ;;  %v7395_v35 = vpack.c.bf16 %v1114_v14, %v1114_v14 }
 0x171   : > { %v7589_v42 = vpop.f32.mrf.mxu0 }
 0x172   : > { %v1149_v44 = vmax.f32 %v1023_v40, 0.0  ;;  %v1034_v61 = vadd.f32 %v7589_v42, %v8356_v48  ;;  %v7432_v9 = vpack.c.bf16 %v1151_v60, %v1151_v60  ;;  %v895_v40 = vadd.f32 %v8356_v48, %v8422_v21 }
 0x173   : > { %v1025_v46 = vpop.f32.mrf.mxu0 }
 0x174   : > { %v7430_v51 = vpack.c.bf16 %v1149_v44, %v1149_v44  ;;  %v1026_v52 = vadd.f32 %v8356_v48, %v1025_v46  ;;  %1356 = vrot.lane.b32.xlu1 %v7391_v43, %s8215_s13  ;;  %v1152_v10 = vmax.f32 %v1034_v61, 0.0  ;;  %v1117_v46 = vmax.f32 %v895_v40, 0.0  ;;  %v8173_v40 = vld [vmem:[%s11219_s2] ss:$0 sm:$0xff] }
 0x175   : > { %v7592_v53 = vpop.f32.mrf.mxu0 }
 0x176   : > { %v1150_v54 = vmax.f32 %v1026_v52, 0.0  ;;  %1575 = vrot.lane.b32.xlu0 %v7430_v51, %s8215_s13  ;;  %v7433_v27 = vpack.c.bf16 %v1152_v10, %v1152_v10  ;;  %v1047_v36 = vadd.f32 %v7592_v53, %v8356_v48  ;;  %v903_v52 = vadd.f32 %v8420_v20, %v8356_v48 }
 0x177   : > { %v1038_v57 = vpop.f32.mrf.mxu0  ;;  %v7398_v12 = vpack.c.bf16 %v1117_v46, %v1117_v46  ;;  %v1118_v53 = vmax.f32 %v898_v8, 0.0 }
 0x178   : > { %v7431_v62 = vpack.c.bf16 %v1150_v54, %v1150_v54  ;;  %v1039_v11 = vadd.f32 %v8356_v48, %v1038_v57  ;;  %v1155_v42 = vmax.f32 %v1047_v36, 0.0  ;;  %v1119_v58 = vmax.f32 %v903_v52, 0.0 }
 0x179   : > { %v7593_v17 = vpop.f32.mrf.mxu0  ;;  %v7399_v20 = vpack.c.bf16 %v1118_v53, %v1118_v53  ;;  %v850_v36 = vadd.f32 %v8356_v48, %v8400_v6  ;;  %v1010_v6 = vadd.f32 %v8173_v40, %v8642_v24 }
 0x17a   : > { %1577 = vrot.lane.b32.xlu1 %v7431_v62, %s8215_s13  ;;  %1358 = vrot.lane.b32.xlu0 %v7392_v59, %s8215_s13  ;;  %v1153_v28 = vmax.f32 %v1039_v11, 0.0  ;;  %v1050_v43 = vadd.f32 %v7593_v17, %v8356_v48  ;;  %v7436_v47 = vpack.c.bf16 %v1155_v42, %v1155_v42  ;;  %v906_v59 = vadd.f32 %v8424_v22, %v8356_v48 }
 0x17b   : > { %v1041_v13 = vpop.f32.mrf.mxu0  ;;  %v7400_v4 = vpack.c.bf16 %v1119_v58, %v1119_v58  ;;  %v1106_v39 = vmax.f32 %v850_v36, 0.0  ;;  %v1146_v46 = vmax.f32 %v1010_v6, 0.0  ;;  %v7832_v36 = vld [vmem:[%s11220_s3 + $0x44] ss:$8 sps:$4 sm:$0xff]  }
 0x17c   : > { %v1042_v31 = vadd.f32 %v8356_v48, %v1041_v13  ;;  %v7434_v37 = vpack.c.bf16 %v1153_v28, %v1153_v28  ;;  %v1156_v49 = vmax.f32 %v1050_v43, 0.0  ;;  %v1120_v17 = vmax.f32 %v906_v59, 0.0 }
 0x17d   : > { %v7596_v19 = vpop.f32.mrf.mxu0  ;;  %v847_v28 = vadd.f32 %v8356_v48, %v8396_v0  ;;  %v7427_v24 = vpack.c.bf16 %v1146_v46, %v1146_v46  ;;  %v7833_v46 = vld [vmem:[%s11220_s3 + $0x30] ss:$8 sps:$4 sm:$0xff]  }
 0x17e   : > { %1360 = vrot.lane.b32.xlu1 %v7393_v3, %s8215_s13  ;;  %1579 = vrot.lane.b32.xlu0 %v7432_v9, %s8215_s13  ;;  %v1154_v16 = vmax.f32 %v1042_v31, 0.0  ;;  %v7437_v54 = vpack.c.bf16 %v1156_v49, %v1156_v49  ;;  %v1063_v60 = vadd.f32 %v7596_v19, %v8356_v48  ;;  %v911_v3 = vadd.f32 %v8356_v48, %v8442_v29 }
 0x17f   : > { %v1054_v38 = vpop.f32.mrf.mxu0  ;;  %v7401_v11 = vpack.c.bf16 %v1120_v17, %v1120_v17  ;;  %v1122_v19 = vmax.f32 %v914_v15, 0.0  ;;  %v1105_v34 = vmax.f32 %v847_v28, 0.0  ;;  %v7824_v15 = vld [vmem:[%s11220_s3 + $0x60] ss:$8 sps:$4 sm:$0xff]  }
 0x180   : > { %v7435_v44 = vpack.c.bf16 %v1154_v16, %v1154_v16  ;;  %v1055_v21 = vadd.f32 %v8356_v48, %v1054_v38  ;;  %v1159_v5 = vmax.f32 %v1063_v60, 0.0  ;;  %v1121_v13 = vmax.f32 %v911_v3, 0.0 }
 0x181   : > { %v7597_v18 = vpop.f32.mrf.mxu0  ;;  %v1007_v16 = vadd.f32 %v8356_v48, %v8624_v2  ;;  %v7386_v42 = vpack.c.bf16 %v1105_v34, %v1105_v34  ;;  %v7836_v34 = vld [vmem:[%s11220_s3 + $0x170] ss:$8 sps:$4 sm:$0xff]  }
 0x182   : > { %1581 = vrot.lane.b32.xlu1 %v7433_v27, %s8215_s13  ;;  %1362 = vrot.lane.b32.xlu0 %v7394_v23, %s8215_s13  ;;  %v1157_v55 = vmax.f32 %v1055_v21, 0.0  ;;  %v1066_v22 = vadd.f32 %v7597_v18, %v8356_v48  ;;  %v7440_v23 = vpack.c.bf16 %v1159_v5, %v1159_v5  ;;  %v7402_v31 = vpack.c.bf16 %v1121_v13, %v1121_v13 }
 0x183   : > { %v1057_v50 = vpop.f32.mrf.mxu0  ;;  %v1145_v43 = vmax.f32 %v1007_v16, 0.0  ;;  %v922_v18 = vadd.f32 %v8173_v40, %v8444_v30 }
 0x184   : > { %v1058_v25 = vadd.f32 %v8356_v48, %v1057_v50  ;;  %v7438_v61 = vpack.c.bf16 %v1157_v55, %v1157_v55  ;;  %v1160_v29 = vmax.f32 %v1066_v22, 0.0  ;;  %v7818_v22 = vld [vmem:[%s11220_s3 + $0x70] ss:$8 sps:$4 sm:$0xff]  }
 0x185   : > { %v8727_v56 = vpop.f32.mrf.mxu0 }
 0x186   : > { %1364 = vrot.lane.b32.xlu1 %v7395_v35, %s8215_s13  ;;  %1583 = vrot.lane.b32.xlu0 %v7434_v37, %s8215_s13  ;;  %v1158_v62 = vmax.f32 %v1058_v25, 0.0  ;;  %v7441_v32 = vpack.c.bf16 %v1160_v29, %v1160_v29  ;;  %v7403_v37 = vpack.c.bf16 %v1122_v19, %v1122_v19  ;;  %v1079_v8 = vadd.f32 %v8173_v40, %v8727_v56  ;;  %v7829_v29 = vld [vmem:[%s11220_s3 + $0x54] ss:$8 sps:$4 sm:$0xff]  }
 0x187   : > { %v1070_v63 = vpop.f32.mrf.mxu0 }
 0x188   : > { %v7439_v7 = vpack.c.bf16 %v1158_v62, %v1158_v62  ;;  %v1071_v14 = vadd.f32 %v8356_v48, %v1070_v63  ;;  %v1163_v49 = vmax.f32 %v1079_v8, 0.0  ;;  %v7841_v8 = vld [vmem:[%s11220_s3 + $0x24] ss:$8 sps:$4 sm:$0xff]  }
 0x189   : > { %v7601_v10 = vpop.f32.mrf.mxu0 }
 0x18a   : > { %1585 = vrot.lane.b32.xlu1 %v7435_v44, %s8215_s13  ;;  %1366 = vrot.lane.b32.xlu0 %v7396_v41, %s8215_s13  ;;  %v1161_v33 = vmax.f32 %v1071_v14, 0.0  ;;  %v919_v41 = vadd.f32 %v8173_v40, %v8434_v26  ;;  %v1082_v21 = vadd.f32 %v8173_v40, %v7601_v10  ;;  %v7830_v40 = vld [vmem:[%s11220_s3 + $0x40] ss:$8 sps:$4 sm:$0xff]  }
 0x18b   : > { %v1073_v27 = vpop.f32.mrf.mxu0 }
 0x18c   : > { %v1074_v35 = vadd.f32 %v8356_v48, %v1073_v27  ;;  %v7442_v38 = vpack.c.bf16 %v1161_v33, %v1161_v33  ;;  %v7387_v48 = vpack.c.bf16 %v1106_v39, %v1106_v39  ;;  %v1123_v2 = vmax.f32 %v919_v41, 0.0  ;;  %v7835_v41 = vld [vmem:[%s11220_s3 + $0x34] ss:$8 sps:$4 sm:$0xff]  }
 0x18d   : > { %v1164_v30 = vmax.f32 %v1082_v21, 0.0  ;;  %v7848_v21 = vld [vmem:[%s11220_s3 + $0x150] ss:$8 sps:$4 sm:$0xff]  }
 0x18e   : > { %v1351_v51 = vpop.permute.xlu0 %1350  ;;  %1368 = vrot.lane.b32.xlu1 %v7397_v45, %s8215_s13  ;;  %1587 = vrot.lane.b32.xlu0 %v7436_v47, %s8215_s13  ;;  %v1162_v0 = vmax.f32 %v1074_v35, 0.0  ;;  %v7426_v45 = vpack.c.bf16 %v1145_v43, %v1145_v43  ;;  %v7404_v26 = vpack.c.bf16 %v1123_v2, %v1123_v2  ;;  %v1124_v47 = vmax.f32 %v922_v18, 0.0  ;;  %v7827_v35 = vld [vmem:[%s11220_s3 + $0x50] ss:$8 sps:$4 sm:$0xff]  }
 0x18f   : > { %1409 = vst.msk [vmem:[#allocation2 + $0x10] sm:$0xf] %vm1406_vm1, %v1351_v51  ;;  %v7444_v51 = vpack.c.bf16 %v1163_v49, %v1163_v49  ;;  %v7445_v52 = vpack.c.bf16 %v1164_v30, %v1164_v30  ;;  %v7839_v30 = vld [vmem:[%s11220_s3 + $0x20] ss:$8 sps:$4 sm:$0xff]  }
 0x190   : > { %v7443_v44 = vpack.c.bf16 %v1162_v0, %v1162_v0  ;;  %v7405_v50 = vpack.c.bf16 %v1124_v47, %v1124_v47 }
 0x192   : > { %v1353_v57 = vpop.permute.xlu0 %1352  ;;  %1589 = vrot.lane.b32.xlu1 %v7437_v54, %s8215_s13  ;;  %1370 = vrot.lane.b32.xlu0 %v7398_v12, %s8215_s13  ;;  %v7905_v54 = vld [vmem:[%s11220_s3 + $0x470] ss:$8 sps:$4 sm:$0xff]  }
 0x193   : > { %1410 = vst.msk [vmem:[#allocation2 + $0x18] sm:$0xf] %vm1406_vm1, %v1353_v57  ;;  %v7887_v57 = vld [vmem:[%s11220_s3 + $0xa0] ss:$8 sps:$4 sm:$0xff]  }
 0x196   : > { %1372 = vrot.lane.b32.xlu1 %v7399_v20, %s8215_s13  ;;  %1591 = vrot.lane.b32.xlu0 %v7438_v61, %s8215_s13 }
 0x198   : > { %v1355_v9 = vpop.permute.xlu0 %1354 }
 0x199   : > { %1411 = vst.msk [vmem:[#allocation2 + $0x20] sm:$0xf] %vm1406_vm1, %v1355_v9  ;;  %v7826_v9 = vld [vmem:[%s11220_s3 + $0x64] ss:$8 sps:$4 sm:$0xff]  }
 0x19a   : > { %1593 = vrot.lane.b32.xlu1 %v7439_v7, %s8215_s13  ;;  %1374 = vrot.lane.b32.xlu0 %v7400_v4, %s8215_s13 }
 0x19e   : > { %1376 = vrot.lane.b32.xlu1 %v7401_v11, %s8215_s13  ;;  %1595 = vrot.lane.b32.xlu0 %v7440_v23, %s8215_s13 }
 0x1a2   : > { %1597 = vrot.lane.b32.xlu1 %v7441_v32, %s8215_s13  ;;  %1378 = vrot.lane.b32.xlu0 %v7402_v31, %s8215_s13 }
 0x1a6   : > { %1380 = vrot.lane.b32.xlu1 %v7403_v37, %s8215_s13  ;;  %1599 = vrot.lane.b32.xlu0 %v7442_v38, %s8215_s13  ;;  %v7844_v37 = vld [vmem:[%s11220_s3 + $0x164] ss:$8 sps:$4 sm:$0xff]  }
 0x1aa   : > { %1601 = vrot.lane.b32.xlu1 %v7443_v44, %s8215_s13  ;;  %1346 = vrot.lane.b32.xlu0 %v7386_v42, %s8215_s13  ;;  %v7842_v42 = vld [vmem:[%s11220_s3 + $0x160] ss:$8 sps:$4 sm:$0xff]  }
 0x1ae   : > { %1348 = vrot.lane.b32.xlu1 %v7387_v48, %s8215_s13  ;;  %1567 = vrot.lane.b32.xlu0 %v7426_v45, %s8215_s13 }
 0x1b2   : > { %1569 = vrot.lane.b32.xlu1 %v7427_v24, %s8215_s13  ;;  %1382 = vrot.lane.b32.xlu0 %v7404_v26, %s8215_s13  ;;  %v7850_v26 = vld [vmem:[%s11220_s3 + $0x154] ss:$8 sps:$4 sm:$0xff]  }
 0x1b6   : > { %1384 = vrot.lane.b32.xlu1 %v7405_v50, %s8215_s13  ;;  %1603 = vrot.lane.b32.xlu0 %v7444_v51, %s8215_s13  ;;  %v7856_v51 = vld [vmem:[%s11220_s3 + $0x144] ss:$8 sps:$4 sm:$0xff]  }
 0x1ba   : > { %1605 = vrot.lane.b32.xlu1 %v7445_v52, %s8215_s13  ;;  %v7847_v52 = vld [vmem:[%s11220_s3 + $0x14] ss:$8 sps:$4 sm:$0xff]  }
 0x1de   : > { %v1572_v12 = vpop.permute.xlu1 %1571 }
 0x1df   : > { %1629 = vst.msk [vmem:[#allocation2 + $0x14] sm:$0xf] %vm1406_vm1, %v1572_v12 }
 0x1e2   : > { %v1574_v53 = vpop.permute.xlu1 %1573 }
 0x1e3   : > { %1630 = vst.msk [vmem:[#allocation2 + $0x1c] sm:$0xf] %vm1406_vm1, %v1574_v53 }
 0x1e6   : > { %v1657_v55 = vld [vmem:[#allocation2 + $0x10] sm:$0x11]  ;;  %v1357_v25 = vpop.permute.xlu1 %1356 }
 0x1e7   : > { %v1658_v56 = vsel %vm8776_vm12, 0, %v1657_v55  ;;  %1412 = vst.msk [vmem:[#allocation2 + $0x28] sm:$0xf] %vm1406_vm1, %v1357_v25 }
 0x1e8   : > { %1659 = vst [vmem:[#allocation2 + $0x10] sm:$0x11] %v1658_v56  ;;  %v1576_v58 = vpop.permute.xlu0 %1575 }
 0x1e9   : > { %1631 = vst.msk [vmem:[#allocation2 + $0x24] sm:$0xf] %vm1406_vm1, %v1576_v58 }
 0x1ea   : > { %v1694_v59 = vld [vmem:[#allocation2 + $0x18] sm:$0xff] }
 0x1eb   : > { %v1695_v20 = vsel %vm8784_vm15, 0, %v1694_v59 }
 0x1ec   : > { %1696 = vst [vmem:[#allocation2 + $0x18] sm:$0xff] %v1695_v20  ;;  %v1578_v60 = vpop.permute.xlu1 %1577  ;;  %v1359_v61 = vpop.permute.xlu0 %1358  ;;  %5390 = vrot.lane.b32.xlu0 %v1695_v20, %s8215_s13 }
 0x1ed   : > { %1632 = vst.msk [vmem:[#allocation2 + $0x2c] sm:$0xf] %vm1406_vm1, %v1578_v60  ;;  %1413 = vst.msk [vmem:[#allocation2 + $0x30] sm:$0xf] %vm1406_vm1, %v1359_v61  ;;  %v7853_v60 = vld [vmem:[%s11220_s3 + $0x4] ss:$8 sps:$4 sm:$0xff]  }
 0x1ee   : > { %v7854_v61 = vld [vmem:[%s11220_s3 + $0x140] ss:$8 sps:$4 sm:$0xff]  }
 0x1ef   : > { %v1732_v62 = vld [vmem:[#allocation2 + $0x10] sm:$0xff] }
 0x1f0   : > { %v1660_v63 = vld [vmem:[#allocation2 + $0x20] sm:$0x11]  ;;  %v1361_v17 = vpop.permute.xlu1 %1360  ;;  %v1580_v3 = vpop.permute.xlu0 %1579  ;;  %5388 = vrot.lane.b32.xlu1 %v1732_v62, %s8215_s13  ;;  %v8795_v4 = vcombine.high %v1732_v62, %v1695_v20  ;;  %v8797_v5 = vcombine.low %v1732_v62, %v1695_v20  ;;  %5466 = vrot.lane.b32.xlu0 %v1695_v20, %s8215_s13  ;;  %v7845_v20 = vld [vmem:[%s11220_s3 + $0x10] ss:$8 sps:$4 sm:$0xff]  }
 0x1f1   : > { %v1661_v7 = vsel %vm8776_vm12, 0, %v1660_v63  ;;  %1414 = vst.msk [vmem:[#allocation2 + $0x38] sm:$0xf] %vm1406_vm1, %v1361_v17  ;;  %1633 = vst.msk [vmem:[#allocation2 + $0x34] sm:$0xf] %vm1406_vm1, %v1580_v3 }
 0x1f2   : > { %1662 = vst [vmem:[#allocation2 + $0x20] sm:$0x11] %v1661_v7  ;;  %2117 = vmatprep.mubr.bf16.mxu1 %v8795_v4  ;;  %v7862_v3 = vld [vmem:[%s11220_s3 + $0x134] ss:$8 sps:$4 sm:$0xff]   ;;  %v7851_v7 = vld [vmem:[%s11220_s3] ss:$8 sps:$4 sm:$0xff]  }
 0x1f3   : > { %2118 = vmatmul.mubr.bf16.vlgmr.msra.gmra.mxu1 %v8797_v5 }
 0x1f4   : > { %v1697_v10 = vld [vmem:[#allocation2 + $0x28] sm:$0xff]  ;;  %v1582_v11 = vpop.permute.xlu1 %1581  ;;  %v1363_v13 = vpop.permute.xlu0 %1362  ;;  %5464 = vrot.lane.b32.xlu1 %v1732_v62, %s8215_s13  ;;  %2439 = vmatpush1.bf16.msra.mxu1 %v7818_v22 }
 0x1f5   : > { %v8818_v23 = vsel %vm8784_vm15, 0, %v1697_v10  ;;  %1634 = vst.msk [vmem:[#allocation2 + $0x3c] sm:$0xf] %vm1406_vm1, %v1582_v11  ;;  %1415 = vst.msk [vmem:[#allocation2 + $0x40] sm:$0xf] %vm1406_vm1, %v1363_v13  ;;  %2440 = vmatprep.subr.bf16.mxu1 %v7826_v9  ;;  %7671 = vrot.lane.b32.xlu0 %v8216_v1, %s8215_s13 }
 0x1f6   : > { %1699 = vst [vmem:[#allocation2 + $0x28] sm:$0xff] %v8818_v23  ;;  %v7859_v9 = vld [vmem:[%s11220_s3 + $0xf4] ss:$8 sps:$4 sm:$0xff]   ;;  %v7860_v10 = vld [vmem:[%s11220_s3 + $0x130] ss:$8 sps:$4 sm:$0xff]  }
 0x1f8   : > { %v1663_v14 = vld [vmem:[#allocation2 + $0x30] sm:$0x11]  ;;  %v1365_v27 = vpop.permute.xlu1 %1364  ;;  %v1584_v28 = vpop.permute.xlu0 %1583  ;;  %2441 = vmatpush1.bf16.msra.mxu1 %v7824_v15 }
 0x1f9   : > { %v1664_v31 = vsel %vm8776_vm12, 0, %v1663_v14  ;;  %1416 = vst.msk [vmem:[#allocation2 + $0x48] sm:$0xf] %vm1406_vm1, %v1365_v27  ;;  %1635 = vst.msk [vmem:[#allocation2 + $0x44] sm:$0xf] %vm1406_vm1, %v1584_v28  ;;  %v8832_v19 = vld [vmem:[#allocation2 + $0x20] sm:$0xff]  ;;  %2442 = vmatprep.subr.bf16.mxu1 %v7829_v29 }
 0x1fa   : > { %1665 = vst [vmem:[#allocation2 + $0x30] sm:$0x11] %v1664_v31  ;;  %v8836_v32 = vcombine.high %v8832_v19, %v8818_v23  ;;  %v8840_v33 = vcombine.low %v8832_v19, %v8818_v23  ;;  %v7857_v31 = vld [vmem:[%s11220_s3 + $0xf0] ss:$8 sps:$4 sm:$0xff]  }
 0x1fc   : > { %v1700_v16 = vld [vmem:[#allocation2 + $0x38] sm:$0xff]  ;;  %v1586_v38 = vpop.permute.xlu1 %1585  ;;  %v1367_v0 = vpop.permute.xlu0 %1366  ;;  %2127 = vmatprep.mubr.bf16.mxu1 %v8836_v32  ;;  %2856 = vmatprep.mubr.bf16.mxu0 %v8836_v32 }
 0x1fd   : > { %v1701_v39 = vsel %vm8784_vm15, 0, %v1700_v16  ;;  %1636 = vst.msk [vmem:[#allocation2 + $0x4c] sm:$0xf] %vm1406_vm1, %v1586_v38  ;;  %1417 = vst.msk [vmem:[#allocation2 + $0x50] sm:$0xf] %vm1406_vm1, %v1367_v0  ;;  %2128 = vmatmul.mubr.bf16.gmra.mxu1 %v8840_v33  ;;  %2857 = vmatmul.mubr.bf16.vlgmr.msra.gmra.mxu0 %v8840_v33 }
 0x1fe   : > { %1702 = vst [vmem:[#allocation2 + $0x38] sm:$0xff] %v1701_v39  ;;  %2443 = vmatpush1.bf16.msra.mxu1 %v7827_v35  ;;  %3502 = vmatpush1.bf16.msra.mxu0 %v7836_v34  ;;  %v7868_v35 = vld [vmem:[%s11220_s3 + $0x124] ss:$8 sps:$4 sm:$0xff]   ;;  %v7866_v16 = vld [vmem:[%s11220_s3 + $0x120] ss:$8 sps:$4 sm:$0xff]  }
 0x1ff   : > { %2444 = vmatprep.subr.bf16.mxu1 %v7832_v36  ;;  %3503 = vmatprep.subr.bf16.mxu0 %v7844_v37  ;;  %v7874_v0 = vld [vmem:[%s11220_s3 + $0x114] ss:$8 sps:$4 sm:$0xff]  }
 0x200   : > { %v1666_v43 = vld [vmem:[#allocation2 + $0x40] sm:$0x11]  ;;  %v1369_v6 = vpop.permute.xlu1 %1368  ;;  %v1588_v44 = vpop.permute.xlu0 %1587  ;;  %5398 = vrot.lane.b32.xlu0 %v1701_v39, %s8215_s13 }
 0x201   : > { %v1667_v48 = vsel %vm8776_vm12, 0, %v1666_v43  ;;  %1418 = vst.msk [vmem:[#allocation2 + $0x58] sm:$0xf] %vm1406_vm1, %v1369_v6  ;;  %1637 = vst.msk [vmem:[#allocation2 + $0x54] sm:$0xf] %vm1406_vm1, %v1588_v44  ;;  %v1736_v2 = vld [vmem:[#allocation2 + $0x30] sm:$0xff] }
 0x202   : > { %1668 = vst [vmem:[#allocation2 + $0x40] sm:$0x11] %v1667_v48  ;;  %5396 = vrot.lane.b32.xlu1 %v1736_v2, %s8215_s13  ;;  %2445 = vmatpush1.bf16.msra.mxu1 %v7830_v40  ;;  %v8877_v18 = vcombine.high %v1736_v2, %v1701_v39  ;;  %v8879_v45 = vcombine.low %v1736_v2, %v1701_v39  ;;  %v7871_v40 = vld [vmem:[%s11220_s3 + $0xd4] ss:$8 sps:$4 sm:$0xff]  }
 0x203   : > { %2446 = vmatprep.subr.bf16.mxu1 %v7835_v41  ;;  %3504 = vmatpush1.bf16.msra.mxu0 %v7842_v42 }
 0x204   : > { %11261 = vst [vmem:[#allocation4_spill] sm:$0xff] %v8879_v45  ;;  %v1703_v47 = vld [vmem:[#allocation2 + $0x48] sm:$0xff]  ;;  %v1590_v24 = vpop.permute.xlu1 %1589  ;;  %v1371_v49 = vpop.permute.xlu0 %1370  ;;  %2137 = vmatprep.mubr.bf16.mxu1 %v8877_v18  ;;  %2866 = vmatprep.mubr.bf16.mxu0 %v8877_v18 }
 0x205   : > { %v8897_v50 = vsel %vm8784_vm15, 0, %v1703_v47  ;;  %1638 = vst.msk [vmem:[#allocation2 + $0x5c] sm:$0xf] %vm1406_vm1, %v1590_v24  ;;  %1419 = vst.msk [vmem:[#allocation2 + $0x60] sm:$0xf] %vm1406_vm1, %v1371_v49  ;;  %2138 = vmatmul.mubr.bf16.gmra.mxu1 %v8879_v45  ;;  %2867 = vmatmul.mubr.bf16.gmra.mxu0 %v8879_v45 }
 0x206   : > { %1705 = vst [vmem:[#allocation2 + $0x48] sm:$0xff] %v8897_v50  ;;  %5472 = vrot.lane.b32.xlu1 %v1736_v2, %s8215_s13  ;;  %2447 = vmatpush1.bf16.msra.mxu1 %v7833_v46  ;;  %v7869_v2 = vld [vmem:[%s11220_s3 + $0xd0] ss:$8 sps:$4 sm:$0xff]   ;;  %v7880_v49 = vld [vmem:[%s11220_s3 + $0x104] ss:$8 sps:$4 sm:$0xff]  }
 0x207   : > { %2448 = vmatprep.subr.bf16.mxu1 %v7841_v8  ;;  %3505 = vmatprep.subr.bf16.mxu0 %v7850_v26  ;;  %v7872_v46 = vld [vmem:[%s11220_s3 + $0x110] ss:$8 sps:$4 sm:$0xff]   ;;  %v7877_v8 = vld [vmem:[%s11220_s3 + $0xc4] ss:$8 sps:$4 sm:$0xff]  }
 0x208   : > { %v1669_v12 = vld [vmem:[#allocation2 + $0x50] sm:$0x11]  ;;  %v1373_v53 = vpop.permute.xlu1 %1372  ;;  %v1592_v55 = vpop.permute.xlu0 %1591  ;;  %3506 = vmatpush1.bf16.msra.mxu0 %v7848_v21  ;;  %5474 = vrot.lane.b32.xlu0 %v1701_v39, %s8215_s13  ;;  %v7863_v39 = vld [vmem:[%s11220_s3 + $0xe0] ss:$8 sps:$4 sm:$0xff]  }
 0x209   : > { %v1670_v25 = vsel %vm8776_vm12, 0, %v1669_v12  ;;  %1420 = vst.msk [vmem:[#allocation2 + $0x68] sm:$0xf] %vm1406_vm1, %v1373_v53  ;;  %1639 = vst.msk [vmem:[#allocation2 + $0x64] sm:$0xf] %vm1406_vm1, %v1592_v55  ;;  %v8919_v56 = vld [vmem:[#allocation2 + $0x40] sm:$0xff]  ;;  %3507 = vmatprep.subr.bf16.mxu0 %v7856_v51 }
 0x20a   : > { %1671 = vst [vmem:[#allocation2 + $0x50] sm:$0x11] %v1670_v25  ;;  %5392 = vrot.lane.b32.xlu1 %v8832_v19, %s8215_s13  ;;  %2449 = vmatpush1.bf16.msra.mxu1 %v7839_v30  ;;  %v8925_v58 = vcombine.high %v8919_v56, %v8897_v50  ;;  %v8929_v59 = vcombine.low %v8919_v56, %v8897_v50  ;;  %v7875_v51 = vld [vmem:[%s11220_s3 + $0xc0] ss:$8 sps:$4 sm:$0xff]  }
 0x20b   : > { %2450 = vmatprep.subr.bf16.mxu1 %v7847_v52  ;;  %v7878_v30 = vld [vmem:[%s11220_s3 + $0x100] ss:$8 sps:$4 sm:$0xff]   ;;  %v7883_v52 = vld [vmem:[%s11220_s3 + $0xb4] ss:$8 sps:$4 sm:$0xff]  }
 0x20c   : > { %11262 = vst [vmem:[#allocation5_spill] sm:$0xff] %v8925_v58  ;;  %11263 = vst [vmem:[#allocation6_spill] sm:$0xff] %v8929_v59  ;;  %v1706_v62 = vld [vmem:[#allocation2 + $0x58] sm:$0xff]  ;;  %v1594_v63 = vpop.permute.xlu1 %1593  ;;  %v1375_v17 = vpop.permute.xlu0 %1374  ;;  %2147 = vmatprep.mubr.bf16.mxu1 %v8925_v58  ;;  %2876 = vmatprep.mubr.bf16.mxu0 %v8925_v58 }
 0x20d   : > { %v8947_v22 = vsel %vm8784_vm15, 0, %v1706_v62  ;;  %1640 = vst.msk [vmem:[#allocation2 + $0x6c] sm:$0xf] %vm1406_vm1, %v1594_v63  ;;  %1421 = vst.msk [vmem:[#allocation2 + $0x70] sm:$0xf] %vm1406_vm1, %v1375_v17  ;;  %2148 = vmatmul.mubr.bf16.gmra.mxu1 %v8929_v59  ;;  %2877 = vmatmul.mubr.bf16.gmra.mxu0 %v8929_v59 }
 0x20e   : > { %1708 = vst [vmem:[#allocation2 + $0x58] sm:$0xff] %v8947_v22  ;;  %5468 = vrot.lane.b32.xlu1 %v8832_v19, %s8215_s13  ;;  %2451 = vmatpush1.bf16.msra.mxu1 %v7845_v20  ;;  %v7865_v19 = vld [vmem:[%s11220_s3 + $0xe4] ss:$8 sps:$4 sm:$0xff]   ;;  %v7881_v62 = vld [vmem:[%s11220_s3 + $0xb0] ss:$8 sps:$4 sm:$0xff]  }
 0x20f   : > { %2452 = vmatprep.subr.bf16.mxu1 %v7853_v60  ;;  %3508 = vmatpush1.bf16.msra.mxu0 %v7854_v61  ;;  %v7886_v61 = vld [vmem:[%s11220_s3 + $0x1f4] ss:$8 sps:$4 sm:$0xff]   ;;  %v7884_v63 = vld [vmem:[%s11220_s3 + $0x1f0] ss:$8 sps:$4 sm:$0xff]  }
 0x210   : > { %v1672_v11 = vld [vmem:[#allocation2 + $0x60] sm:$0x11]  ;;  %v1377_v13 = vpop.permute.xlu1 %1376  ;;  %v1596_v15 = vpop.permute.xlu0 %1595  ;;  %3509 = vmatprep.subr.bf16.mxu0 %v7862_v3  ;;  %5394 = vrot.lane.b32.xlu0 %v8818_v23, %s8215_s13 }
 0x211   : > { %v1673_v29 = vsel %vm8776_vm12, 0, %v1672_v11  ;;  %1422 = vst.msk [vmem:[#allocation2 + $0x78] sm:$0xf] %vm1406_vm1, %v1377_v13  ;;  %1641 = vst.msk [vmem:[#allocation2 + $0x74] sm:$0xf] %vm1406_vm1, %v1596_v15  ;;  %v1740_v14 = vld [vmem:[#allocation2 + $0x50] sm:$0xff] }
 0x212   : > { %1674 = vst [vmem:[#allocation2 + $0x60] sm:$0x11] %v1673_v29  ;;  %5404 = vrot.lane.b32.xlu1 %v1740_v14, %s8215_s13  ;;  %2453 = vmatpush1.bf16.msra.mxu1 %v7851_v7  ;;  %v8973_v27 = vcombine.high %v1740_v14, %v8947_v22  ;;  %v8976_v28 = vcombine.low %v1740_v14, %v8947_v22  ;;  %v7890_v13 = vld [vmem:[%s11220_s3 + $0x1e0] ss:$8 sps:$4 sm:$0xff]  }
 0x213   : > { %2454 = vmatprep.subr.bf16.mxu1 %v7859_v9  ;;  %3510 = vmatpush1.bf16.msra.mxu0 %v7860_v10  ;;  %v7889_v9 = vld [vmem:[%s11220_s3 + $0xa4] ss:$8 sps:$4 sm:$0xff]  }
 0x214   : > { %11264 = vst [vmem:[#allocation7_spill] sm:$0xff] %v8973_v27  ;;  %11265 = vst [vmem:[#allocation8_spill] sm:$0xff] %v8976_v28  ;;  %v1709_v34 = vld [vmem:[#allocation2 + $0x68] sm:$0xff]  ;;  %v1598_v36 = vpop.permute.xlu1 %1597  ;;  %v1379_v37 = vpop.permute.xlu0 %1378  ;;  %2157 = vmatprep.mubr.bf16.mxu1 %v8973_v27  ;;  %2886 = vmatprep.mubr.bf16.mxu0 %v8973_v27 }
 0x215   : > { %v8994_v38 = vsel %vm8784_vm15, 0, %v1709_v34  ;;  %1642 = vst.msk [vmem:[#allocation2 + $0x7c] sm:$0xf] %vm1406_vm1, %v1598_v36  ;;  %1423 = vst.msk [vmem:[#allocation2 + $0x80] sm:$0xf] %vm1406_vm1, %v1379_v37  ;;  %2158 = vmatmul.mubr.bf16.gmra.mxu1 %v8976_v28  ;;  %2887 = vmatmul.mubr.bf16.gmra.mxu0 %v8976_v28 }
 0x216   : > { %1711 = vst [vmem:[#allocation2 + $0x68] sm:$0xff] %v8994_v38  ;;  %5480 = vrot.lane.b32.xlu1 %v1740_v14, %s8215_s13  ;;  %2455 = vmatpush2.bf16.msra.mxu1 %v7857_v31  ;;  %v7892_v10 = vld [vmem:[%s11220_s3 + $0x1e4] ss:$8 sps:$4 sm:$0xff]   ;;  %v7895_v36 = vld [vmem:[%s11220_s3 + $0x94] ss:$8 sps:$4 sm:$0xff]  }
 0x217   : > { %2456 = vmatprep.subr.bf16.mxu1 %v7865_v19  ;;  %3511 = vmatprep.subr.bf16.mxu0 %v7868_v35  ;;  %v7898_v37 = vld [vmem:[%s11220_s3 + $0x1d4] ss:$8 sps:$4 sm:$0xff]  }
 0x218   : > { %v1675_v41 = vld [vmem:[#allocation2 + $0x70] sm:$0x11]  ;;  %v1381_v42 = vpop.permute.xlu1 %1380  ;;  %v1600_v43 = vpop.permute.xlu0 %1599  ;;  %3512 = vmatpush1.bf16.msra.mxu0 %v7866_v16  ;;  %5470 = vrot.lane.b32.xlu0 %v8818_v23, %s8215_s13 }
 0x219   : > { %v1676_v6 = vsel %vm8776_vm12, 0, %v1675_v41  ;;  %1424 = vst.msk [vmem:[#allocation2 + $0x88] sm:$0xf] %vm1406_vm1, %v1381_v42  ;;  %1643 = vst.msk [vmem:[#allocation2 + $0x84] sm:$0xf] %vm1406_vm1, %v1600_v43  ;;  %v9017_v44 = vld [vmem:[#allocation2 + $0x60] sm:$0xff]  ;;  %3513 = vmatprep.subr.bf16.mxu0 %v7874_v0  ;;  %v9149_v41 = vcombine.high %v8216_v1, %v8216_v1 }
 0x21a   : > { %1677 = vst [vmem:[#allocation2 + $0x70] sm:$0x11] %v1676_v6  ;;  %5400 = vrot.lane.b32.xlu1 %v8919_v56, %s8215_s13  ;;  %2457 = vmatpush2.bf16.msra.mxu1 %v7863_v39  ;;  %v9023_v48 = vcombine.high %v9017_v44, %v8994_v38  ;;  %v9027_v23 = vcombine.low %v9017_v44, %v8994_v38  ;;  %v7896_v0 = vld [vmem:[%s11220_s3 + $0x1d0] ss:$8 sps:$4 sm:$0xff]   ;;  %v7901_v39 = vld [vmem:[%s11220_s3 + $0x84] ss:$8 sps:$4 sm:$0xff]  }
 0x21b   : > { %2458 = vmatprep.subr.bf16.mxu1 %v7871_v40  ;;  %v7904_v40 = vld [vmem:[%s11220_s3 + $0x1c4] ss:$8 sps:$4 sm:$0xff]   ;;  %v7899_v42 = vld [vmem:[%s11220_s3 + $0x80] ss:$8 sps:$4 sm:$0xff]  }
 0x21c   : > { %11266 = vst [vmem:[#allocation9_spill] sm:$0xff] %v9023_v48  ;;  %11267 = vst [vmem:[#allocation10_spill] sm:$0xff] %v9027_v23  ;;  %v1712_v26 = vld [vmem:[#allocation2 + $0x78] sm:$0xff]  ;;  %v1602_v47 = vpop.permute.xlu1 %1601  ;;  %v1347_v24 = vpop.permute.xlu0 %1346  ;;  %2167 = vmatprep.mubr.bf16.mxu1 %v9023_v48  ;;  %2896 = vmatprep.mubr.bf16.mxu0 %v9023_v48  ;;  %v7902_v6 = vld [vmem:[%s11220_s3 + $0x1c0] ss:$8 sps:$4 sm:$0xff]  }
 0x21d   : > { %v9045_v21 = vsel %vm8784_vm15, 0, %v1712_v26  ;;  %1644 = vst.msk [vmem:[#allocation2 + $0x8c] sm:$0xf] %vm1406_vm1, %v1602_v47  ;;  %1407 = vst.msk [vmem:[#allocation2] sm:$0xf] %vm1406_vm1, %v1347_v24  ;;  %2168 = vmatmul.mubr.bf16.gmra.mxu1 %v9027_v23  ;;  %2897 = vmatmul.mubr.bf16.gmra.mxu0 %v9027_v23 }
 0x21e   : > { %1714 = vst [vmem:[#allocation2 + $0x78] sm:$0xff] %v9045_v21  ;;  %5476 = vrot.lane.b32.xlu1 %v8919_v56, %s8215_s13  ;;  %2459 = vmatpush2.bf16.msra.mxu1 %v7869_v2  ;;  %v7908_v26 = vld [vmem:[%s11220_s3 + $0x1b0] ss:$8 sps:$4 sm:$0xff]   ;;  %v7913_v47 = vld [vmem:[%s11220_s3 + $0x464] ss:$8 sps:$4 sm:$0xff]  }
 0x21f   : > { %3514 = vmatpush1.bf16.msra.mxu0 %v7872_v46  ;;  %2460 = vmatprep.subr.bf16.mxu1 %v7877_v8  ;;  %v9166_v46 = vcombine.low %v8216_v1, %v8216_v1  ;;  %v7910_v8 = vld [vmem:[%s11220_s3 + $0x1b4] ss:$8 sps:$4 sm:$0xff]   ;;  %v7911_v24 = vld [vmem:[%s11220_s3 + $0x460] ss:$8 sps:$4 sm:$0xff]  }
 0x220   : > { %v1678_v12 = vld [vmem:[#allocation2 + $0x80] sm:$0x11]  ;;  %v1349_v53 = vpop.permute.xlu1 %1348  ;;  %v1568_v55 = vpop.permute.xlu0 %1567  ;;  %3515 = vmatprep.subr.bf16.mxu0 %v7880_v49  ;;  %5406 = vrot.lane.b32.xlu0 %v8947_v22, %s8215_s13 }
 0x221   : > { %v1679_v25 = vsel %vm8776_vm12, 0, %v1678_v12  ;;  %1408 = vst.msk [vmem:[#allocation2 + $0x8] sm:$0xf] %vm1406_vm1, %v1349_v53  ;;  %1627 = vst.msk [vmem:[#allocation2 + $0x4] sm:$0xf] %vm1406_vm1, %v1568_v55  ;;  %v1744_v56 = vld [vmem:[#allocation2 + $0x70] sm:$0xff] }
 0x222   : > { %1680 = vst [vmem:[#allocation2 + $0x80] sm:$0x11] %v1679_v25  ;;  %5412 = vrot.lane.b32.xlu1 %v1744_v56, %s8215_s13  ;;  %2461 = vmatpush2.bf16.msra.mxu1 %v7875_v51  ;;  %v9071_v20 = vcombine.high %v1744_v56, %v9045_v21  ;;  %v9074_v60 = vcombine.low %v1744_v56, %v9045_v21  ;;  %v7914_v49 = vld [vmem:[%s11220_s3 + $0x1a0] ss:$8 sps:$4 sm:$0xff]   ;;  %v7919_v51 = vld [vmem:[%s11220_s3 + $0x454] ss:$8 sps:$4 sm:$0xff]  }
 0x223   : > { %3516 = vmatpush1.bf16.msra.mxu0 %v7878_v30  ;;  %2462 = vmatprep.subr.bf16.mxu1 %v7883_v52  ;;  %v7922_v30 = vld [vmem:[%s11220_s3 + $0x194] ss:$8 sps:$4 sm:$0xff]   ;;  %v7917_v52 = vld [vmem:[%s11220_s3 + $0x450] ss:$8 sps:$4 sm:$0xff]   ;;  %v7925_v53 = vld [vmem:[%s11220_s3 + $0x444] ss:$8 sps:$4 sm:$0xff]  }
 0x224   : > { %11268 = vst [vmem:[#allocation11_spill] sm:$0xff] %v9071_v20  ;;  %11269 = vst [vmem:[#allocation12_spill] sm:$0xff] %v9074_v60  ;;  %v1715_v17 = vld [vmem:[#allocation2 + $0x88] sm:$0xff]  ;;  %v1570_v3 = vpop.permute.xlu1 %1569  ;;  %v1383_v7 = vpop.permute.xlu0 %1382  ;;  %2177 = vmatprep.mubr.bf16.mxu1 %v9071_v20  ;;  %2906 = vmatprep.mubr.bf16.mxu0 %v9071_v20  ;;  %v7920_v12 = vld [vmem:[%s11220_s3 + $0x190] ss:$8 sps:$4 sm:$0xff]  }
 0x225   : > { %v9095_v11 = vsel %vm8784_vm15, 0, %v1715_v17  ;;  %1628 = vst.msk [vmem:[#allocation2 + $0xc] sm:$0xf] %vm1406_vm1, %v1570_v3  ;;  %1425 = vst.msk [vmem:[#allocation2 + $0x90] sm:$0xf] %vm1406_vm1, %v1383_v7  ;;  %2178 = vmatmul.mubr.bf16.gmra.mxu1 %v9074_v60  ;;  %2907 = vmatmul.mubr.bf16.gmra.mxu0 %v9074_v60 }
 0x226   : > { %1717 = vst [vmem:[#allocation2 + $0x88] sm:$0xff] %v9095_v11  ;;  %1726 = vst [vmem:[#allocation2 + $0x8] sm:$0xff] %v8216_v1  ;;  %5408 = vrot.lane.b32.xlu1 %v9017_v44, %s8215_s13  ;;  %3517 = vmatprep.subr.bf16.mxu0 %v7886_v61  ;;  %v7923_v55 = vld [vmem:[%s11220_s3 + $0x440] ss:$8 sps:$4 sm:$0xff]   ;;  %v7934_v61 = vld [vmem:[%s11220_s3 + $0x574] ss:$8 sps:$4 sm:$0xff]  }
 0x227   : > { %2463 = vmatpush2.bf16.msra.mxu1 %v7881_v62  ;;  %3518 = vmatpush2.bf16.msra.mxu0 %v7884_v63  ;;  %v7926_v25 = vld [vmem:[%s11220_s3 + $0x180] ss:$8 sps:$4 sm:$0xff]   ;;  %v7929_v62 = vld [vmem:[%s11220_s3 + $0x430] ss:$8 sps:$4 sm:$0xff]   ;;  %v7937_v17 = vld [vmem:[%s11220_s3 + $0x424] ss:$8 sps:$4 sm:$0xff]  }
 0x228   : > { %v1654_v15 = vld [vmem:[#allocation2] sm:$0x11]  ;;  %v1385_v29 = vpop.permute.xlu1 %1384  ;;  %v1604_v14 = vpop.permute.xlu0 %1603  ;;  %2464 = vmatprep.subr.bf16.mxu1 %v7889_v9  ;;  %3519 = vmatprep.subr.bf16.mxu0 %v7892_v10  ;;  %v7932_v63 = vld [vmem:[%s11220_s3 + $0x570] ss:$8 sps:$4 sm:$0xff]   ;;  %v7943_v9 = vld [vmem:[%s11220_s3 + $0x414] ss:$8 sps:$4 sm:$0xff]  }
 0x229   : > { %v1655_v31 = vsel %vm8776_vm12, 0, %v1654_v15  ;;  %1645 = vst.msk [vmem:[#allocation2 + $0x94] sm:$0xf] %vm1406_vm1, %v1604_v14  ;;  %v1761_v19 = vld [vmem:[#allocation2 + $0x80] sm:$0xff]  ;;  %5482 = vrot.lane.b32.xlu0 %v8947_v22, %s8215_s13  ;;  %v7893_v22 = vld [vmem:[%s11220_s3 + $0x90] ss:$8 sps:$4 sm:$0xff]  }
 0x22a   : > { %1656 = vst [vmem:[#allocation2] sm:$0x11] %v1655_v31  ;;  %5484 = vrot.lane.b32.xlu1 %v9017_v44, %s8215_s13  ;;  %v9119_v35 = vcombine.high %v1761_v19, %v9095_v11  ;;  %v9122_v34 = vcombine.low %v1761_v19, %v9095_v11  ;;  %v7907_v44 = vld [vmem:[%s11220_s3 + $0x474] ss:$8 sps:$4 sm:$0xff]   ;;  %v7940_v3 = vld [vmem:[%s11220_s3 + $0x564] ss:$8 sps:$4 sm:$0xff]  }
 0x22b   : > { %1725 = vst [vmem:[#allocation2] sm:$0xff] %v8216_v1  ;;  %2465 = vmatpush2.bf16.msra.mxu1 %v7887_v57  ;;  %3520 = vmatpush2.bf16.msra.mxu0 %v7890_v13  ;;  %v7935_v7 = vld [vmem:[%s11220_s3 + $0x420] ss:$8 sps:$4 sm:$0xff]   ;;  %v7946_v10 = vld [vmem:[%s11220_s3 + $0x554] ss:$8 sps:$4 sm:$0xff]  }
 0x22c   : > { %v1606_v16 = vpop.permute.xlu1 %1605  ;;  %2187 = vmatprep.mubr.bf16.mxu1 %v9119_v35  ;;  %2916 = vmatprep.mubr.bf16.mxu0 %v9119_v35  ;;  %v7941_v57 = vld [vmem:[%s11220_s3 + $0x410] ss:$8 sps:$4 sm:$0xff]   ;;  %v7949_v15 = vld [vmem:[%s11220_s3 + $0x404] ss:$8 sps:$4 sm:$0xff]   ;;  %v7947_v29 = vld [vmem:[%s11220_s3 + $0x400] ss:$8 sps:$4 sm:$0xff]  }
 0x22d   : > { %2188 = vmatmul.mubr.bf16.gmra.mxu1 %v9122_v34  ;;  %2917 = vmatmul.mubr.bf16.gmra.mxu0 %v9122_v34  ;;  %v7944_v13 = vld [vmem:[%s11220_s3 + $0x550] ss:$8 sps:$4 sm:$0xff]   ;;  %v7950_v14 = vld [vmem:[%s11220_s3 + $0x540] ss:$8 sps:$4 sm:$0xff]   ;;  %v7955_v31 = vld [vmem:[%s11220_s3 + $0x4f4] ss:$8 sps:$4 sm:$0xff]  }
 0x22e   : > { %5488 = vrot.lane.b32.xlu1 %v1744_v56, %s8215_s13  ;;  %2466 = vmatprep.subr.bf16.mxu1 %v7895_v36  ;;  %v7931_v56 = vld [vmem:[%s11220_s3 + $0x434] ss:$8 sps:$4 sm:$0xff]   ;;  %v7953_v36 = vld [vmem:[%s11220_s3 + $0x4f0] ss:$8 sps:$4 sm:$0xff]   ;;  %v7959_v16 = vld [vmem:[%s11220_s3 + $0x4e0] ss:$8 sps:$4 sm:$0xff]  }
 0x22f   : > { %3521 = vmatprep.subr.bf16.mxu0 %v7898_v37  ;;  %2467 = vmatpush2.bf16.msra.mxu1 %v7893_v22  ;;  %v7956_v22 = vld [vmem:[%s11220_s3 + $0x530] ss:$8 sps:$4 sm:$0xff]   ;;  %v7961_v37 = vld [vmem:[%s11220_s3 + $0x4e4] ss:$8 sps:$4 sm:$0xff]   ;;  %vm5712_vm1 = vsmask.f32 7424 }
 0x230   : > { %v1681_v43 = vld [vmem:[#allocation2 + $0x90] sm:$0x11]  ;;  %3522 = vmatpush2.bf16.msra.mxu0 %v7896_v0  ;;  %2468 = vmatprep.subr.bf16.mxu1 %v7901_v39  ;;  %v7962_v0 = vld [vmem:[%s11220_s3 + $0x520] ss:$8 sps:$4 sm:$0xff]   ;;  %vm5778_vm3 = vmand %vm5777_vm2, %vm5712_vm1 }
 0x231   : > { %v1682_v2 = vsel %vm8776_vm12, 0, %v1681_v43  ;;  %3523 = vmatprep.subr.bf16.mxu0 %v7904_v40  ;;  %2470 = vmatprep.mubr.bf16.mxu1 %v9149_v41  ;;  %v7967_v39 = vld [vmem:[%s11220_s3 + $0x4d4] ss:$8 sps:$4 sm:$0xff]   ;;  %v7968_v43 = vld [vmem:[%s11220_s3 + $0x510] ss:$8 sps:$4 sm:$0xff]  }
 0x232   : > { %1683 = vst [vmem:[#allocation2 + $0x90] sm:$0x11] %v1682_v2  ;;  %5492 = vrot.lane.b32.xlu1 %v1761_v19, %s8215_s13  ;;  %2926 = vmatprep.mubr.bf16.mxu0 %v9149_v41  ;;  %v7958_v19 = vld [vmem:[%s11220_s3 + $0x534] ss:$8 sps:$4 sm:$0xff]   ;;  %v7971_v2 = vld [vmem:[%s11220_s3 + $0x4c0] ss:$8 sps:$4 sm:$0xff]  }
 0x233   : > { %1728 = vst [vmem:[#allocation2 + $0x90] sm:$0xff] %v8216_v1  ;;  %2469 = vmatpush2.bf16.msra.mxu1 %v7899_v42  ;;  %5402 = vrot.lane.b32.xlu0 %v8897_v50, %s8215_s13  ;;  %v7916_v1 = vld [vmem:[%s11220_s3 + $0x1a4] ss:$8 sps:$4 sm:$0xff]   ;;  %v7970_v40 = vld [vmem:[%s11220_s3 + $0x514] ss:$8 sps:$4 sm:$0xff]  }
 0x234   : > { %3524 = vmatpush2.bf16.msra.mxu0 %v7902_v6  ;;  %3228 = vmatprep.subr.bf16.mxu1 %v7907_v44  ;;  %v7965_v42 = vld [vmem:[%s11220_s3 + $0x4d0] ss:$8 sps:$4 sm:$0xff]   ;;  %v7973_v6 = vld [vmem:[%s11220_s3 + $0x4c4] ss:$8 sps:$4 sm:$0xff]  }
 0x235   : > { %3525 = vmatprep.subr.bf16.mxu0 %v7910_v8  ;;  %2927 = vmatmul.mubr.bf16.gmra.mxu0 %v9166_v46  ;;  %v7976_v44 = vld [vmem:[%s11220_s3 + $0x504] ss:$8 sps:$4 sm:$0xff]   ;;  %v7974_v8 = vld [vmem:[%s11220_s3 + $0x500] ss:$8 sps:$4 sm:$0xff]  }
 0x236   : > { %2471 = vmatmul.mubr.bf16.vlgmr.msra.gmra.mxu1 %v9166_v46  ;;  %3533 = vmatprep.mubr.bf16.mxu0 %v9149_v41 }
 0x237   : > { %2480 = vmatprep.mubr.bf16.mxu1 %v8795_v4  ;;  %3229 = vmatpush1.bf16.msra.mxu1 %v7905_v54  ;;  %v7979_v54 = vld [vmem:[%s11220_s3 + $0x4b4] ss:$8 sps:$4 sm:$0xff]  }
 0x238   : > { %3526 = vmatpush2.bf16.msra.mxu0 %v7908_v26  ;;  %3230 = vmatprep.subr.bf16.mxu1 %v7913_v47  ;;  %v7982_v26 = vld [vmem:[%s11220_s3 + $0x5f4] ss:$8 sps:$4 sm:$0xff]   ;;  %v7977_v47 = vld [vmem:[%s11220_s3 + $0x4b0] ss:$8 sps:$4 sm:$0xff]  }
 0x239   : > { %3527 = vmatprep.subr.bf16.mxu0 %v7916_v1  ;;  %5478 = vrot.lane.b32.xlu0 %v8897_v50, %s8215_s13  ;;  %v7928_v50 = vld [vmem:[%s11220_s3 + $0x184] ss:$8 sps:$4 sm:$0xff]   ;;  %v7980_v1 = vld [vmem:[%s11220_s3 + $0x5f0] ss:$8 sps:$4 sm:$0xff]  }
 0x23b   : > { %3231 = vmatpush1.bf16.msra.mxu1 %v7911_v24  ;;  %v7985_v24 = vld [vmem:[%s11220_s3 + $0x4a4] ss:$8 sps:$4 sm:$0xff]  }
 0x23c   : > { %3528 = vmatpush2.bf16.msra.mxu0 %v7914_v49  ;;  %3232 = vmatprep.subr.bf16.mxu1 %v7919_v51  ;;  %v7988_v49 = vld [vmem:[%s11220_s3 + $0x5e4] ss:$8 sps:$4 sm:$0xff]   ;;  %v7983_v51 = vld [vmem:[%s11220_s3 + $0x4a0] ss:$8 sps:$4 sm:$0xff]  }
 0x23d   : > { %3529 = vmatprep.subr.bf16.mxu0 %v7922_v30  ;;  %5414 = vrot.lane.b32.xlu0 %v9045_v21, %s8215_s13  ;;  %v7986_v30 = vld [vmem:[%s11220_s3 + $0x5e0] ss:$8 sps:$4 sm:$0xff]  }
 0x23e   : > { %2481 = vmatmul.mubr.bf16.gmra.mxu1 %v8797_v5 }
 0x23f   : > { %2490 = vmatprep.mubr.bf16.mxu1 %v8836_v32  ;;  %3233 = vmatpush1.bf16.msra.mxu1 %v7917_v52  ;;  %v7991_v52 = vld [vmem:[%s11220_s3 + $0x494] ss:$8 sps:$4 sm:$0xff]  }
 0x240   : > { %3530 = vmatpush2.bf16.msra.mxu0 %v7920_v12  ;;  %3234 = vmatprep.subr.bf16.mxu1 %v7925_v53  ;;  %v7994_v12 = vld [vmem:[%s11220_s3 + $0x5d4] ss:$8 sps:$4 sm:$0xff]   ;;  %v7989_v53 = vld [vmem:[%s11220_s3 + $0x490] ss:$8 sps:$4 sm:$0xff]  }
 0x241   : > { %3531 = vmatprep.subr.bf16.mxu0 %v7928_v50  ;;  %5410 = vrot.lane.b32.xlu0 %v8994_v38, %s8215_s13  ;;  %v7992_v50 = vld [vmem:[%s11220_s3 + $0x5d0] ss:$8 sps:$4 sm:$0xff]  }
 0x243   : > { %3235 = vmatpush1.bf16.msra.mxu1 %v7923_v55  ;;  %v7997_v55 = vld [vmem:[%s11220_s3 + $0x484] ss:$8 sps:$4 sm:$0xff]  }
 0x244   : > { %3532 = vmatpush2.bf16.msra.mxu0 %v7926_v25  ;;  %3236 = vmatprep.subr.bf16.mxu1 %v7931_v56  ;;  %v8000_v25 = vld [vmem:[%s11220_s3 + $0x5c4] ss:$8 sps:$4 sm:$0xff]   ;;  %v7995_v56 = vld [vmem:[%s11220_s3 + $0x480] ss:$8 sps:$4 sm:$0xff]  }
 0x245   : > { %4403 = vmatprep.subr.bf16.mxu0 %v7934_v61  ;;  %5486 = vrot.lane.b32.xlu0 %v8994_v38, %s8215_s13  ;;  %v7938_v38 = vld [vmem:[%s11220_s3 + $0x560] ss:$8 sps:$4 sm:$0xff]  }
 0x246   : > { %2491 = vmatmul.mubr.bf16.gmra.mxu1 %v8840_v33  ;;  %v7998_v61 = vld [vmem:[%s11220_s3 + $0x5c0] ss:$8 sps:$4 sm:$0xff]  }
 0x247   : > { %3534 = vmatmul.mubr.bf16.vlgmr.msra.gmra.mxu0 %v9166_v46  ;;  %2500 = vmatprep.mubr.bf16.mxu1 %v8877_v18 }
 0x248   : > { %3237 = vmatpush1.bf16.msra.mxu1 %v7929_v62  ;;  %3543 = vmatprep.mubr.bf16.mxu0 %v8795_v4  ;;  %v8003_v62 = vld [vmem:[%s11220_s3 + $0x774] ss:$8 sps:$4 sm:$0xff]  }
 0x249   : > { %4404 = vmatpush1.bf16.msra.mxu0 %v7932_v63  ;;  %3238 = vmatprep.subr.bf16.mxu1 %v7937_v17  ;;  %v8006_v63 = vld [vmem:[%s11220_s3 + $0x5b4] ss:$8 sps:$4 sm:$0xff]   ;;  %v8001_v17 = vld [vmem:[%s11220_s3 + $0x770] ss:$8 sps:$4 sm:$0xff]  }
 0x24a   : > { %4405 = vmatprep.subr.bf16.mxu0 %v7940_v3  ;;  %5490 = vrot.lane.b32.xlu0 %v9045_v21, %s8215_s13  ;;  %v7952_v21 = vld [vmem:[%s11220_s3 + $0x544] ss:$8 sps:$4 sm:$0xff]   ;;  %v8004_v3 = vld [vmem:[%s11220_s3 + $0x5b0] ss:$8 sps:$4 sm:$0xff]  }
 0x24c   : > { %3239 = vmatpush1.bf16.msra.mxu1 %v7935_v7  ;;  %v8009_v7 = vld [vmem:[%s11220_s3 + $0x764] ss:$8 sps:$4 sm:$0xff]  }
 0x24d   : > { %4406 = vmatpush1.bf16.msra.mxu0 %v7938_v38  ;;  %3240 = vmatprep.subr.bf16.mxu1 %v7943_v9  ;;  %v8012_v38 = vld [vmem:[%s11220_s3 + $0x5a4] ss:$8 sps:$4 sm:$0xff]   ;;  %v8007_v9 = vld [vmem:[%s11220_s3 + $0x760] ss:$8 sps:$4 sm:$0xff]  }
 0x24e   : > { %2501 = vmatmul.mubr.bf16.gmra.mxu1 %v8879_v45  ;;  %4407 = vmatprep.subr.bf16.mxu0 %v7946_v10  ;;  %v8010_v10 = vld [vmem:[%s11220_s3 + $0x5a0] ss:$8 sps:$4 sm:$0xff]  }
 0x24f   : > { %3544 = vmatmul.mubr.bf16.gmra.mxu0 %v8797_v5  ;;  %2510 = vmatprep.mubr.bf16.mxu1 %v8925_v58 }
 0x250   : > { %3241 = vmatpush1.bf16.msra.mxu1 %v7941_v57  ;;  %3553 = vmatprep.mubr.bf16.mxu0 %v8836_v32  ;;  %v8015_v57 = vld [vmem:[%s11220_s3 + $0x754] ss:$8 sps:$4 sm:$0xff]  }
 0x251   : > { %4408 = vmatpush1.bf16.msra.mxu0 %v7944_v13  ;;  %3242 = vmatprep.subr.bf16.mxu1 %v7949_v15  ;;  %v8018_v13 = vld [vmem:[%s11220_s3 + $0x594] ss:$8 sps:$4 sm:$0xff]   ;;  %v8013_v15 = vld [vmem:[%s11220_s3 + $0x750] ss:$8 sps:$4 sm:$0xff]  }
 0x252   : > { %4409 = vmatprep.subr.bf16.mxu0 %v7952_v21  ;;  %5494 = vrot.lane.b32.xlu0 %v9095_v11, %s8215_s13  ;;  %v7964_v11 = vld [vmem:[%s11220_s3 + $0x524] ss:$8 sps:$4 sm:$0xff]   ;;  %v8016_v21 = vld [vmem:[%s11220_s3 + $0x590] ss:$8 sps:$4 sm:$0xff]  }
 0x254   : > { %3243 = vmatpush1.bf16.msra.mxu1 %v7947_v29  ;;  %v8021_v29 = vld [vmem:[%s11220_s3 + $0x744] ss:$8 sps:$4 sm:$0xff]  }
 0x255   : > { %4410 = vmatpush1.bf16.msra.mxu0 %v7950_v14  ;;  %3244 = vmatprep.subr.bf16.mxu1 %v7955_v31  ;;  %v8024_v14 = vld [vmem:[%s11220_s3 + $0x584] ss:$8 sps:$4 sm:$0xff]   ;;  %v8019_v31 = vld [vmem:[%s11220_s3 + $0x740] ss:$8 sps:$4 sm:$0xff]  }
 0x256   : > { %2511 = vmatmul.mubr.bf16.gmra.mxu1 %v8929_v59  ;;  %4411 = vmatprep.subr.bf16.mxu0 %v7958_v19  ;;  %v8022_v19 = vld [vmem:[%s11220_s3 + $0x580] ss:$8 sps:$4 sm:$0xff]  }
 0x257   : > { %3554 = vmatmul.mubr.bf16.gmra.mxu0 %v8840_v33  ;;  %2520 = vmatprep.mubr.bf16.mxu1 %v8973_v27 }
 0x258   : > { %3245 = vmatpush2.bf16.msra.mxu1 %v7953_v36  ;;  %3563 = vmatprep.mubr.bf16.mxu0 %v8877_v18  ;;  %v8027_v36 = vld [vmem:[%s11220_s3 + $0x734] ss:$8 sps:$4 sm:$0xff]  }
 0x259   : > { %4412 = vmatpush1.bf16.msra.mxu0 %v7956_v22  ;;  %3246 = vmatprep.subr.bf16.mxu1 %v7961_v37  ;;  %v8030_v22 = vld [vmem:[%s11220_s3 + $0x874] ss:$8 sps:$4 sm:$0xff]   ;;  %v8025_v37 = vld [vmem:[%s11220_s3 + $0x730] ss:$8 sps:$4 sm:$0xff]  }
 0x25a   : > { %4413 = vmatprep.subr.bf16.mxu0 %v7964_v11  ;;  %v8028_v11 = vld [vmem:[%s11220_s3 + $0x870] ss:$8 sps:$4 sm:$0xff]  }
 0x25c   : > { %3247 = vmatpush2.bf16.msra.mxu1 %v7959_v16  ;;  %v8033_v16 = vld [vmem:[%s11220_s3 + $0x724] ss:$8 sps:$4 sm:$0xff]  }
 0x25d   : > { %4414 = vmatpush1.bf16.msra.mxu0 %v7962_v0  ;;  %3248 = vmatprep.subr.bf16.mxu1 %v7967_v39  ;;  %v8036_v0 = vld [vmem:[%s11220_s3 + $0x864] ss:$8 sps:$4 sm:$0xff]   ;;  %v8031_v39 = vld [vmem:[%s11220_s3 + $0x720] ss:$8 sps:$4 sm:$0xff]  }
 0x25e   : > { %2521 = vmatmul.mubr.bf16.gmra.mxu1 %v8976_v28  ;;  %4415 = vmatprep.subr.bf16.mxu0 %v7970_v40  ;;  %v8034_v40 = vld [vmem:[%s11220_s3 + $0x860] ss:$8 sps:$4 sm:$0xff]  }
 0x25f   : > { %3564 = vmatmul.mubr.bf16.gmra.mxu0 %v8879_v45  ;;  %2530 = vmatprep.mubr.bf16.mxu1 %v9023_v48 }
 0x260   : > { %3249 = vmatpush2.bf16.msra.mxu1 %v7965_v42  ;;  %3573 = vmatprep.mubr.bf16.mxu0 %v8925_v58  ;;  %v8039_v42 = vld [vmem:[%s11220_s3 + $0x714] ss:$8 sps:$4 sm:$0xff]  }
 0x261   : > { %4416 = vmatpush1.bf16.msra.mxu0 %v7968_v43  ;;  %3250 = vmatprep.subr.bf16.mxu1 %v7973_v6  ;;  %v8042_v43 = vld [vmem:[%s11220_s3 + $0x854] ss:$8 sps:$4 sm:$0xff]   ;;  %v8037_v6 = vld [vmem:[%s11220_s3 + $0x710] ss:$8 sps:$4 sm:$0xff]  }
 0x262   : > { %4417 = vmatprep.subr.bf16.mxu0 %v7976_v44  ;;  %v8040_v44 = vld [vmem:[%s11220_s3 + $0x850] ss:$8 sps:$4 sm:$0xff]  }
 0x264   : > { %3251 = vmatpush2.bf16.msra.mxu1 %v7971_v2  ;;  %v8045_v2 = vld [vmem:[%s11220_s3 + $0x704] ss:$8 sps:$4 sm:$0xff]  }
 0x265   : > { %4418 = vmatpush1.bf16.msra.mxu0 %v7974_v8  ;;  %3252 = vmatprep.subr.bf16.mxu1 %v7979_v54  ;;  %v8048_v8 = vld [vmem:[%s11220_s3 + $0x844] ss:$8 sps:$4 sm:$0xff]   ;;  %v8043_v54 = vld [vmem:[%s11220_s3 + $0x700] ss:$8 sps:$4 sm:$0xff]  }
 0x266   : > { %2531 = vmatmul.mubr.bf16.gmra.mxu1 %v9027_v23  ;;  %4419 = vmatprep.subr.bf16.mxu0 %v7982_v26  ;;  %v8046_v26 = vld [vmem:[%s11220_s3 + $0x840] ss:$8 sps:$4 sm:$0xff]  }
 0x267   : > { %3574 = vmatmul.mubr.bf16.gmra.mxu0 %v8929_v59  ;;  %2540 = vmatprep.mubr.bf16.mxu1 %v9071_v20 }
 0x268   : > { %3253 = vmatpush2.bf16.msra.mxu1 %v7977_v47  ;;  %3583 = vmatprep.mubr.bf16.mxu0 %v8973_v27  ;;  %v8051_v47 = vld [vmem:[%s11220_s3 + $0x7f4] ss:$8 sps:$4 sm:$0xff]  }
 0x269   : > { %4420 = vmatpush2.bf16.msra.mxu0 %v7980_v1  ;;  %3254 = vmatprep.subr.bf16.mxu1 %v7985_v24  ;;  %v8054_v1 = vld [vmem:[%s11220_s3 + $0x834] ss:$8 sps:$4 sm:$0xff]   ;;  %v8049_v24 = vld [vmem:[%s11220_s3 + $0x7f0] ss:$8 sps:$4 sm:$0xff]  }
 0x26a   : > { %4421 = vmatprep.subr.bf16.mxu0 %v7988_v49  ;;  %v8052_v49 = vld [vmem:[%s11220_s3 + $0x830] ss:$8 sps:$4 sm:$0xff]  }
 0x26c   : > { %3255 = vmatpush2.bf16.msra.mxu1 %v7983_v51  ;;  %v8057_v51 = vld [vmem:[%s11220_s3 + $0x7e4] ss:$8 sps:$4 sm:$0xff]  }
 0x26d   : > { %4422 = vmatpush2.bf16.msra.mxu0 %v7986_v30  ;;  %3256 = vmatprep.subr.bf16.mxu1 %v7991_v52  ;;  %v8060_v30 = vld [vmem:[%s11220_s3 + $0x824] ss:$8 sps:$4 sm:$0xff]   ;;  %v8055_v52 = vld [vmem:[%s11220_s3 + $0x7e0] ss:$8 sps:$4 sm:$0xff]  }
 0x26e   : > { %2541 = vmatmul.mubr.bf16.gmra.mxu1 %v9074_v60  ;;  %4423 = vmatprep.subr.bf16.mxu0 %v7994_v12  ;;  %v8058_v12 = vld [vmem:[%s11220_s3 + $0x820] ss:$8 sps:$4 sm:$0xff]  }
 0x26f   : > { %3584 = vmatmul.mubr.bf16.gmra.mxu0 %v8976_v28  ;;  %3260 = vmatprep.mubr.bf16.mxu1 %v8795_v4 }
 0x270   : > { %3257 = vmatpush2.bf16.msra.mxu1 %v7989_v53  ;;  %3593 = vmatprep.mubr.bf16.mxu0 %v9023_v48  ;;  %v8063_v53 = vld [vmem:[%s11220_s3 + $0x7d4] ss:$8 sps:$4 sm:$0xff]  }
 0x271   : > { %4424 = vmatpush2.bf16.msra.mxu0 %v7992_v50  ;;  %3258 = vmatprep.subr.bf16.mxu1 %v7997_v55  ;;  %v8066_v50 = vld [vmem:[%s11220_s3 + $0x814] ss:$8 sps:$4 sm:$0xff]   ;;  %v8061_v55 = vld [vmem:[%s11220_s3 + $0x7d0] ss:$8 sps:$4 sm:$0xff]  }
 0x272   : > { %4425 = vmatprep.subr.bf16.mxu0 %v8000_v25  ;;  %v8064_v25 = vld [vmem:[%s11220_s3 + $0x810] ss:$8 sps:$4 sm:$0xff]  }
 0x274   : > { %3259 = vmatpush2.bf16.msra.mxu1 %v7995_v56  ;;  %v8069_v56 = vld [vmem:[%s11220_s3 + $0x7c4] ss:$8 sps:$4 sm:$0xff]  }
 0x275   : > { %4426 = vmatpush2.bf16.msra.mxu0 %v7998_v61  ;;  %3807 = vmatprep.subr.bf16.mxu1 %v8003_v62  ;;  %v8072_v61 = vld [vmem:[%s11220_s3 + $0x804] ss:$8 sps:$4 sm:$0xff]   ;;  %v8067_v62 = vld [vmem:[%s11220_s3 + $0x7c0] ss:$8 sps:$4 sm:$0xff]  }
 0x276   : > { %4427 = vmatprep.subr.bf16.mxu0 %v8006_v63  ;;  %v8070_v63 = vld [vmem:[%s11220_s3 + $0x800] ss:$8 sps:$4 sm:$0xff]  }
 0x277   : > { %3261 = vmatmul.mubr.bf16.vlgmr.msra.gmra.mxu1 %v8797_v5  ;;  %3594 = vmatmul.mubr.bf16.gmra.mxu0 %v9027_v23 }
 0x278   : > { %3270 = vmatprep.mubr.bf16.mxu1 %v8836_v32  ;;  %3603 = vmatprep.mubr.bf16.mxu0 %v9071_v20 }
 0x279   : > { %3808 = vmatpush1.bf16.msra.mxu1 %v8001_v17  ;;  %4428 = vmatpush2.bf16.msra.mxu0 %v8004_v3  ;;  %v8075_v17 = vld [vmem:[%s11220_s3 + $0x7b4] ss:$8 sps:$4 sm:$0xff]  }
 0x27a   : > { %3809 = vmatprep.subr.bf16.mxu1 %v8009_v7  ;;  %4429 = vmatprep.subr.bf16.mxu0 %v8012_v38  ;;  %v8078_v3 = vld [vmem:[%s11220_s3 + $0x8f4] ss:$8 sps:$4 sm:$0xff]   ;;  %v8073_v7 = vld [vmem:[%s11220_s3 + $0x7b0] ss:$8 sps:$4 sm:$0xff]  }
 0x27b   : > { %v8076_v38 = vld [vmem:[%s11220_s3 + $0x8f0] ss:$8 sps:$4 sm:$0xff]  }
 0x27d   : > { %3810 = vmatpush1.bf16.msra.mxu1 %v8007_v9  ;;  %4430 = vmatpush2.bf16.msra.mxu0 %v8010_v10  ;;  %v8081_v9 = vld [vmem:[%s11220_s3 + $0x7a4] ss:$8 sps:$4 sm:$0xff]  }
 0x27e   : > { %3811 = vmatprep.subr.bf16.mxu1 %v8015_v57  ;;  %4431 = vmatprep.subr.bf16.mxu0 %v8018_v13  ;;  %v8084_v10 = vld [vmem:[%s11220_s3 + $0x8e4] ss:$8 sps:$4 sm:$0xff]   ;;  %v8079_v57 = vld [vmem:[%s11220_s3 + $0x7a0] ss:$8 sps:$4 sm:$0xff]  }
 0x27f   : > { %3271 = vmatmul.mubr.bf16.gmra.mxu1 %v8840_v33  ;;  %3604 = vmatmul.mubr.bf16.gmra.mxu0 %v9074_v60  ;;  %v8082_v13 = vld [vmem:[%s11220_s3 + $0x8e0] ss:$8 sps:$4 sm:$0xff]  }
 0x280   : > { %3280 = vmatprep.mubr.bf16.mxu1 %v8877_v18  ;;  %4435 = vmatprep.mubr.bf16.mxu0 %v8795_v4 }
 0x281   : > { %3812 = vmatpush1.bf16.msra.mxu1 %v8013_v15  ;;  %4432 = vmatpush2.bf16.msra.mxu0 %v8016_v21  ;;  %v8087_v15 = vld [vmem:[%s11220_s3 + $0x794] ss:$8 sps:$4 sm:$0xff]  }
 0x282   : > { %3813 = vmatprep.subr.bf16.mxu1 %v8021_v29  ;;  %4433 = vmatprep.subr.bf16.mxu0 %v8024_v14  ;;  %v8090_v21 = vld [vmem:[%s11220_s3 + $0x8d4] ss:$8 sps:$4 sm:$0xff]   ;;  %v8085_v29 = vld [vmem:[%s11220_s3 + $0x790] ss:$8 sps:$4 sm:$0xff]  }
 0x283   : > { %v8088_v14 = vld [vmem:[%s11220_s3 + $0x8d0] ss:$8 sps:$4 sm:$0xff]  }
 0x285   : > { %3814 = vmatpush1.bf16.msra.mxu1 %v8019_v31  ;;  %4434 = vmatpush2.bf16.msra.mxu0 %v8022_v19  ;;  %v8093_v31 = vld [vmem:[%s11220_s3 + $0x784] ss:$8 sps:$4 sm:$0xff]  }
 0x286   : > { %3815 = vmatprep.subr.bf16.mxu1 %v8027_v36  ;;  %4982 = vmatprep.subr.bf16.mxu0 %v8030_v22  ;;  %v8096_v19 = vld [vmem:[%s11220_s3 + $0x8c4] ss:$8 sps:$4 sm:$0xff]   ;;  %v8091_v36 = vld [vmem:[%s11220_s3 + $0x780] ss:$8 sps:$4 sm:$0xff]  }
 0x287   : > { %3281 = vmatmul.mubr.bf16.gmra.mxu1 %v8879_v45  ;;  %v8094_v22 = vld [vmem:[%s11220_s3 + $0x8c0] ss:$8 sps:$4 sm:$0xff]  }
 0x288   : > { %3290 = vmatprep.mubr.bf16.mxu1 %v8925_v58  ;;  %4436 = vmatmul.mubr.bf16.vlgmr.msra.gmra.mxu0 %v8797_v5 }
 0x289   : > { %3816 = vmatpush1.bf16.msra.mxu1 %v8025_v37  ;;  %4445 = vmatprep.mubr.bf16.mxu0 %v8836_v32 }
 0x28a   : > { %4983 = vmatpush1.bf16.msra.mxu0 %v8028_v11  ;;  %3817 = vmatprep.subr.bf16.mxu1 %v8033_v16  ;;  %v8099_v11 = vld [vmem:[%s11220_s3 + $0x274] ss:$8 sps:$4 sm:$0xff]  }
 0x28b   : > { %4984 = vmatprep.subr.bf16.mxu0 %v8036_v0  ;;  %v8102_v16 = vld [vmem:[%s11220_s3 + $0x8b4] ss:$8 sps:$4 sm:$0xff]  }
 0x28d   : > { %3818 = vmatpush1.bf16.msra.mxu1 %v8031_v39  ;;  %v8097_v39 = vld [vmem:[%s11220_s3 + $0x270] ss:$8 sps:$4 sm:$0xff]  }
 0x28e   : > { %4985 = vmatpush1.bf16.msra.mxu0 %v8034_v40  ;;  %3819 = vmatprep.subr.bf16.mxu1 %v8039_v42  ;;  %v8100_v40 = vld [vmem:[%s11220_s3 + $0x8b0] ss:$8 sps:$4 sm:$0xff]  }
 0x28f   : > { %3291 = vmatmul.mubr.bf16.gmra.mxu1 %v8929_v59  ;;  %4986 = vmatprep.subr.bf16.mxu0 %v8042_v43  ;;  %v8105_v43 = vld [vmem:[%s11220_s3 + $0x264] ss:$8 sps:$4 sm:$0xff]  }
 0x290   : > { %3300 = vmatprep.mubr.bf16.mxu1 %v8973_v27  ;;  %4446 = vmatmul.mubr.bf16.gmra.mxu0 %v8840_v33 }
 0x291   : > { %3820 = vmatpush1.bf16.msra.mxu1 %v8037_v6  ;;  %4455 = vmatprep.mubr.bf16.mxu0 %v8877_v18  ;;  %v8108_v6 = vld [vmem:[%s11220_s3 + $0x8a4] ss:$8 sps:$4 sm:$0xff]  }
 0x292   : > { %4987 = vmatpush1.bf16.msra.mxu0 %v8040_v44  ;;  %3821 = vmatprep.subr.bf16.mxu1 %v8045_v2  ;;  %v8103_v2 = vld [vmem:[%s11220_s3 + $0x260] ss:$8 sps:$4 sm:$0xff]  }
 0x293   : > { %4988 = vmatprep.subr.bf16.mxu0 %v8048_v8  ;;  %v8106_v8 = vld [vmem:[%s11220_s3 + $0x8a0] ss:$8 sps:$4 sm:$0xff]  }
 0x295   : > { %3822 = vmatpush1.bf16.msra.mxu1 %v8043_v54  ;;  %v8111_v54 = vld [vmem:[%s11220_s3 + $0x254] ss:$8 sps:$4 sm:$0xff]  }
 0x296   : > { %4989 = vmatpush1.bf16.msra.mxu0 %v8046_v26  ;;  %3823 = vmatprep.subr.bf16.mxu1 %v8051_v47  ;;  %v8114_v26 = vld [vmem:[%s11220_s3 + $0x894] ss:$8 sps:$4 sm:$0xff]  }
 0x297   : > { %3301 = vmatmul.mubr.bf16.gmra.mxu1 %v8976_v28  ;;  %4990 = vmatprep.subr.bf16.mxu0 %v8054_v1 }
 0x298   : > { %4456 = vmatmul.mubr.bf16.gmra.mxu0 %v8879_v45  ;;  %3310 = vmatprep.mubr.bf16.mxu1 %v9023_v48 }
 0x299   : > { %3824 = vmatpush2.bf16.msra.mxu1 %v8049_v24  ;;  %4465 = vmatprep.mubr.bf16.mxu0 %v8925_v58  ;;  %v8109_v24 = vld [vmem:[%s11220_s3 + $0x250] ss:$8 sps:$4 sm:$0xff]  }
 0x29a   : > { %4991 = vmatpush1.bf16.msra.mxu0 %v8052_v49  ;;  %3825 = vmatprep.subr.bf16.mxu1 %v8057_v51  ;;  %v8112_v49 = vld [vmem:[%s11220_s3 + $0x890] ss:$8 sps:$4 sm:$0xff]  }
 0x29b   : > { %4992 = vmatprep.subr.bf16.mxu0 %v8060_v30 }
 0x29d   : > { %3826 = vmatpush2.bf16.msra.mxu1 %v8055_v52  ;;  %v8117_v52 = vld [vmem:[%s11220_s3 + $0x244] ss:$8 sps:$4 sm:$0xff]  }
 0x29e   : > { %4993 = vmatpush1.bf16.msra.mxu0 %v8058_v12  ;;  %3827 = vmatprep.subr.bf16.mxu1 %v8063_v53  ;;  %v8120_v12 = vld [vmem:[%s11220_s3 + $0x884] ss:$8 sps:$4 sm:$0xff]  }
 0x29f   : > { %3311 = vmatmul.mubr.bf16.gmra.mxu1 %v9027_v23  ;;  %4994 = vmatprep.subr.bf16.mxu0 %v8066_v50 }
 0x2a0   : > { %4466 = vmatmul.mubr.bf16.gmra.mxu0 %v8929_v59  ;;  %3320 = vmatprep.mubr.bf16.mxu1 %v9071_v20 }
 0x2a1   : > { %3828 = vmatpush2.bf16.msra.mxu1 %v8061_v55  ;;  %4475 = vmatprep.mubr.bf16.mxu0 %v8973_v27  ;;  %v8115_v55 = vld [vmem:[%s11220_s3 + $0x240] ss:$8 sps:$4 sm:$0xff]  }
 0x2a2   : > { %4995 = vmatpush1.bf16.msra.mxu0 %v8064_v25  ;;  %3829 = vmatprep.subr.bf16.mxu1 %v8069_v56  ;;  %v8118_v25 = vld [vmem:[%s11220_s3 + $0x880] ss:$8 sps:$4 sm:$0xff]  }
 0x2a3   : > { %4996 = vmatprep.subr.bf16.mxu0 %v8072_v61 }
 0x2a5   : > { %3830 = vmatpush2.bf16.msra.mxu1 %v8067_v62  ;;  %v8123_v62 = vld [vmem:[%s11220_s3 + $0x234] ss:$8 sps:$4 sm:$0xff]  }
 0x2a6   : > { %4997 = vmatpush1.bf16.msra.mxu0 %v8070_v63  ;;  %3831 = vmatprep.subr.bf16.mxu1 %v8075_v17 }
 0x2a7   : > { %3321 = vmatmul.mubr.bf16.gmra.mxu1 %v9074_v60  ;;  %4998 = vmatprep.subr.bf16.mxu0 %v8078_v3  ;;  %v8121_v3 = vld [vmem:[%s11220_s3 + $0x230] ss:$8 sps:$4 sm:$0xff]  }
 0x2a8   : > { %4476 = vmatmul.mubr.bf16.gmra.mxu0 %v8976_v28  ;;  %3330 = vmatprep.mubr.bf16.mxu1 %v9119_v35 }
 0x2a9   : > { %3832 = vmatpush2.bf16.msra.mxu1 %v8073_v7  ;;  %4485 = vmatprep.mubr.bf16.mxu0 %v9023_v48 }
 0x2aa   : > { %4999 = vmatpush2.bf16.msra.mxu0 %v8076_v38  ;;  %3833 = vmatprep.subr.bf16.mxu1 %v8081_v9  ;;  %v8126_v9 = vld [vmem:[%s11220_s3 + $0x224] ss:$8 sps:$4 sm:$0xff]  }
 0x2ab   : > { %5000 = vmatprep.subr.bf16.mxu0 %v8084_v10 }
 0x2ad   : > { %3834 = vmatpush2.bf16.msra.mxu1 %v8079_v57 }
 0x2ae   : > { %5001 = vmatpush2.bf16.msra.mxu0 %v8082_v13  ;;  %3835 = vmatprep.subr.bf16.mxu1 %v8087_v15  ;;  %v8124_v13 = vld [vmem:[%s11220_s3 + $0x220] ss:$8 sps:$4 sm:$0xff]  }
 0x2af   : > { %3331 = vmatmul.mubr.bf16.gmra.mxu1 %v9122_v34  ;;  %5002 = vmatprep.subr.bf16.mxu0 %v8090_v21 }
 0x2b0   : > { %4486 = vmatmul.mubr.bf16.gmra.mxu0 %v9027_v23  ;;  %3839 = vmatprep.mubr.bf16.mxu1 %v8836_v32 }
 0x2b1   : > { %3836 = vmatpush2.bf16.msra.mxu1 %v8085_v29  ;;  %4495 = vmatprep.mubr.bf16.mxu0 %v9071_v20  ;;  %v9740_v29 = vpop.permute.xlu0 %5390 }
 0x2b2   : > { %5003 = vmatpush2.bf16.msra.mxu0 %v8088_v14  ;;  %3837 = vmatprep.subr.bf16.mxu1 %v8093_v31  ;;  %v8129_v14 = vld [vmem:[%s11220_s3 + $0x214] ss:$8 sps:$4 sm:$0xff]  }
 0x2b3   : > { %v9628_v37 = vpop.f32.mrf.mxu1  ;;  %5004 = vmatprep.subr.bf16.mxu0 %v8096_v19 }
 0x2b5   : > { %v9636_v0 = vpop.f32.mrf.mxu1  ;;  %3838 = vmatpush2.bf16.msra.mxu1 %v8091_v36  ;;  %v8127_v36 = vld [vmem:[%s11220_s3 + $0x210] ss:$8 sps:$4 sm:$0xff]  }
 0x2b6   : > { %5005 = vmatpush2.bf16.msra.mxu0 %v8094_v22  ;;  %4676 = vmatprep.subr.bf16.mxu1 %v8099_v11 }
 0x2b7   : > { %v9644_v42 = vpop.f32.mrf.mxu1  ;;  %5006 = vmatprep.subr.bf16.mxu0 %v8102_v16  ;;  %v9756_v16 = vpop.permute.xlu1 %5388 }
 0x2b8   : > { %3840 = vmatmul.mubr.bf16.vlgmr.msra.gmra.mxu1 %v8840_v33  ;;  %4496 = vmatmul.mubr.bf16.gmra.mxu0 %v9074_v60 }
 0x2b9   : > { %3849 = vmatprep.mubr.bf16.mxu1 %v8877_v18  ;;  %4505 = vmatprep.mubr.bf16.mxu0 %v9119_v35  ;;  %v9656_v44 = vpop.f32.mrf.mxu1 }
 0x2ba   : > { %4677 = vmatpush1.bf16.msra.mxu1 %v8097_v39  ;;  %5007 = vmatpush2.bf16.msra.mxu0 %v8100_v40  ;;  %v8132_v39 = vld [vmem:[%s11220_s3 + $0x204] ss:$8 sps:$4 sm:$0xff]  }
 0x2bb   : > { %4678 = vmatprep.subr.bf16.mxu1 %v8105_v43  ;;  %5008 = vmatprep.subr.bf16.mxu0 %v8108_v6  ;;  %v9766_v6 = vpop.permute.xlu0 %5466 }
 0x2bd   : > { %v9670_v47 = vpop.f32.mrf.mxu1  ;;  %v9672_v1 = vpop.f32.mrf.mxu0 }
 0x2be   : > { %4679 = vmatpush1.bf16.msra.mxu1 %v8103_v2  ;;  %5009 = vmatpush2.bf16.msra.mxu0 %v8106_v8  ;;  %v8130_v2 = vld [vmem:[%s11220_s3 + $0x200] ss:$8 sps:$4 sm:$0xff]  }
 0x2bf   : > { %v9680_v51 = vpop.f32.mrf.mxu1  ;;  %v9682_v30 = vpop.f32.mrf.mxu0  ;;  %4680 = vmatprep.subr.bf16.mxu1 %v8111_v54  ;;  %5010 = vmatprep.subr.bf16.mxu0 %v8114_v26  ;;  %v8135_v26 = vld [vmem:[%s11220_s3 + $0x2f4] ss:$8 sps:$4 sm:$0xff]  }
 0x2c0   : > { %3850 = vmatmul.mubr.bf16.gmra.mxu1 %v8879_v45  ;;  %4506 = vmatmul.mubr.bf16.gmra.mxu0 %v9122_v34 }
 0x2c1   : > { %v9692_v53 = vpop.f32.mrf.mxu1  ;;  %v9694_v50 = vpop.f32.mrf.mxu0  ;;  %3859 = vmatprep.mubr.bf16.mxu1 %v8925_v58  ;;  %5014 = vmatprep.mubr.bf16.mxu0 %v8836_v32 }
 0x2c2   : > { %4681 = vmatpush1.bf16.msra.mxu1 %v8109_v24  ;;  %5011 = vmatpush2.bf16.msra.mxu0 %v8112_v49 }
 0x2c3   : > { %v9704_v56 = vpop.f32.mrf.mxu1  ;;  %v9706_v61 = vpop.f32.mrf.mxu0  ;;  %4682 = vmatprep.subr.bf16.mxu1 %v8117_v52  ;;  %5012 = vmatprep.subr.bf16.mxu0 %v8120_v12  ;;  %v8133_v12 = vld [vmem:[%s11220_s3 + $0x2f0] ss:$8 sps:$4 sm:$0xff]  }
 0x2c4   : > { %v9785_v52 = vpop.permute.xlu1 %5464 }
 0x2c5   : > { %v9711_v63 = vpop.f32.mrf.mxu1  ;;  %v9713_v17 = vpop.f32.mrf.mxu0 }
 0x2c6   : > { %4683 = vmatpush1.bf16.msra.mxu1 %v8115_v55  ;;  %5013 = vmatpush2.bf16.msra.mxu0 %v8118_v25 }
 0x2c7   : > { %v9718_v7 = vpop.f32.mrf.mxu1  ;;  %v9720_v38 = vpop.f32.mrf.mxu0  ;;  %4684 = vmatprep.subr.bf16.mxu1 %v8123_v62 }
 0x2c8   : > { %3860 = vmatmul.mubr.bf16.gmra.mxu1 %v8929_v59  ;;  %v9794_v62 = vpop.permute.xlu0 %7671 }
 0x2c9   : > { %v9726_v10 = vpop.f32.mrf.mxu1  ;;  %v9728_v57 = vpop.f32.mrf.mxu0  ;;  %5015 = vmatmul.mubr.bf16.vlgmr.msra.gmra.mxu0 %v8840_v33  ;;  %3869 = vmatprep.mubr.bf16.mxu1 %v8973_v27 }
 0x2ca   : > { %4685 = vmatpush1.bf16.msra.mxu1 %v8121_v3  ;;  %5024 = vmatprep.mubr.bf16.mxu0 %v8877_v18  ;;  %v8138_v3 = vld [vmem:[%s11220_s3 + $0x2e4] ss:$8 sps:$4 sm:$0xff]  }
 0x2cb   : > { %v9736_v15 = vpop.f32.mrf.mxu1  ;;  %v9738_v21 = vpop.f32.mrf.mxu0  ;;  %4686 = vmatprep.subr.bf16.mxu1 %v8126_v9 }
 0x2cd   : > { %v9745_v31 = vpop.f32.mrf.mxu1  ;;  %v9747_v19 = vpop.f32.mrf.mxu0 }
 0x2ce   : > { %11270 = vst [vmem:[#allocation13_spill] sm:$0xff] %v9745_v31  ;;  %4687 = vmatpush1.bf16.msra.mxu1 %v8124_v13 }
 0x2cf   : > { %v9752_v22 = vpop.f32.mrf.mxu1  ;;  %v9754_v11 = vpop.f32.mrf.mxu0  ;;  %4688 = vmatprep.subr.bf16.mxu1 %v8129_v14 }
 0x2d0   : > { %11271 = vst [vmem:[#allocation14_spill] sm:$0xff] %v9752_v22  ;;  %3870 = vmatmul.mubr.bf16.gmra.mxu1 %v8976_v28  ;;  %v9804_v14 = vpop.permute.xlu1 %5396 }
 0x2d1   : > { %v9762_v40 = vpop.f32.mrf.mxu1  ;;  %v9764_v43 = vpop.f32.mrf.mxu0  ;;  %5025 = vmatmul.mubr.bf16.gmra.mxu0 %v8879_v45  ;;  %3879 = vmatprep.mubr.bf16.mxu1 %v9023_v48 }
 0x2d2   : > { %11272 = vst [vmem:[#allocation15_spill] sm:$0xff] %v9762_v40  ;;  %4689 = vmatpush1.bf16.msra.mxu1 %v8127_v36  ;;  %5034 = vmatprep.mubr.bf16.mxu0 %v8925_v58  ;;  %v8136_v36 = vld [vmem:[%s11220_s3 + $0x2e0] ss:$8 sps:$4 sm:$0xff]  }
 0x2d3   : > { %v9774_v8 = vpop.f32.mrf.mxu1  ;;  %v9776_v54 = vpop.f32.mrf.mxu0  ;;  %4690 = vmatprep.subr.bf16.mxu1 %v8132_v39 }
 0x2d4   : > { %11273 = vst [vmem:[#allocation16_spill] sm:$0xff] %v9774_v8  ;;  %11274 = vst [vmem:[#allocation17_spill] sm:$0xff] %v9776_v54  ;;  %v7673_v8 = vunpack.i.l.bf16 %v9794_v62  ;;  %v10017_v54 = vld [vmem:[#allocation2 + $0x58] sm:$0xff] }
 0x2d5   : > { %v9781_v24 = vpop.f32.mrf.mxu1  ;;  %v9783_v49 = vpop.f32.mrf.mxu0  ;;  %11320 = vst [vmem:[#allocation59_spill] sm:$0xff] %v10017_v54 }
 0x2d6   : > { %11275 = vst [vmem:[#allocation18_spill] sm:$0xff] %v9781_v24  ;;  %11276 = vst [vmem:[#allocation19_spill] sm:$0xff] %v9783_v49  ;;  %4691 = vmatpush1.bf16.msra.mxu1 %v8130_v2  ;;  %v9832_v24 = vpop.permute.xlu1 %5472  ;;  %v9903_v40 = vrot.slane %v7673_v8, 4  ;;  %v9958_v49 = vld [vmem:[#allocation2 + $0x20] sm:$0xff] }
 0x2d7   : > { %v9790_v55 = vpop.f32.mrf.mxu1  ;;  %v9792_v25 = vpop.f32.mrf.mxu0  ;;  %4692 = vmatprep.subr.bf16.mxu1 %v8135_v26 }
 0x2d8   : > { %11277 = vst [vmem:[#allocation20_spill] sm:$0xff] %v9790_v55  ;;  %11278 = vst [vmem:[#allocation21_spill] sm:$0xff] %v9792_v25  ;;  %3880 = vmatmul.mubr.bf16.gmra.mxu1 %v9027_v23  ;;  %v9816_v26 = vpop.permute.xlu0 %5398 }
 0x2d9   : > { %v9800_v9 = vpop.f32.mrf.mxu1  ;;  %v9802_v13 = vpop.f32.mrf.mxu0  ;;  %5035 = vmatmul.mubr.bf16.gmra.mxu0 %v8929_v59  ;;  %3889 = vmatprep.mubr.bf16.mxu1 %v9071_v20 }
 0x2da   : > { %11279 = vst [vmem:[#allocation22_spill] sm:$0xff] %v9800_v9  ;;  %11280 = vst [vmem:[#allocation23_spill] sm:$0xff] %v9802_v13  ;;  %4693 = vmatpush2.bf16.msra.mxu1 %v8133_v12  ;;  %5044 = vmatprep.mubr.bf16.mxu0 %v8973_v27  ;;  %v8141_v9 = vld [vmem:[%s11220_s3 + $0x2d4] ss:$8 sps:$4 sm:$0xff]   ;;  %v8139_v27 = vld [vmem:[%s11220_s3 + $0x2d0] ss:$8 sps:$4 sm:$0xff]  }
 0x2db   : > { %v9812_v39 = vpop.f32.mrf.mxu1  ;;  %v9814_v2 = vpop.f32.mrf.mxu0  ;;  %4694 = vmatprep.subr.bf16.mxu1 %v8138_v3  ;;  %v8144_v3 = vld [vmem:[%s11220_s3 + $0x2c4] ss:$8 sps:$4 sm:$0xff]  }
 0x2dc   : > { %11281 = vst [vmem:[#allocation24_spill] sm:$0xff] %v9812_v39  ;;  %11282 = vst [vmem:[#allocation25_spill] sm:$0xff] %v9814_v2 }
 0x2dd   : > { %v9821_v59 = vpop.f32.mrf.mxu1  ;;  %v9823_v12 = vpop.f32.mrf.mxu0 }
 0x2de   : > { %11283 = vst [vmem:[#allocation26_spill] sm:$0xff] %v9821_v59  ;;  %11284 = vst [vmem:[#allocation27_spill] sm:$0xff] %v9823_v12  ;;  %4695 = vmatpush2.bf16.msra.mxu1 %v8136_v36  ;;  %v9842_v12 = vpop.permute.xlu0 %5474 }
 0x2df   : > { %v9828_v55 = vpop.f32.mrf.mxu1  ;;  %v9830_v39 = vpop.f32.mrf.mxu0  ;;  %4696 = vmatprep.subr.bf16.mxu1 %v8141_v9  ;;  %v8142_v9 = vld [vmem:[%s11220_s3 + $0x2c0] ss:$8 sps:$4 sm:$0xff]  }
 0x2e0   : > { %11285 = vst [vmem:[#allocation28_spill] sm:$0xff] %v9828_v55  ;;  %11286 = vst [vmem:[#allocation29_spill] sm:$0xff] %v9830_v39  ;;  %3890 = vmatmul.mubr.bf16.gmra.mxu1 %v9074_v60 }
 0x2e1   : > { %v9838_v59 = vpop.f32.mrf.mxu1  ;;  %v9840_v36 = vpop.f32.mrf.mxu0  ;;  %5045 = vmatmul.mubr.bf16.gmra.mxu0 %v8976_v28  ;;  %3899 = vmatprep.mubr.bf16.mxu1 %v9119_v35 }
 0x2e2   : > { %11287 = vst [vmem:[#allocation30_spill] sm:$0xff] %v9838_v59  ;;  %11288 = vst [vmem:[#allocation31_spill] sm:$0xff] %v9840_v36  ;;  %4697 = vmatpush2.bf16.msra.mxu1 %v8139_v27  ;;  %5054 = vmatprep.mubr.bf16.mxu0 %v9023_v48  ;;  %v8147_v59 = vld [vmem:[%s11220_s3 + $0x2b4] ss:$8 sps:$4 sm:$0xff]   ;;  %v9861_v27 = vpop.permute.xlu1 %5392  ;;  %v8145_v48 = vld [vmem:[%s11220_s3 + $0x2b0] ss:$8 sps:$4 sm:$0xff]  }
 0x2e3   : > { %v9850_v55 = vpop.f32.mrf.mxu1  ;;  %v9852_v39 = vpop.f32.mrf.mxu0  ;;  %4698 = vmatprep.subr.bf16.mxu1 %v8144_v3 }
 0x2e4   : > { %11289 = vst [vmem:[#allocation32_spill] sm:$0xff] %v9850_v55  ;;  %11290 = vst [vmem:[#allocation33_spill] sm:$0xff] %v9852_v39  ;;  %v9870_v3 = vpop.permute.xlu0 %5394  ;;  %v7674_v39 = vunpack.i.h.bf16 %v9794_v62  ;;  %v8153_v62 = vld [vmem:[%s11220_s3 + $0x294] ss:$8 sps:$4 sm:$0xff]  }
 0x2e5   : > { %v9857_v36 = vpop.f32.mrf.mxu1  ;;  %v9859_v28 = vpop.f32.mrf.mxu0  ;;  %11295 = vst [vmem:[#allocation38_spill] sm:$0xff] %v9870_v3 }
 0x2e6   : > { %11291 = vst [vmem:[#allocation34_spill] sm:$0xff] %v9857_v36  ;;  %11292 = vst [vmem:[#allocation35_spill] sm:$0xff] %v9859_v28  ;;  %4699 = vmatpush2.bf16.msra.mxu1 %v8142_v9  ;;  %v8150_v36 = vld [vmem:[%s11220_s3 + $0x2a4] ss:$8 sps:$4 sm:$0xff]   ;;  %v9901_v13 = vrot.slane %v7674_v39, 4 }
 0x2e7   : > { %v9866_v2 = vpop.f32.mrf.mxu1  ;;  %v9868_v55 = vpop.f32.mrf.mxu0  ;;  %4700 = vmatprep.subr.bf16.mxu1 %v8147_v59  ;;  %v8148_v59 = vld [vmem:[%s11220_s3 + $0x2a0] ss:$8 sps:$4 sm:$0xff]  }
 0x2e8   : > { %11293 = vst [vmem:[#allocation36_spill] sm:$0xff] %v9866_v2  ;;  %11294 = vst [vmem:[#allocation37_spill] sm:$0xff] %v9868_v55  ;;  %3900 = vmatmul.mubr.bf16.gmra.mxu1 %v9122_v34 }
 0x2e9   : > { %v9876_v28 = vpop.f32.mrf.mxu1  ;;  %v9878_v9 = vpop.f32.mrf.mxu0  ;;  %5055 = vmatmul.mubr.bf16.gmra.mxu0 %v9027_v23  ;;  %3909 = vmatprep.mubr.bf16.mxu1 %v9149_v41 }
 0x2ea   : > { %11296 = vst [vmem:[#allocation39_spill] sm:$0xff] %v9876_v28  ;;  %11297 = vst [vmem:[#allocation40_spill] sm:$0xff] %v9878_v9  ;;  %4701 = vmatpush2.bf16.msra.mxu1 %v8145_v48  ;;  %5064 = vmatprep.mubr.bf16.mxu0 %v9071_v20  ;;  %v9892_v9 = vpop.permute.xlu1 %5468  ;;  %v8174_v20 = vld [vmem:[#allocation2 + $0x8] sm:$0xff] }
 0x2eb   : > { %v9888_v2 = vpop.f32.mrf.mxu1  ;;  %v9890_v28 = vpop.f32.mrf.mxu0  ;;  %4702 = vmatprep.subr.bf16.mxu1 %v8150_v36  ;;  %v5353_v55 = vrot.slane %v8174_v20, 4  ;;  %v8151_v36 = vld [vmem:[%s11220_s3 + $0x290] ss:$8 sps:$4 sm:$0xff]   ;;  %v8156_v20 = vld [vmem:[%s11220_s3 + $0x284] ss:$8 sps:$4 sm:$0xff]  }
 0x2ec   : > { %11298 = vst [vmem:[#allocation41_spill] sm:$0xff] %v9888_v2  ;;  %11299 = vst [vmem:[#allocation42_spill] sm:$0xff] %v9890_v28  ;;  %v9905_v2 = vpop.permute.xlu0 %5470 }
 0x2ed   : > { %v9897_v23 = vpop.f32.mrf.mxu1  ;;  %v9899_v48 = vpop.f32.mrf.mxu0 }
 0x2ee   : > { %11300 = vst [vmem:[#allocation43_spill] sm:$0xff] %v9897_v23  ;;  %11301 = vst [vmem:[#allocation44_spill] sm:$0xff] %v9899_v48  ;;  %4703 = vmatpush2.bf16.msra.mxu1 %v8148_v59  ;;  %v9922_v59 = vpop.permute.xlu1 %5404  ;;  %v5449_v23 = vmax.bf16 %v9901_v13, %v5353_v55  ;;  %v5448_v48 = vmax.bf16 %v9903_v40, %v5353_v55  ;;  %v8157_v55 = vld [vmem:[%s11222_s5 + $0x18] sm:$0xff]  }
 0x2ef   : > { %v9910_v28 = vpop.f32.mrf.mxu1  ;;  %v9912_v25 = vpop.f32.mrf.mxu0  ;;  %4704 = vmatprep.subr.bf16.mxu1 %v8153_v62  ;;  %v8154_v62 = vld [vmem:[%s11220_s3 + $0x280] ss:$8 sps:$4 sm:$0xff]  }
 0x2f0   : > { %11302 = vst [vmem:[#allocation45_spill] sm:$0xff] %v9910_v28  ;;  %11303 = vst [vmem:[#allocation46_spill] sm:$0xff] %v9912_v25  ;;  %3910 = vmatmul.mubr.bf16.gmra.mxu1 %v9166_v46 }
 0x2f1   : > { %v9918_v8 = vpop.f32.mrf.mxu1  ;;  %v9920_v39 = vpop.f32.mrf.mxu0  ;;  %5065 = vmatmul.mubr.bf16.gmra.mxu0 %v9074_v60  ;;  %4708 = vmatprep.mubr.bf16.mxu1 %v9149_v41  ;;  %v9941_v60 = vld [vmem:[#allocation2 + $0x18] sm:$0xff] }
 0x2f2   : > { %11304 = vst [vmem:[#allocation47_spill] sm:$0xff] %v9918_v8  ;;  %11305 = vst [vmem:[#allocation48_spill] sm:$0xff] %v9920_v39  ;;  %4705 = vmatpush2.bf16.msra.mxu1 %v8151_v36  ;;  %5074 = vmatprep.mubr.bf16.mxu0 %v9119_v35  ;;  %v9939_v39 = vpop.permute.xlu0 %5406  ;;  %v5529_v36 = vmax.bf16 %v9941_v60, %v5449_v23  ;;  %v9944_v35 = vld [vmem:[#allocation2 + $0x10] sm:$0xff]  ;;  %v9953_v22 = vpop.permute.xlu1 %5480 }
 0x2f3   : > { %v9932_v8 = vpop.f32.mrf.mxu1  ;;  %v9934_v28 = vpop.f32.mrf.mxu0  ;;  %4706 = vmatprep.subr.bf16.mxu1 %v8156_v20  ;;  %11308 = vst [vmem:[#allocation51_spill] sm:$0xff] %v9939_v39  ;;  %v5528_v25 = vmax.bf16 %v9944_v35, %v5448_v48  ;;  %v5608_v45 = vrot.slane %v9944_v35, 4  ;;  %11310 = vst [vmem:[#allocation53_spill] sm:$0xff] %v9953_v22  ;;  %v8158_v48 = vld [vmem:[%s11222_s5 + $0x10] sm:$0xff]   ;;  %v11312_v22 = vrot.slane %v9861_v27, 4 }
 0x2f4   : > { %11306 = vst [vmem:[#allocation49_spill] sm:$0xff] %v9932_v8  ;;  %11307 = vst [vmem:[#allocation50_spill] sm:$0xff] %v9934_v28  ;;  %v5545_v39 = vmax.bf16 %v5529_v36, %v9766_v6 }
 0x2f5   : > { %v9949_v28 = vpop.f32.mrf.mxu0  ;;  %v5544_v8 = vmax.bf16 %v5528_v25, %v9785_v52 }
 0x2f6   : > { %v2472_v58 = vpop.f32.mrf.mxu1  ;;  %4707 = vmatpush2.bf16.msra.mxu1 %v8154_v62  ;;  %11309 = vst [vmem:[#allocation52_spill] sm:$0xff] %v9949_v28  ;;  %v11237_v62 = vrot.slane %v9958_v49, 4 }
 0x2f7   : > { %v2473_v20 = vadd.f32 %v2472_v58, %v9628_v37  ;;  %7602 = vmatprep.subr.bf16.mxu1 %v8157_v55  ;;  %v9984_v36 = vpop.f32.mrf.mxu0  ;;  %v5640_v31 = vmax.bf16 %v5608_v45, %v5544_v8  ;;  %v11322_v8 = vrot.slane %v9756_v16, 4 }
 0x2f8   : > { %v2474_v23 = vpop.f32.mrf.mxu1  ;;  %v9974_v58 = vmax.bf16 %v11312_v22, %v11237_v62  ;;  %11314 = vst [vmem:[#allocation56_spill] sm:$0xff] %v9984_v36  ;;  %v9990_v62 = vld [vmem:[#allocation2 + $0x38] sm:$0xff] }
 0x2f9   : > { %v9963_v37 = vadd.f32 %v9672_v1, %v2473_v20  ;;  %v2475_v35 = vadd.f32 %v2474_v23, %v9636_v0  ;;  %4709 = vmatmul.mubr.bf16.vlgmr.msra.gmra.mxu1 %v9166_v46  ;;  %5075 = vmatmul.mubr.bf16.gmra.mxu0 %v9122_v34  ;;  %v9976_v1 = vld [vmem:[#allocation2 + $0x28] sm:$0xff]  ;;  %v9979_v20 = vpop.permute.xlu0 %5482  ;;  %v10010_v23 = vld [vmem:[#allocation2 + $0x40] sm:$0xff]  ;;  %v10027_v36 = vpop.f32.mrf.mxu0 }
 0x2fa   : > { %v2476_v28 = vpop.f32.mrf.mxu1  ;;  %11313 = vst [vmem:[#allocation55_spill] sm:$0xff] %v9979_v20  ;;  %4718 = vmatprep.mubr.bf16.mxu1 %v8795_v4  ;;  %7603 = vmatpush3.bf16.msra.mxu1 %v8157_v55  ;;  %v9993_v20 = vld [vmem:[#allocation2 + $0x48] sm:$0xff]  ;;  %11321 = vst [vmem:[#allocation60_spill] sm:$0xff] %v10027_v36 }
 0x2fb   : > { %11311 = vst [vmem:[#allocation54_spill] sm:$0xff] %v9963_v37  ;;  %v2938_v25 = vadd.f32 %v9682_v30, %v2475_v35  ;;  %v2477_v34 = vadd.f32 %v2476_v28, %v9644_v42  ;;  %v9987_v37 = vld [vmem:[#allocation2 + $0x30] sm:$0xff]  ;;  %11315 = vst [vmem:[#allocation57_spill] sm:$0xff] %v9993_v20  ;;  %7604 = vmatprep.subr.bf16.mxu1 %v8158_v48  ;;  %v8159_v28 = vld [vmem:[%s11222_s5 + $0x8] sm:$0xff]   ;;  %5084 = vmatprep.mubr.bf16.mxu0 %v9149_v41  ;;  %v11316_v30 = vrot.slane %v9976_v1, 4  ;;  %v10013_v20 = vpop.permute.xlu1 %5400 }
 0x2fc   : > { %v2478_v55 = vpop.f32.mrf.mxu1  ;;  %v11317_v35 = vrot.slane %v9870_v3, 4  ;;  %v11319_v41 = vrot.slane %v9941_v60, 4  ;;  %v10054_v3 = vld [vmem:[#allocation2 + $0x78] sm:$0xff] }
 0x2fd   : > { %2971 = vst.msk [vmem:[#allocation3 + $0x8] sm:$0xff] %vm2970_vm0, %v2938_v25  ;;  %v10007_v0 = vadd.f32 %v9694_v50, %v2477_v34  ;;  %v2479_v4 = vadd.f32 %v2478_v55, %v9656_v44  ;;  %v5532_v50 = vmax.bf16 %v9987_v37, %v9974_v58  ;;  %v10022_v34 = vld [vmem:[#allocation2 + $0x50] sm:$0xff]  ;;  %v10051_v44 = vld [vmem:[#allocation2 + $0x60] sm:$0xff] }
 0x2fe   : > { %v5453_v22 = vmax.bf16 %v11317_v35, %v11316_v30  ;;  %v5641_v42 = vmax.bf16 %v5545_v39, %v11319_v41  ;;  %v2482_v25 = vpop.f32.mrf.mxu1  ;;  %7605 = vmatpush3.bf16.msra.mxu1 %v8158_v48  ;;  %v5450_v39 = vmax.bf16 %v5608_v45, %v11322_v8  ;;  %v5560_v41 = vrot.slane %v9785_v52, 4 }
 0x2ff   : > { %11318 = vst [vmem:[#allocation58_spill] sm:$0xff] %v10007_v0  ;;  %v2940_v55 = vadd.f32 %v9706_v61, %v2479_v4  ;;  %v2483_v35 = vadd.f32 %v2482_v25, %v9670_v47  ;;  %v5561_v30 = vrot.slane %v9766_v6, 4  ;;  %v10033_v0 = vld [vmem:[#allocation2 + $0x68] sm:$0xff]  ;;  %7606 = vmatprep.subr.bf16.mxu1 %v8159_v28  ;;  %v8160_v47 = vld [vmem:[%s11222_s5] sm:$0xff]   ;;  %v11324_v61 = vrot.slane %v9941_v60, 4  ;;  %v10044_v25 = vpop.permute.xlu0 %5402 }
 0x300   : > { %11323 = vst [vmem:[#allocation61_spill] sm:$0xff] %v10033_v0  ;;  %v2484_v54 = vpop.f32.mrf.mxu1  ;;  %v11325_v48 = vrot.slane %v9740_v29, 4  ;;  %v5533_v45 = vmax.bf16 %v9990_v62, %v5453_v22  ;;  %v5656_v60 = vmax.bf16 %v5640_v31, %v5560_v41 }
 0x301   : > { %2973 = vst.msk [vmem:[#allocation3 + $0x18] sm:$0xff] %vm2970_vm0, %v2940_v55  ;;  %v10048_v8 = vadd.f32 %v9713_v17, %v2483_v35  ;;  %v2485_v58 = vadd.f32 %v2484_v54, %v9680_v51  ;;  %v5657_v0 = vmax.bf16 %v5641_v42, %v5561_v30  ;;  %4719 = vmatmul.mubr.bf16.gmra.mxu1 %v8797_v5  ;;  %v10060_v55 = vld [vmem:[#allocation2 + $0x70] sm:$0xff]  ;;  %v10066_v42 = vpop.f32.mrf.mxu0  ;;  %v10069_v35 = vpop.permute.xlu1 %5476 }
 0x302   : > { %v5451_v4 = vmax.bf16 %v11325_v48, %v11324_v61  ;;  %v2486_v22 = vpop.f32.mrf.mxu1  ;;  %5085 = vmatmul.mubr.bf16.gmra.mxu0 %v9166_v46  ;;  %v5548_v17 = vmax.bf16 %v5532_v50, %v9832_v24  ;;  %4728 = vmatprep.mubr.bf16.mxu1 %v8836_v32  ;;  %v5530_v5 = vmax.bf16 %v9958_v49, %v5450_v39  ;;  %v10075_v48 = vld [vmem:[#allocation2 + $0x88] sm:$0xff]  ;;  %v11329_v61 = vrot.slane %v9990_v62, 4 }
 0x303   : > { %11326 = vst [vmem:[#allocation62_spill] sm:$0xff] %v10048_v8  ;;  %v2942_v54 = vadd.f32 %v9720_v38, %v2485_v58  ;;  %v2487_v31 = vadd.f32 %v2486_v22, %v9692_v53  ;;  %7607 = vmatpush3.bf16.msra.mxu1 %v8159_v28  ;;  %v5513_v46 = vmax.bf16 %v9766_v6, %v9901_v13  ;;  %v11249_v13 = vrot.slane %v9804_v14, 4 }
 0x304   : > { %v5512_v50 = vmax.bf16 %v9785_v52, %v9903_v40  ;;  %v2488_v38 = vpop.f32.mrf.mxu1  ;;  %7608 = vmatprep.subr.bf16.mxu1 %v8160_v47  ;;  %v5531_v53 = vmax.bf16 %v9976_v1, %v5451_v4  ;;  %v5549_v28 = vmax.bf16 %v5533_v45, %v9842_v12  ;;  %v5546_v40 = vmax.bf16 %v5530_v5, %v9892_v9  ;;  %v10092_v45 = vld [vmem:[#allocation2 + $0x80] sm:$0xff] }
 0x305   : > { %2975 = vst.msk [vmem:[#allocation3 + $0x28] sm:$0xff] %vm2970_vm0, %v2942_v54  ;;  %v10082_v39 = vadd.f32 %v9728_v57, %v2487_v31  ;;  %v2489_v6 = vadd.f32 %v2488_v38, %v9704_v56  ;;  %v10087_v52 = vcombine.low %v5656_v60, %v5657_v0  ;;  %v11247_v58 = vrot.slane %v9816_v26, 4  ;;  %v10095_v57 = vpop.permute.xlu0 %5478 }
 0x306   : > { %v2492_v22 = vpop.f32.mrf.mxu1  ;;  %v11328_v4 = vrot.slane %v9987_v37, 4  ;;  %v11246_v0 = vrot.slane %v10013_v20, 4  ;;  %v10102_v60 = vmax.bf16 %v5561_v30, %v5513_v46  ;;  %v10104_v5 = vmax.bf16 %v5560_v41, %v5512_v50 }
 0x307   : > { %11327 = vst [vmem:[#allocation63_spill] sm:$0xff] %v10082_v39  ;;  %v2944_v56 = vadd.f32 %v9738_v21, %v2489_v6  ;;  %v2493_v31 = vadd.f32 %v2492_v22, %v9711_v63  ;;  %v10099_v38 = vpop.f32.mrf.mxu0  ;;  %7609 = vmatpush3.bf16.msra.mxu1 %v8160_v47  ;;  %v5564_v54 = vrot.slane %v9832_v24, 4  ;;  %v5645_v36 = vmax.bf16 %v5549_v28, %v11329_v61  ;;  %v11370_v39 = vld [vmem:[#allocation59_spill] sm:$0xff] }
 0x308   : > { %v5644_v32 = vmax.bf16 %v5548_v17, %v11328_v4  ;;  %v5547_v17 = vmax.bf16 %v5531_v53, %v9905_v2  ;;  %v2494_v4 = vpop.f32.mrf.mxu1  ;;  %v11332_v30 = vrot.slane %v9987_v37, 4  ;;  %v11333_v46 = vrot.slane %v9958_v49, 4  ;;  %v10123_v53 = vpop.permute.xlu1 %5412 }
 0x309   : > { %2977 = vst.msk [vmem:[#allocation3 + $0x38] sm:$0xff] %vm2970_vm0, %v2944_v56  ;;  %v10112_v63 = vadd.f32 %v9747_v19, %v2493_v31  ;;  %v2495_v21 = vadd.f32 %v2494_v4, %v9718_v7  ;;  %v10115_v47 = vpop.f32.mrf.mxu0  ;;  %11334 = vst [vmem:[#allocation66_spill] sm:$0xff] %v10123_v53  ;;  %v5716_v61 = vshll.u32 %v10087_v52, 16  ;;  %v11335_v28 = vrot.slane %v9990_v62, 4  ;;  %4729 = vmatmul.mubr.bf16.gmra.mxu1 %v8840_v33 }
 0x30a   : > { %11331 = vst [vmem:[#allocation65_spill] sm:$0xff] %v10115_v47  ;;  %v5454_v41 = vmax.bf16 %v11249_v13, %v11332_v30  ;;  %v5642_v50 = vmax.bf16 %v5546_v40, %v11333_v46  ;;  %v2496_v7 = vpop.f32.mrf.mxu1  ;;  %v5660_v37 = vmax.bf16 %v5644_v32, %v5564_v54  ;;  %v11250_v6 = vrot.slane %v9842_v12, 4  ;;  %4738 = vmatprep.mubr.bf16.mxu1 %v8877_v18 }
 0x30b   : > { %11330 = vst [vmem:[#allocation64_spill] sm:$0xff] %v10112_v63  ;;  %v10130_v19 = vmax.bf16 %v11247_v58, %v11335_v28  ;;  %v2946_v49 = vadd.f32 %v9754_v11, %v2495_v21  ;;  %v2497_v40 = vadd.f32 %v2496_v7, %v9726_v10  ;;  %v10137_v22 = vpop.f32.mrf.mxu0  ;;  %v5562_v62 = vrot.slane %v9892_v9, 4  ;;  %v10150_v11 = vpop.permute.xlu0 %5414 }
 0x30c   : > { %v11248_v56 = vrot.slane %v9922_v59, 4  ;;  %v11336_v31 = vrot.slane %v10010_v23, 4  ;;  %v11337_v32 = vrot.slane %v9976_v1, 4  ;;  %v2498_v30 = vpop.f32.mrf.mxu1  ;;  %v5714_v18 = vshrl.u32 %v10087_v52, 16 }
 0x30d   : > { %v5661_v10 = vmax.bf16 %v5645_v36, %v11250_v6  ;;  %2979 = vst.msk [vmem:[#allocation3 + $0x48] sm:$0xff] %vm2970_vm0, %v2946_v49  ;;  %v10154_v21 = vadd.f32 %v9764_v43, %v2497_v40  ;;  %v2499_v46 = vadd.f32 %v2498_v30, %v9736_v15  ;;  %v10157_v28 = vpop.f32.mrf.mxu0  ;;  %v5534_v1 = vmax.bf16 %v10010_v23, %v5454_v41  ;;  %v11341_v49 = vld [vmem:[#allocation17_spill] sm:$0xff] }
 0x30e   : > { %v5456_v33 = vmax.bf16 %v11246_v0, %v11336_v31  ;;  %v5643_v4 = vmax.bf16 %v5547_v17, %v11337_v32  ;;  %11339 = vst [vmem:[#allocation68_spill] sm:$0xff] %v10157_v28  ;;  %v5658_v17 = vmax.bf16 %v5642_v50, %v5562_v62  ;;  %v5718_v7 = vrot.slane %v5716_v61, 1  ;;  %v2502_v31 = vpop.f32.mrf.mxu1  ;;  %v11342_v40 = vld [vmem:[#allocation13_spill] sm:$0xff] }
 0x30f   : > { %11338 = vst [vmem:[#allocation67_spill] sm:$0xff] %v10154_v21  ;;  %v5563_v52 = vrot.slane %v9905_v2, 4  ;;  %v11340_v36 = vrot.slane %v9861_v27, 4  ;;  %v10164_v0 = vcombine.low %v5660_v37, %v5661_v10  ;;  %v2948_v43 = vadd.f32 %v11341_v49, %v2499_v46  ;;  %v10168_v15 = vpop.f32.mrf.mxu0  ;;  %v10180_v27 = vpop.permute.xlu1 %5408  ;;  %v11345_v46 = vld [vmem:[#allocation57_spill] sm:$0xff]  ;;  %v11348_v49 = vld [vmem:[#allocation14_spill] sm:$0xff] }
 0x310   : > { %v2503_v58 = vadd.f32 %v2502_v31, %v11342_v40  ;;  %v11343_v30 = vrot.slane %v9756_v16, 4  ;;  %v11344_v50 = vrot.slane %v10022_v34, 4  ;;  %v2504_v10 = vpop.f32.mrf.mxu1  ;;  %v5535_v31 = vmax.bf16 %v11345_v46, %v10130_v19  ;;  %v11346_v16 = vld [vmem:[#allocation19_spill] sm:$0xff]  ;;  %v11351_v19 = vld [vmem:[#allocation4_spill] sm:$0xff] }
 0x311   : > { %v5516_v32 = vmax.bf16 %v9832_v24, %v11340_v36  ;;  %v5536_v24 = vmax.bf16 %v10022_v34, %v5456_v33  ;;  %v5659_v37 = vmax.bf16 %v5643_v4, %v5563_v52  ;;  %2981 = vst.msk [vmem:[#allocation3 + $0x58] sm:$0xff] %vm2970_vm0, %v2948_v43  ;;  %v2505_v40 = vadd.f32 %v2504_v10, %v11348_v49  ;;  %v10204_v10 = vpop.permute.xlu0 %5410  ;;  %v11354_v49 = vld [vmem:[#allocation15_spill] sm:$0xff] }
 0x312   : > { %v5514_v41 = vmax.bf16 %v9892_v9, %v11343_v30  ;;  %v10177_v61 = vmax.bf16 %v11248_v56, %v11344_v50  ;;  %v10187_v9 = vadd.f32 %v11346_v16, %v2503_v58  ;;  %v10190_v30 = vpop.f32.mrf.mxu0  ;;  %v5550_v33 = vmax.bf16 %v5534_v1, %v10069_v35  ;;  %4739 = vmatmul.mubr.bf16.gmra.mxu1 %v11351_v19  ;;  %v2506_v13 = vpop.f32.mrf.mxu1  ;;  %v11352_v16 = vld [vmem:[#allocation5_spill] sm:$0xff] }
 0x313   : > { %11349 = vst [vmem:[#allocation13_spill] sm:$0xff] %v10190_v30  ;;  %v11350_v50 = vrot.slane %v9740_v29, 4  ;;  %v10196_v56 = vcombine.low %v5658_v17, %v5659_v37  ;;  %v10199_v6 = vor.u32 %v5718_v7, %v5714_v18  ;;  %v10201_v43 = vmax.bf16 %v5564_v54, %v5516_v32  ;;  %4748 = vmatprep.mubr.bf16.mxu1 %v11352_v16  ;;  %v11353_v1 = vld [vmem:[#allocation21_spill] sm:$0xff]  ;;  %v11356_v32 = vld [vmem:[#allocation38_spill] sm:$0xff]  ;;  %v11358_v16 = vld [vmem:[#allocation51_spill] sm:$0xff]  ;;  %v10236_v36 = vpop.permute.xlu1 %5484 }
 0x314   : > { %11347 = vst [vmem:[#allocation17_spill] sm:$0xff] %v10187_v9  ;;  %v5729_v58 = vshll.u32 %v10164_v0, 16  ;;  %v2950_v29 = vadd.f32 %v11353_v1, %v2505_v40  ;;  %v10209_v17 = vpop.f32.mrf.mxu0  ;;  %v10211_v37 = vmax.bf16 %v5562_v62, %v5514_v41  ;;  %v5538_v18 = vmax.bf16 %v10051_v44, %v10177_v61  ;;  %v11355_v54 = vld [vmem:[#allocation53_spill] sm:$0xff]  ;;  %v2508_v51 = vpop.f32.mrf.mxu1  ;;  %v11361_v62 = vld [vmem:[#allocation23_spill] sm:$0xff]  ;;  %v11363_v61 = vld [vmem:[#allocation16_spill] sm:$0xff] }
 0x315   : > { %v5515_v4 = vmax.bf16 %v9905_v2, %v11350_v50  ;;  %v2507_v2 = vadd.f32 %v2506_v13, %v11354_v49  ;;  %v5552_v7 = vmax.bf16 %v5536_v24, %v11355_v54  ;;  %v11357_v50 = vrot.slane %v11356_v32, 4 }
 0x316   : > { %v11359_v40 = vrot.slane %v11345_v46, 4  ;;  %v11360_v13 = vrot.slane %v10044_v25, 4  ;;  %2983 = vst.msk [vmem:[#allocation3 + $0x68] sm:$0xff] %vm2970_vm0, %v2950_v29  ;;  %v2509_v24 = vadd.f32 %v2508_v51, %v11363_v61  ;;  %v10231_v49 = vpop.f32.mrf.mxu0  ;;  %v11367_v61 = vld [vmem:[#allocation18_spill] sm:$0xff]  ;;  %v11371_v29 = vrot.slane %v11370_v39, 4 }
 0x317   : > { %v10219_v19 = vmax.bf16 %v9842_v12, %v11357_v50  ;;  %v10228_v41 = vadd.f32 %v11361_v62, %v2507_v2  ;;  %11364 = vst [vmem:[#allocation19_spill] sm:$0xff] %v10231_v49  ;;  %v11365_v50 = vrot.slane %v10010_v23, 4  ;;  %v10238_v21 = vmax.bf16 %v5563_v52, %v5515_v4  ;;  %v11366_v62 = vld [vmem:[#allocation25_spill] sm:$0xff] }
 0x318   : > { %v5457_v1 = vmax.bf16 %v11360_v13, %v11359_v40  ;;  %v5721_v40 = vshll.u32 %v10196_v56, 16  ;;  %v2512_v13 = vpop.f32.mrf.mxu1  ;;  %v10242_v2 = vrot.slane %v5729_v58, 1  ;;  %v2952_v51 = vadd.f32 %v11366_v62, %v2509_v24  ;;  %v10246_v63 = vpop.f32.mrf.mxu0  ;;  %v11375_v62 = vld [vmem:[#allocation20_spill] sm:$0xff] }
 0x319   : > { %11362 = vst [vmem:[#allocation57_spill] sm:$0xff] %v10228_v41  ;;  %v5646_v9 = vmax.bf16 %v5550_v33, %v11365_v50  ;;  %v2513_v41 = vadd.f32 %v2512_v13, %v11367_v61  ;;  %11368 = vst [vmem:[#allocation14_spill] sm:$0xff] %v10246_v63  ;;  %v11369_v23 = vrot.slane %v10022_v34, 4  ;;  %v11251_v50 = vrot.slane %v10069_v35, 4  ;;  %v10258_v13 = vpop.permute.xlu0 %5486  ;;  %v11373_v34 = vld [vmem:[#allocation27_spill] sm:$0xff] }
 0x31a   : > { %v5733_v52 = vshrl.u32 %v10164_v0, 16  ;;  %v5551_v4 = vmax.bf16 %v5535_v31, %v10095_v57  ;;  %v2514_v32 = vpop.f32.mrf.mxu1  ;;  %v11372_v58 = vrot.slane %v11358_v16, 4  ;;  %v5537_v24 = vmax.bf16 %v11370_v39, %v5457_v1  ;;  %2985 = vst.msk [vmem:[#allocation3 + $0x78] sm:$0xff] %vm2970_vm0, %v2952_v51  ;;  %v10265_v0 = vpop.f32.mrf.mxu0  ;;  %v11377_v1 = vld [vmem:[#allocation6_spill] sm:$0xff] }
 0x31b   : > { %v5648_v33 = vmax.bf16 %v5552_v7, %v11369_v23  ;;  %v10262_v7 = vadd.f32 %v11373_v34, %v2513_v41  ;;  %v2515_v61 = vadd.f32 %v2514_v32, %v11375_v62  ;;  %11376 = vst [vmem:[#allocation5_spill] sm:$0xff] %v10265_v0  ;;  %v5662_v31 = vmax.bf16 %v5646_v9, %v11251_v50  ;;  %v11381_v32 = vld [vmem:[#allocation29_spill] sm:$0xff]  ;;  %v11382_v0 = vld [vmem:[#allocation22_spill] sm:$0xff]  ;;  %v10289_v23 = vpop.permute.xlu1 %5488 }
 0x31c   : > { %v5459_v8 = vmax.bf16 %v11372_v58, %v11371_v29  ;;  %v5723_v49 = vrot.slane %v5721_v40, 1  ;;  %v5725_v29 = vshrl.u32 %v10196_v56, 16  ;;  %4749 = vmatmul.mubr.bf16.gmra.mxu1 %v11377_v1  ;;  %v2516_v58 = vpop.f32.mrf.mxu1  ;;  %v11378_v51 = vrot.slane %v10060_v55, 4  ;;  %v10279_v9 = vpop.f32.mrf.mxu0 }
 0x31d   : > { %11374 = vst [vmem:[#allocation4_spill] sm:$0xff] %v10262_v7  ;;  %v11379_v41 = vrot.slane %v10123_v53, 4  ;;  %v11380_v7 = vld [vmem:[#allocation7_spill] sm:$0xff]  ;;  %v2954_v62 = vadd.f32 %v11381_v32, %v2515_v61  ;;  %v2517_v30 = vadd.f32 %v2516_v58, %v11382_v0  ;;  %11383 = vst [vmem:[#allocation21_spill] sm:$0xff] %v10279_v9  ;;  %v10282_v40 = vor.u32 %v5733_v52, %v10242_v2  ;;  %v11386_v0 = vld [vmem:[#allocation61_spill] sm:$0xff] }
 0x31e   : > { %4758 = vmatprep.mubr.bf16.mxu1 %v11380_v7  ;;  %v11384_v56 = vrot.slane %v11355_v54, 4  ;;  %v5554_v50 = vmax.bf16 %v5538_v18, %v10236_v36  ;;  %v5539_v58 = vmax.bf16 %v11386_v0, %v5459_v8  ;;  %v11387_v32 = vld [vmem:[#allocation55_spill] sm:$0xff]  ;;  %v10301_v18 = vpop.f32.mrf.mxu0  ;;  %v11392_v9 = vrot.slane %v10051_v44, 4  ;;  %v11402_v44 = vld [vmem:[#allocation28_spill] sm:$0xff] }
 0x31f   : > { %v5462_v34 = vmax.bf16 %v11379_v41, %v11378_v51  ;;  %v11385_v51 = vrot.slane %v11345_v46, 4  ;;  %v2518_v41 = vpop.f32.mrf.mxu1  ;;  %v5553_v28 = vmax.bf16 %v5537_v24, %v11387_v32  ;;  %2987 = vst.msk [vmem:[#allocation3 + $0x88] sm:$0xff] %vm2970_vm0, %v2954_v62  ;;  %v11388_v52 = vld [vmem:[#allocation31_spill] sm:$0xff]  ;;  %11391 = vst [vmem:[#allocation53_spill] sm:$0xff] %v10301_v18  ;;  %v11393_v46 = vrot.slane %v10180_v27, 4 }
 0x320   : > { %v10286_v1 = vmax.bf16 %v5648_v33, %v11384_v56  ;;  %v10298_v47 = vadd.f32 %v11388_v52, %v2517_v30  ;;  %v11390_v33 = vld [vmem:[#allocation24_spill] sm:$0xff]  ;;  %v10311_v24 = vsel %vm5712_vm1, %v10199_v6, %v5723_v49  ;;  %v5727_v62 = vor.u32 %v5725_v29, %v5723_v49  ;;  %v11394_v52 = vld [vmem:[#allocation33_spill] sm:$0xff]  ;;  %v10318_v63 = vpop.f32.mrf.mxu0 }
 0x321   : > { %v5647_v7 = vmax.bf16 %v5551_v4, %v11385_v51  ;;  %v2519_v56 = vadd.f32 %v2518_v41, %v11390_v33  ;;  %v5460_v4 = vmax.bf16 %v11393_v46, %v11392_v9  ;;  %v11253_v51 = vrot.slane %v10095_v57, 4  ;;  %v2522_v61 = vpop.f32.mrf.mxu1  ;;  %v10314_v41 = vpop.permute.xlu0 %5490  ;;  %11396 = vst [vmem:[#allocation38_spill] sm:$0xff] %v10318_v63 }
 0x322   : > { %11389 = vst [vmem:[#allocation15_spill] sm:$0xff] %v10298_v47  ;;  %v5542_v30 = vmax.bf16 %v10092_v45, %v5462_v34  ;;  %v11395_v47 = vld [vmem:[#allocation26_spill] sm:$0xff]  ;;  %v5650_v46 = vmax.bf16 %v5554_v50, %v11392_v9  ;;  %v11397_v6 = vrot.slane %v11386_v0, 4  ;;  %v11398_v53 = vrot.slane %v10204_v10, 4  ;;  %v10336_v9 = vpop.f32.mrf.mxu0 }
 0x323   : > { %v2956_v33 = vadd.f32 %v11394_v52, %v2519_v56  ;;  %v2523_v18 = vadd.f32 %v2522_v61, %v11395_v47  ;;  %v5663_v8 = vmax.bf16 %v5647_v7, %v11253_v51  ;;  %v5555_v49 = vmax.bf16 %v5539_v58, %v10258_v13  ;;  %v2524_v29 = vpop.f32.mrf.mxu1  ;;  %v11400_v47 = vld [vmem:[#allocation35_spill] sm:$0xff]  ;;  %11403 = vst [vmem:[#allocation23_spill] sm:$0xff] %v10336_v9  ;;  %v11408_v51 = vld [vmem:[#allocation37_spill] sm:$0xff] }
 0x324   : > { %v5461_v34 = vmax.bf16 %v11398_v53, %v11397_v6  ;;  %v11399_v56 = vrot.slane %v11370_v39, 4  ;;  %v2525_v50 = vadd.f32 %v2524_v29, %v11402_v44  ;;  %v7307_v7 = vcombine.low %v10311_v24, %v10311_v24  ;;  %v10342_v6 = vpop.permute.xlu1 %5492  ;;  %v11407_v44 = vld [vmem:[#allocation9_spill] sm:$0xff] }
 0x325   : > { %2989 = vst.msk [vmem:[#allocation3 + $0x98] sm:$0xff] %vm2970_vm0, %v2956_v33  ;;  %v10333_v61 = vadd.f32 %v11400_v47, %v2523_v18  ;;  %v5540_v53 = vmax.bf16 %v10060_v55, %v5460_v4  ;;  %v10344_v39 = vcombine.low %v5662_v31, %v5663_v8  ;;  %v11405_v18 = vrot.slane %v10150_v11, 4  ;;  %v2526_v29 = vpop.f32.mrf.mxu1  ;;  %v11409_v31 = vld [vmem:[#allocation30_spill] sm:$0xff] }
 0x326   : > { %v5649_v52 = vmax.bf16 %v5553_v28, %v11399_v56  ;;  %v11404_v28 = vrot.slane %v10054_v3, 4  ;;  %v11406_v56 = vld [vmem:[#allocation8_spill] sm:$0xff]  ;;  %v10353_v47 = vsel %vm5712_vm1, %v5727_v62, %v10242_v2  ;;  %v2958_v58 = vadd.f32 %v11408_v51, %v2525_v50  ;;  %v10370_v50 = vpop.permute.xlu0 %5494 }
 0x327   : > { %11401 = vst [vmem:[#allocation51_spill] sm:$0xff] %v10333_v61  ;;  %4759 = vmatmul.mubr.bf16.gmra.mxu1 %v11406_v56  ;;  %v2527_v8 = vadd.f32 %v2526_v29, %v11409_v31  ;;  %v10359_v61 = vpop.f32.mrf.mxu0  ;;  %v11411_v9 = vrot.slane %v10236_v36, 4  ;;  %v5541_v56 = vmax.bf16 %v10054_v3, %v5461_v34  ;;  %v11412_v2 = vrot.slane %v11386_v0, 4  ;;  %v2528_v63 = vpop.f32.mrf.mxu1  ;;  %v11414_v29 = vld [vmem:[#allocation40_spill] sm:$0xff] }
 0x328   : > { %v5463_v33 = vmax.bf16 %v11405_v18, %v11404_v28  ;;  %4768 = vmatprep.mubr.bf16.mxu1 %v11407_v44  ;;  %11410 = vst [vmem:[#allocation16_spill] sm:$0xff] %v10359_v61  ;;  %v5556_v18 = vmax.bf16 %v5540_v53, %v10289_v23  ;;  %v5558_v4 = vmax.bf16 %v5542_v30, %v10342_v6  ;;  %v11413_v44 = vrot.slane %v11387_v32, 4 }
 0x329   : > { %v5666_v28 = vmax.bf16 %v5650_v46, %v11411_v9  ;;  %v5651_v62 = vmax.bf16 %v5555_v49, %v11412_v2  ;;  %2991 = vst.msk [vmem:[#allocation3 + $0xa8] sm:$0xff] %vm2970_vm0, %v2958_v58  ;;  %v10374_v31 = vadd.f32 %v11414_v29, %v2527_v8  ;;  %v11416_v46 = vld [vmem:[#allocation32_spill] sm:$0xff]  ;;  %v10377_v53 = vpop.f32.mrf.mxu0  ;;  %v5737_v0 = vshll.u32 %v10344_v39, 16  ;;  %v11418_v58 = vld [vmem:[#allocation42_spill] sm:$0xff] }
 0x32a   : > { %v5665_v51 = vmax.bf16 %v5649_v52, %v11413_v44  ;;  %v2529_v9 = vadd.f32 %v2528_v63, %v11416_v46  ;;  %11417 = vst [vmem:[#allocation18_spill] sm:$0xff] %v10377_v53  ;;  %v5543_v34 = vmax.bf16 %v10075_v48, %v5463_v33  ;;  %v5557_v49 = vmax.bf16 %v5541_v56, %v10314_v41  ;;  %v2532_v52 = vpop.f32.mrf.mxu1  ;;  %v11419_v8 = vld [vmem:[#allocation34_spill] sm:$0xff] }
 0x32b   : > { %11415 = vst [vmem:[#allocation25_spill] sm:$0xff] %v10374_v31  ;;  %v2533_v29 = vadd.f32 %v2532_v52, %v11419_v8  ;;  %v10387_v31 = vpop.f32.mrf.mxu0  ;;  %v7308_v63 = vcombine.high %v10311_v24, %v10311_v24  ;;  %v11420_v46 = vrot.slane %v10060_v55, 4  ;;  %v11421_v56 = vrot.slane %v10258_v13, 4  ;;  %v11425_v24 = vld [vmem:[#allocation36_spill] sm:$0xff] }
 0x32c   : > { %v2960_v44 = vadd.f32 %v11418_v58, %v2529_v9  ;;  %v10394_v30 = vcombine.low %v10286_v1, %v5665_v51  ;;  %v5559_v2 = vmax.bf16 %v5543_v34, %v10370_v50  ;;  %v2534_v61 = vpop.f32.mrf.mxu1  ;;  %v11422_v9 = vrot.slane %v10092_v45, 4  ;;  %v11423_v58 = vld [vmem:[#allocation44_spill] sm:$0xff] }
 0x32d   : > { %v5652_v33 = vmax.bf16 %v5556_v18, %v11420_v46  ;;  %v5667_v53 = vmax.bf16 %v5651_v62, %v11421_v56  ;;  %v10403_v8 = vadd.f32 %v11423_v58, %v2533_v29  ;;  %v2535_v55 = vadd.f32 %v2534_v61, %v11425_v24  ;;  %v10406_v18 = vpop.f32.mrf.mxu0  ;;  %v11428_v56 = vld [vmem:[#allocation11_spill] sm:$0xff]  ;;  %v11429_v61 = vld [vmem:[#allocation46_spill] sm:$0xff] }
 0x32e   : > { %v5654_v52 = vmax.bf16 %v11422_v9, %v5558_v4  ;;  %2993 = vst.msk [vmem:[#allocation3 + $0xb8] sm:$0xff] %vm2970_vm0, %v2960_v44  ;;  %v5829_v1 = vmax.bf16 %v7307_v7, %v10104_v5  ;;  %v11255_v51 = vrot.slane %v10289_v23, 4  ;;  %v5739_v62 = vrot.slane %v5737_v0, 1  ;;  %v11427_v4 = vld [vmem:[#allocation10_spill] sm:$0xff]  ;;  %v2536_v44 = vpop.f32.mrf.mxu1  ;;  %v11430_v58 = vld [vmem:[#allocation39_spill] sm:$0xff] }
 0x32f   : > { %11424 = vst [vmem:[#allocation59_spill] sm:$0xff] %v10403_v8  ;;  %v10410_v46 = vcombine.low %v5666_v28, %v5667_v53  ;;  %v11426_v34 = vrot.slane %v10054_v3, 4  ;;  %4769 = vmatmul.mubr.bf16.gmra.mxu1 %v11427_v4  ;;  %v11254_v29 = vrot.slane %v10342_v6, 4  ;;  %v2962_v9 = vadd.f32 %v11429_v61, %v2535_v55  ;;  %v10419_v5 = vpop.f32.mrf.mxu0 }
 0x330   : > { %4778 = vmatprep.mubr.bf16.mxu1 %v11428_v56  ;;  %v2537_v24 = vadd.f32 %v2536_v44, %v11430_v58  ;;  %v5830_v7 = vmax.bf16 %v7308_v63, %v10102_v60  ;;  %v5668_v28 = vmax.bf16 %v5652_v33, %v11255_v51  ;;  %v5745_v3 = vshll.u32 %v10394_v30, 16  ;;  %v11432_v44 = vld [vmem:[#allocation48_spill] sm:$0xff]  ;;  %v11434_v63 = vld [vmem:[#allocation41_spill] sm:$0xff] }
 0x331   : > { %v5653_v45 = vmax.bf16 %v5557_v49, %v11426_v34  ;;  %v11256_v53 = vrot.slane %v10314_v41, 4  ;;  %v11431_v0 = vrot.slane %v10075_v48, 4  ;;  %v2538_v34 = vpop.f32.mrf.mxu1  ;;  %v5670_v55 = vmax.bf16 %v5654_v52, %v11254_v29  ;;  %2995 = vst.msk [vmem:[#allocation3 + $0xc8] sm:$0xff] %vm2970_vm0, %v2962_v9  ;;  %v10436_v56 = vpop.f32.mrf.mxu0  ;;  %v11436_v9 = vld [vmem:[#allocation50_spill] sm:$0xff] }
 0x332   : > { %v5741_v4 = vshrl.u32 %v10344_v39, 16  ;;  %v10433_v60 = vadd.f32 %v11432_v44, %v2537_v24  ;;  %v2539_v33 = vadd.f32 %v2538_v34, %v11434_v63  ;;  %11435 = vst [vmem:[#allocation20_spill] sm:$0xff] %v10436_v56  ;;  %v5753_v61 = vshll.u32 %v10410_v46, 16  ;;  %v11439_v56 = vld [vmem:[#allocation45_spill] sm:$0xff] }
 0x333   : > { %v5655_v49 = vmax.bf16 %v11431_v0, %v5559_v2  ;;  %v5669_v48 = vmax.bf16 %v5653_v45, %v11256_v53  ;;  %v5575_v2 = vrot.slane %v10370_v50, 4  ;;  %v2542_v58 = vpop.f32.mrf.mxu1  ;;  %v5740_v39 = vsel %vm5712_vm1, %v10282_v40, %v5739_v62  ;;  %v11437_v0 = vld [vmem:[#allocation43_spill] sm:$0xff]  ;;  %v10448_v44 = vpop.f32.mrf.mxu0  ;;  %v11438_v40 = vld [vmem:[#allocation52_spill] sm:$0xff] }
 0x334   : > { %11433 = vst [vmem:[#allocation27_spill] sm:$0xff] %v10433_v60  ;;  %v7310_v52 = vcombine.high %v10353_v47, %v10353_v47  ;;  %v2964_v24 = vadd.f32 %v11436_v9, %v2539_v33  ;;  %v2543_v34 = vadd.f32 %v2542_v58, %v11437_v0  ;;  %v7323_v63 = vcombine.low %v5829_v1, %v5830_v7 }
 0x335   : > { %v5747_v29 = vrot.slane %v5745_v3, 1  ;;  %v5743_v51 = vor.u32 %v5741_v4, %v5739_v62  ;;  %v10450_v60 = vcombine.low %v5668_v28, %v5669_v48  ;;  %v5671_v45 = vmax.bf16 %v5655_v49, %v5575_v2  ;;  %v2544_v53 = vpop.f32.mrf.mxu1  ;;  %v10459_v9 = vpop.f32.mrf.mxu0  ;;  %v11441_v49 = vld [vmem:[#allocation12_spill] sm:$0xff] }
 0x336   : > { %2997 = vst.msk [vmem:[#allocation3 + $0xd8] sm:$0xff] %vm2970_vm0, %v2964_v24  ;;  %v10456_v8 = vadd.f32 %v11438_v40, %v2543_v34  ;;  %v2545_v33 = vadd.f32 %v2544_v53, %v11439_v56  ;;  %v7311_v58 = vcombine.low %v5740_v39, %v5740_v39  ;;  %v7312_v0 = vcombine.high %v5740_v39, %v5740_v39  ;;  %v11443_v39 = vld [vmem:[#allocation56_spill] sm:$0xff] }
 0x337   : > { %v11440_v1 = vrot.slane %v9842_v12, 4  ;;  %v5749_v7 = vshrl.u32 %v10394_v30, 16  ;;  %v5755_v28 = vrot.slane %v5753_v61, 1  ;;  %v10465_v3 = vcombine.low %v5670_v55, %v5671_v45  ;;  %4779 = vmatmul.mubr.bf16.gmra.mxu1 %v11441_v49  ;;  %v2546_v4 = vpop.f32.mrf.mxu1  ;;  %v10476_v30 = vpop.f32.mrf.mxu0 }
 0x338   : > { %v11442_v53 = vcombine.low %v10353_v47, %v10353_v47  ;;  %v5832_v48 = vmax.bf16 %v7310_v52, %v10238_v21  ;;  %7610 = vmatprep.mubr.msk.bf16.mxu1 %vm2970_vm0, %v7323_v63  ;;  %v2966_v12 = vadd.f32 %v11443_v39, %v2545_v33  ;;  %v5748_v55 = vsel %vm5712_vm1, %v5743_v51, %v5747_v29  ;;  %v11445_v47 = vld [vmem:[#allocation60_spill] sm:$0xff]  ;;  %v11446_v21 = vld [vmem:[#allocation49_spill] sm:$0xff] }
 0x339   : > { %v5597_v62 = vmax.bf16 %v11440_v1, %v10219_v19  ;;  %v11444_v19 = vld [vmem:[#allocation47_spill] sm:$0xff]  ;;  %v5761_v61 = vshll.u32 %v10450_v60, 16  ;;  %v2548_v34 = vpop.f32.mrf.mxu1  ;;  %v5751_v45 = vor.u32 %v5749_v7, %v5747_v29  ;;  %v10485_v63 = vpop.f32.mrf.mxu0  ;;  %v5833_v40 = vmax.bf16 %v7311_v58, %v10201_v43 }
 0x33a   : > { %v5831_v56 = vmax.bf16 %v11442_v53, %v10211_v37  ;;  %v2547_v24 = vadd.f32 %v2546_v4, %v11444_v19  ;;  %2999 = vst.msk [vmem:[#allocation3 + $0xe8] sm:$0xff] %vm2970_vm0, %v2966_v12  ;;  %v2549_v52 = vadd.f32 %v2548_v34, %v11446_v21  ;;  %v11447_v1 = vrot.slane %v9804_v14, 4 }
 0x33b   : > { %v5834_v33 = vmax.bf16 %v7312_v0, %v5597_v62  ;;  %v11448_v49 = vrot.slane %v9816_v26, 4  ;;  %v5769_v7 = vshll.u32 %v10465_v3, 16  ;;  %v5756_v4 = vsel %vm5712_vm1, %v5751_v45, %v5755_v28  ;;  %v3262_v0 = vpop.f32.mrf.mxu1  ;;  %v10503_v62 = vpop.f32.mrf.mxu0 }
 0x33c   : > { %v10482_v37 = vadd.f32 %v11445_v47, %v2547_v24  ;;  %v5518_v51 = vmax.bf16 %v10069_v35, %v11447_v1  ;;  %v11449_v53 = vrot.slane %v10013_v20, 4  ;;  %v7324_v12 = vcombine.low %v5831_v56, %v5832_v48 }
 0x33d   : > { %v5519_v29 = vmax.bf16 %v10095_v57, %v11448_v49  ;;  %v11450_v43 = vrot.slane %v10044_v25, 4  ;;  %v2968_v14 = vadd.f32 %v10066_v42, %v2549_v52  ;;  %v7313_v26 = vcombine.low %v5748_v55, %v5748_v55  ;;  %v10510_v48 = vpop.f32.mrf.mxu1  ;;  %v10512_v25 = vpop.f32.mrf.mxu0 }
 0x33e   : > { %v5520_v39 = vmax.bf16 %v11355_v54, %v11449_v53  ;;  %v7314_v19 = vcombine.high %v5748_v55, %v5748_v55  ;;  %v5763_v24 = vrot.slane %v5761_v61, 1  ;;  %v10506_v34 = vadd.f32 %v10099_v38, %v3262_v0 }
 0x33f   : > { %v5521_v58 = vmax.bf16 %v11387_v32, %v11450_v43  ;;  %v5757_v20 = vshrl.u32 %v10410_v46, 16  ;;  %3001 = vst.msk [vmem:[#allocation3 + $0xf8] sm:$0xff] %vm2970_vm0, %v2968_v14  ;;  %v7325_v56 = vcombine.low %v5833_v40, %v5834_v33  ;;  %v7315_v45 = vcombine.low %v5756_v4, %v5756_v4  ;;  %7611 = vmatmul.mubr.msk.bf16.vlgmr.msra.gmra.mxu1 %vm2970_vm0, %v7324_v12 }
 0x340   : > { %v7316_v42 = vcombine.high %v5756_v4, %v5756_v4  ;;  %v11451_v47 = vrot.slane %v10069_v35, 4  ;;  %v11452_v55 = vrot.slane %v10095_v57, 4  ;;  %v5765_v38 = vshrl.u32 %v10450_v60, 16  ;;  %v3266_v4 = vpop.f32.mrf.mxu1  ;;  %v10525_v35 = vpop.f32.mrf.mxu0 }
 0x341   : > { %v5771_v52 = vrot.slane %v5769_v7, 1  ;;  %v11453_v46 = vrot.slane %v11355_v54, 4  ;;  %v11454_v33 = vrot.slane %v11387_v32, 4  ;;  %v5759_v49 = vor.u32 %v5757_v20, %v5755_v28  ;;  %7614 = vmatprep.mubr.msk.bf16.mxu1 %vm2970_vm0, %v7325_v56 }
 0x342   : > { %v5598_v21 = vmax.bf16 %v11451_v47, %v5518_v51  ;;  %v5599_v61 = vmax.bf16 %v11452_v55, %v5519_v29  ;;  %v5767_v29 = vor.u32 %v5765_v38, %v5763_v24  ;;  %v10528_v60 = vadd.f32 %v10137_v22, %v3266_v4  ;;  %v10531_v53 = vpop.f32.mrf.mxu1  ;;  %v10533_v54 = vpop.f32.mrf.mxu0 }
 0x343   : > { %v5600_v40 = vmax.bf16 %v11453_v46, %v5520_v39  ;;  %v5601_v1 = vmax.bf16 %v11454_v33, %v5521_v58  ;;  %v5764_v7 = vsel %vm5712_vm1, %v5759_v49, %v5763_v24  ;;  %v11455_v28 = vrot.slane %v9922_v59, 4 }
 0x344   : > { %v5835_v51 = vmax.bf16 %v7313_v26, %v5598_v21  ;;  %v5836_v57 = vmax.bf16 %v7314_v19, %v5599_v61  ;;  %v11456_v43 = vrot.slane %v11358_v16, 4  ;;  %v5772_v14 = vsel %vm5712_vm1, %v5767_v29, %v5771_v52  ;;  %v3272_v59 = vpop.f32.mrf.mxu1  ;;  %v10549_v20 = vpop.f32.mrf.mxu0 }
 0x345   : > { %v5837_v32 = vmax.bf16 %v7315_v45, %v5600_v40  ;;  %v5838_v39 = vmax.bf16 %v7316_v42, %v5601_v1  ;;  %v5522_v12 = vmax.bf16 %v10236_v36, %v11455_v28  ;;  %v11457_v22 = vrot.slane %v10180_v27, 4 }
 0x346   : > { %v5523_v58 = vmax.bf16 %v10258_v13, %v11456_v43  ;;  %v11458_v26 = vrot.slane %v10204_v10, 4  ;;  %v5773_v24 = vshrl.u32 %v10465_v3, 16  ;;  %v7326_v56 = vcombine.low %v5835_v51, %v5836_v57  ;;  %v10554_v21 = vpop.f32.mrf.mxu1  ;;  %v10556_v55 = vpop.f32.mrf.mxu0 }
 0x347   : > { %v5524_v0 = vmax.bf16 %v10289_v23, %v11457_v22  ;;  %v7317_v16 = vcombine.low %v5764_v7, %v5764_v7  ;;  %v7318_v45 = vcombine.high %v5764_v7, %v5764_v7  ;;  %v10552_v42 = vadd.f32 %v10168_v15, %v3272_v59  ;;  %v11466_v22 = vld [vmem:[#allocation14_spill] sm:$0xff] }
 0x348   : > { %v5525_v19 = vmax.bf16 %v10314_v41, %v11458_v26  ;;  %v5775_v47 = vor.u32 %v5773_v24, %v5771_v52  ;;  %v7327_v27 = vcombine.low %v5837_v32, %v5838_v39  ;;  %v7319_v10 = vcombine.low %v5772_v14, %v5772_v14  ;;  %7615 = vmatmul.mubr.msk.bf16.gmra.mxu1 %vm2970_vm0, %v7326_v56  ;;  %v3276_v49 = vpop.f32.mrf.mxu1  ;;  %v10570_v4 = vpop.f32.mrf.mxu0  ;;  %v11463_v39 = vld [vmem:[#allocation66_spill] sm:$0xff] }
 0x349   : > { %v7320_v61 = vcombine.high %v5772_v14, %v5772_v14  ;;  %v11459_v38 = vrot.slane %v10236_v36, 4  ;;  %v11460_v46 = vrot.slane %v10258_v13, 4  ;;  %v11461_v15 = vrot.slane %v10289_v23, 4 }
 0x34a   : > { %v11462_v33 = vrot.slane %v10314_v41, 4  ;;  %7618 = vmatprep.mubr.msk.bf16.mxu1 %vm2970_vm0, %v7327_v27  ;;  %v10573_v36 = vadd.f32 %v10209_v17, %v3276_v49  ;;  %v5779_v57 = vsel %vm5778_vm3, %v5775_v47, 0  ;;  %v10575_v29 = vpop.f32.mrf.mxu1  ;;  %v10577_v7 = vpop.f32.mrf.mxu0  ;;  %v11464_v41 = vrot.slane %v11463_v39, 4 }
 0x34b   : > { %v5602_v3 = vmax.bf16 %v11459_v38, %v5522_v12  ;;  %v5603_v40 = vmax.bf16 %v11460_v46, %v5523_v58  ;;  %v5604_v52 = vmax.bf16 %v11461_v15, %v5524_v0  ;;  %v11465_v12 = vrot.slane %v10150_v11, 4 }
 0x34c   : > { %v5605_v1 = vmax.bf16 %v11462_v33, %v5525_v19  ;;  %v5526_v28 = vmax.bf16 %v10342_v6, %v11464_v41  ;;  %v3282_v58 = vpop.f32.mrf.mxu1  ;;  %v7321_v17 = vcombine.low %v5779_v57, %v5779_v57  ;;  %v7322_v14 = vcombine.high %v5779_v57, %v5779_v57  ;;  %v10588_v19 = vpop.f32.mrf.mxu0 }
 0x34d   : > { %v5839_v13 = vmax.bf16 %v7317_v16, %v5602_v3  ;;  %v5840_v51 = vmax.bf16 %v7318_v45, %v5603_v40  ;;  %v5841_v23 = vmax.bf16 %v7319_v10, %v5604_v52  ;;  %v5527_v43 = vmax.bf16 %v10370_v50, %v11465_v12  ;;  %v11469_v40 = vld [vmem:[#allocation38_spill] sm:$0xff] }
 0x34e   : > { %v5842_v32 = vmax.bf16 %v7320_v61, %v5605_v1  ;;  %v10586_v0 = vadd.f32 %v11466_v22, %v3282_v58  ;;  %v10590_v59 = vpop.f32.mrf.mxu1  ;;  %v11467_v56 = vrot.slane %v10342_v6, 4  ;;  %v10598_v45 = vpop.f32.mrf.mxu0  ;;  %v11468_v61 = vld [vmem:[#allocation21_spill] sm:$0xff] }
 0x34f   : > { %v7328_v26 = vcombine.low %v5839_v13, %v5840_v51  ;;  %v5607_v11 = vmax.bf16 %v5575_v2, %v5527_v43  ;;  %v11470_v13 = vld [vmem:[#allocation16_spill] sm:$0xff] }
 0x350   : > { %v7329_v24 = vcombine.low %v5841_v23, %v5842_v32  ;;  %v5606_v16 = vmax.bf16 %v11467_v56, %v5526_v28  ;;  %v3286_v47 = vpop.f32.mrf.mxu1  ;;  %v10603_v3 = vpop.f32.mrf.mxu0 }
 0x351   : > { %7619 = vmatmul.mubr.msk.bf16.gmra.mxu1 %vm2970_vm0, %v7328_v26  ;;  %v5844_v10 = vmax.bf16 %v7322_v14, %v5607_v11  ;;  %v10601_v38 = vadd.f32 %v11468_v61, %v3286_v47 }
 0x352   : > { %7622 = vmatprep.mubr.msk.bf16.mxu1 %vm2970_vm0, %v7329_v24  ;;  %v5843_v27 = vmax.bf16 %v7321_v17, %v5606_v16  ;;  %v10605_v46 = vpop.f32.mrf.mxu1  ;;  %v10607_v6 = vpop.f32.mrf.mxu0 }
 0x354   : > { %v3292_v50 = vpop.f32.mrf.mxu1  ;;  %v7330_v2 = vcombine.low %v5843_v27, %v5844_v10  ;;  %v10612_v52 = vpop.f32.mrf.mxu0 }
 0x355   : > { %v10610_v15 = vadd.f32 %v11469_v40, %v3292_v50 }
 0x356   : > { %v10614_v33 = vpop.f32.mrf.mxu1  ;;  %v10617_v1 = vpop.f32.mrf.mxu0 }
 0x358   : > { %v3296_v49 = vpop.f32.mrf.mxu1  ;;  %v10622_v57 = vpop.f32.mrf.mxu0 }
 0x359   : > { %7623 = vmatmul.mubr.msk.bf16.gmra.mxu1 %vm2970_vm0, %v7330_v2  ;;  %v10620_v51 = vadd.f32 %v11470_v13, %v3296_v49  ;;  %11471 = vst [vmem:[#allocation6_spill] sm:$0xff] %v10622_v57 }
 0x35a   : > { %v10624_v23 = vpop.f32.mrf.mxu1  ;;  %v10626_v32 = vpop.f32.mrf.mxu0 }
 0x35b   : > { %11472 = vst [vmem:[#allocation7_spill] sm:$0xff] %v10626_v32 }
 0x35c   : > { %v3302_v39 = vpop.f32.mrf.mxu1  ;;  %v10631_v28 = vpop.f32.mrf.mxu0 }
 0x35d   : > { %v10629_v41 = vadd.f32 %v10387_v31, %v3302_v39  ;;  %11473 = vst [vmem:[#allocation29_spill] sm:$0xff] %v10631_v28 }
 0x35e   : > { %v10633_v12 = vpop.f32.mrf.mxu1  ;;  %v10635_v43 = vpop.f32.mrf.mxu0 }
 0x35f   : > { %11474 = vst [vmem:[#allocation22_spill] sm:$0xff] %v10635_v43 }
 0x360   : > { %v3306_v58 = vpop.f32.mrf.mxu1  ;;  %v10640_v14 = vpop.f32.mrf.mxu0 }
 0x361   : > { %v10638_v17 = vadd.f32 %v10419_v5, %v3306_v58  ;;  %11475 = vst [vmem:[#allocation61_spill] sm:$0xff] %v10640_v14 }
 0x362   : > { %v10642_v22 = vpop.f32.mrf.mxu1  ;;  %v10644_v26 = vpop.f32.mrf.mxu0 }
 0x363   : > { %11476 = vst [vmem:[#allocation55_spill] sm:$0xff] %v10644_v26 }
 0x364   : > { %v3312_v24 = vpop.f32.mrf.mxu1  ;;  %v10649_v56 = vpop.f32.mrf.mxu0 }
 0x365   : > { %v10647_v31 = vadd.f32 %v10448_v44, %v3312_v24  ;;  %11477 = vst [vmem:[#allocation31_spill] sm:$0xff] %v10649_v56 }
 0x366   : > { %v10651_v16 = vpop.f32.mrf.mxu1  ;;  %v10653_v11 = vpop.f32.mrf.mxu0 }
 0x367   : > { %11478 = vst [vmem:[#allocation24_spill] sm:$0xff] %v10653_v11 }
 0x368   : > { %v3316_v47 = vpop.f32.mrf.mxu1  ;;  %v10658_v27 = vpop.f32.mrf.mxu0 }
 0x369   : > { %v10656_v5 = vadd.f32 %v10476_v30, %v3316_v47  ;;  %11479 = vst [vmem:[#allocation33_spill] sm:$0xff] %v10658_v27 }
 0x36a   : > { %v10660_v10 = vpop.f32.mrf.mxu1  ;;  %v10662_v61 = vpop.f32.mrf.mxu0 }
 0x36b   : > { %11480 = vst [vmem:[#allocation26_spill] sm:$0xff] %v10662_v61 }
 0x36c   : > { %v3322_v50 = vpop.f32.mrf.mxu1  ;;  %v10667_v2 = vpop.f32.mrf.mxu0 }
 0x36d   : > { %v10665_v44 = vadd.f32 %v10503_v62, %v3322_v50  ;;  %11481 = vst [vmem:[#allocation35_spill] sm:$0xff] %v10667_v2 }
 0x36e   : > { %v10669_v40 = vpop.f32.mrf.mxu1  ;;  %v10671_v49 = vpop.f32.mrf.mxu0 }
 0x36f   : > { %11482 = vst [vmem:[#allocation28_spill] sm:$0xff] %v10671_v49 }
 0x370   : > { %v3326_v13 = vpop.f32.mrf.mxu1  ;;  %v10676_v39 = vpop.f32.mrf.mxu0 }
 0x371   : > { %v10674_v30 = vadd.f32 %v10525_v35, %v3326_v13  ;;  %11483 = vst [vmem:[#allocation8_spill] sm:$0xff] %v10676_v39 }
 0x372   : > { %v10678_v58 = vpop.f32.mrf.mxu1  ;;  %v10680_v24 = vpop.f32.mrf.mxu0 }
 0x373   : > { %11484 = vst [vmem:[#allocation9_spill] sm:$0xff] %v10680_v24 }
 0x374   : > { %v3332_v47 = vpop.f32.mrf.mxu1  ;;  %v10685_v50 = vpop.f32.mrf.mxu0 }
 0x375   : > { %v10683_v62 = vadd.f32 %v10549_v20, %v3332_v47  ;;  %11485 = vst [vmem:[#allocation37_spill] sm:$0xff] %v10685_v50 }
 0x376   : > { %v10687_v2 = vpop.f32.mrf.mxu1  ;;  %v10689_v61 = vpop.f32.mrf.mxu0 }
 0x377   : > { %11486 = vst [vmem:[#allocation30_spill] sm:$0xff] %v10689_v61  ;;  %v11491_v61 = vld [vmem:[#allocation65_spill] sm:$0xff] }
 0x378   : > { %v3336_v49 = vpop.f32.mrf.mxu1  ;;  %v10694_v13 = vpop.f32.mrf.mxu0  ;;  %v3538_v56 = vadd.f32 %v11491_v61, %v10510_v48 }
 0x379   : > { %v10692_v35 = vadd.f32 %v10570_v4, %v3336_v49  ;;  %11487 = vst [vmem:[#allocation40_spill] sm:$0xff] %v10694_v13  ;;  %v11493_v49 = vld [vmem:[#allocation68_spill] sm:$0xff] }
 0x37a   : > { %v10696_v39 = vpop.f32.mrf.mxu1  ;;  %v10698_v27 = vpop.f32.mrf.mxu0  ;;  %v3542_v13 = vadd.f32 %v11493_v49, %v10531_v53 }
 0x37b   : > { %11488 = vst [vmem:[#allocation32_spill] sm:$0xff] %v10698_v27 }
 0x37c   : > { %v3841_v24 = vpop.f32.mrf.mxu1  ;;  %v10700_v11 = vpop.f32.mrf.mxu0 }
 0x37d   : > { %11489 = vst [vmem:[#allocation42_spill] sm:$0xff] %v10700_v11  ;;  %v3920_v20 = vadd.f32 %v3841_v24, %v10506_v34 }
 0x37e   : > { %v3843_v47 = vpop.f32.mrf.mxu1  ;;  %v10703_v50 = vpop.f32.mrf.mxu0 }
 0x37f   : > { %11490 = vst [vmem:[#allocation34_spill] sm:$0xff] %v10703_v50  ;;  %v3921_v14 = vadd.f32 %v3843_v47, %v3538_v56  ;;  %v4017_v34 = vrot.slane %v3920_v20, 1  ;;  %v11495_v50 = vld [vmem:[#allocation13_spill] sm:$0xff] }
 0x380   : > { %v3845_v26 = vpop.f32.mrf.mxu1  ;;  %v10707_v4 = vpop.f32.mrf.mxu0  ;;  %v3548_v32 = vadd.f32 %v11495_v50, %v10554_v21 }
 0x381   : > { %11492 = vst [vmem:[#allocation44_spill] sm:$0xff] %v10707_v4  ;;  %v3922_v27 = vadd.f32 %v3845_v26, %v10528_v60  ;;  %v4020_v4 = vrot.slane %v3921_v14, 1  ;;  %v11497_v60 = vld [vmem:[#allocation54_spill] sm:$0xff]  ;;  %v11500_v14 = vld [vmem:[#allocation19_spill] sm:$0xff] }
 0x382   : > { %v3847_v43 = vpop.f32.mrf.mxu1  ;;  %v10712_v11 = vpop.f32.mrf.mxu0 }
 0x383   : > { %11494 = vst [vmem:[#allocation36_spill] sm:$0xff] %v10712_v11  ;;  %v4018_v24 = vrot.slane %v3922_v27, 1  ;;  %v3923_v28 = vadd.f32 %v3847_v43, %v3542_v13  ;;  %v3953_v27 = vld [vmem:[#allocation3 + $0x8] sm:$0xff] }
 0x384   : > { %v3851_v48 = vpop.f32.mrf.mxu1  ;;  %v10716_v61 = vpop.f32.mrf.mxu0 }
 0x385   : > { %11496 = vst [vmem:[#allocation10_spill] sm:$0xff] %v10716_v61  ;;  %v4019_v57 = vsel %vm4016_vm4, %v4017_v34, %v4018_v24  ;;  %v4021_v53 = vrot.slane %v3923_v28, 1  ;;  %v3924_v56 = vadd.f32 %v3851_v48, %v10552_v42  ;;  %v3552_v28 = vadd.f32 %v11500_v14, %v10575_v29  ;;  %v11501_v48 = vld [vmem:[#allocation58_spill] sm:$0xff] }
 0x386   : > { %v10721_v26 = vadd.f32 %v4019_v57, %v11497_v60  ;;  %v3853_v47 = vpop.f32.mrf.mxu1  ;;  %v10723_v49 = vpop.f32.mrf.mxu0 }
 0x387   : > { %11498 = vst [vmem:[#allocation11_spill] sm:$0xff] %v10723_v49  ;;  %v4022_v43 = vsel %vm4016_vm4, %v4020_v4, %v4021_v53  ;;  %v4023_v13 = vrot.slane %v3924_v56, 1  ;;  %v3925_v21 = vadd.f32 %v3853_v47, %v3548_v32  ;;  %v3955_v32 = vld [vmem:[#allocation3 + $0x18] sm:$0xff] }
 0x388   : > { %v4114_v50 = vadd.f32 %v4022_v43, %v3953_v27  ;;  %v3855_v20 = vpop.f32.mrf.mxu1  ;;  %v10726_v61 = vpop.f32.mrf.mxu0 }
 0x389   : > { %11499 = vst [vmem:[#allocation46_spill] sm:$0xff] %v10726_v61  ;;  %v4024_v42 = vsel %vm4016_vm4, %v4018_v24, %v4023_v13  ;;  %v4025_v34 = vrot.slane %v3925_v21, 1  ;;  %v3926_v57 = vadd.f32 %v3855_v20, %v10573_v36  ;;  %v11503_v24 = vld [vmem:[#allocation5_spill] sm:$0xff] }
 0x38a   : > { %4146 = vst.msk [vmem:[#allocation3 + $0x8] sm:$0xff] %vm2970_vm0, %v4114_v50  ;;  %v10734_v60 = vadd.f32 %v4024_v42, %v11501_v48  ;;  %v3857_v4 = vpop.f32.mrf.mxu1  ;;  %v10736_v56 = vpop.f32.mrf.mxu0  ;;  %v3558_v21 = vadd.f32 %v11503_v24, %v10590_v59  ;;  %v11504_v42 = vld [vmem:[#allocation62_spill] sm:$0xff] }
 0x38b   : > { %11502 = vst [vmem:[#allocation39_spill] sm:$0xff] %v10736_v56  ;;  %v4026_v47 = vsel %vm4016_vm4, %v4021_v53, %v4025_v34  ;;  %v4027_v27 = vrot.slane %v3926_v57, 1  ;;  %v3927_v43 = vadd.f32 %v3857_v4, %v3552_v28  ;;  %v3957_v57 = vld [vmem:[#allocation3 + $0x28] sm:$0xff] }
 0x38c   : > { %v4116_v61 = vadd.f32 %v4026_v47, %v3955_v32  ;;  %v3861_v29 = vpop.f32.mrf.mxu1  ;;  %v10743_v14 = vpop.f32.mrf.mxu0 }
 0x38d   : > { %v4028_v36 = vsel %vm4016_vm4, %v4023_v13, %v4027_v27  ;;  %v4029_v20 = vrot.slane %v3927_v43, 1  ;;  %v3928_v50 = vadd.f32 %v3861_v29, %v10586_v0  ;;  %v11505_v43 = vld [vmem:[#allocation53_spill] sm:$0xff] }
 0x38e   : > { %4148 = vst.msk [vmem:[#allocation3 + $0x18] sm:$0xff] %vm2970_vm0, %v4116_v61  ;;  %v10747_v48 = vadd.f32 %v4028_v36, %v11504_v42  ;;  %v3863_v53 = vpop.f32.mrf.mxu1  ;;  %v10750_v47 = vpop.f32.mrf.mxu0  ;;  %v3562_v0 = vadd.f32 %v11505_v43, %v10605_v46  ;;  %v11506_v42 = vld [vmem:[#allocation63_spill] sm:$0xff] }
 0x38f   : > { %v4030_v28 = vsel %vm4016_vm4, %v4025_v34, %v4029_v20  ;;  %v4031_v4 = vrot.slane %v3928_v50, 1  ;;  %v3929_v32 = vadd.f32 %v3863_v53, %v3558_v21  ;;  %v3959_v50 = vld [vmem:[#allocation3 + $0x38] sm:$0xff] }
 0x390   : > { %v4118_v59 = vadd.f32 %v4030_v28, %v3957_v57  ;;  %v3865_v13 = vpop.f32.mrf.mxu1  ;;  %v10756_v36 = vpop.f32.mrf.mxu0 }
 0x391   : > { %v4032_v29 = vsel %vm4016_vm4, %v4027_v27, %v4031_v4  ;;  %v4033_v24 = vrot.slane %v3929_v32, 1  ;;  %v3930_v61 = vadd.f32 %v3865_v13, %v10601_v38  ;;  %v11507_v32 = vld [vmem:[#allocation23_spill] sm:$0xff] }
 0x392   : > { %4150 = vst.msk [vmem:[#allocation3 + $0x28] sm:$0xff] %vm2970_vm0, %v4118_v59  ;;  %v10760_v34 = vadd.f32 %v4032_v29, %v11506_v42  ;;  %v3867_v21 = vpop.f32.mrf.mxu1  ;;  %v10763_v56 = vpop.f32.mrf.mxu0  ;;  %v3568_v38 = vadd.f32 %v11507_v32, %v10614_v33  ;;  %v11508_v42 = vld [vmem:[#allocation64_spill] sm:$0xff] }
 0x393   : > { %v4034_v53 = vsel %vm4016_vm4, %v4029_v20, %v4033_v24  ;;  %v4035_v57 = vrot.slane %v3930_v61, 1  ;;  %v3931_v28 = vadd.f32 %v3867_v21, %v3562_v0  ;;  %v3961_v61 = vld [vmem:[#allocation3 + $0x48] sm:$0xff] }
 0x394   : > { %v4120_v46 = vadd.f32 %v4034_v53, %v3959_v50  ;;  %v3871_v27 = vpop.f32.mrf.mxu1  ;;  %v10769_v29 = vpop.f32.mrf.mxu0 }
 0x395   : > { %v4036_v13 = vsel %vm4016_vm4, %v4031_v4, %v4035_v57  ;;  %v4037_v43 = vrot.slane %v3931_v28, 1  ;;  %v3932_v59 = vadd.f32 %v3871_v27, %v10610_v15  ;;  %v11509_v28 = vld [vmem:[#allocation18_spill] sm:$0xff] }
 0x396   : > { %4152 = vst.msk [vmem:[#allocation3 + $0x38] sm:$0xff] %vm2970_vm0, %v4120_v46  ;;  %v10773_v20 = vadd.f32 %v4036_v13, %v11508_v42  ;;  %v3873_v0 = vpop.f32.mrf.mxu1  ;;  %v10776_v49 = vpop.f32.mrf.mxu0  ;;  %v3572_v15 = vadd.f32 %v11509_v28, %v10624_v23  ;;  %v11510_v42 = vld [vmem:[#allocation67_spill] sm:$0xff]  ;;  %v11511_v28 = vld [vmem:[#allocation17_spill] sm:$0xff] }
 0x397   : > { %v4038_v21 = vsel %vm4016_vm4, %v4033_v24, %v4037_v43  ;;  %v4039_v50 = vrot.slane %v3932_v59, 1  ;;  %v3933_v53 = vadd.f32 %v3873_v0, %v3568_v38  ;;  %v3963_v59 = vld [vmem:[#allocation3 + $0x58] sm:$0xff] }
 0x398   : > { %v4122_v33 = vadd.f32 %v4038_v21, %v3961_v61  ;;  %v3875_v4 = vpop.f32.mrf.mxu1  ;;  %v10782_v13 = vpop.f32.mrf.mxu0 }
 0x399   : > { %v4040_v27 = vsel %vm4016_vm4, %v4035_v57, %v4039_v50  ;;  %v4041_v32 = vrot.slane %v3933_v53, 1  ;;  %v3934_v46 = vadd.f32 %v3875_v4, %v10620_v51  ;;  %v3578_v57 = vadd.f32 %v10406_v18, %v10633_v12  ;;  %v11512_v12 = vld [vmem:[#allocation20_spill] sm:$0xff] }
 0x39a   : > { %4154 = vst.msk [vmem:[#allocation3 + $0x48] sm:$0xff] %vm2970_vm0, %v4122_v33  ;;  %v10786_v24 = vadd.f32 %v4040_v27, %v11510_v42  ;;  %v3877_v38 = vpop.f32.mrf.mxu1  ;;  %v10792_v4 = vpop.f32.mrf.mxu0 }
 0x39b   : > { %v4042_v0 = vsel %vm4016_vm4, %v4037_v43, %v4041_v32  ;;  %v4043_v61 = vrot.slane %v3934_v46, 1  ;;  %v3935_v21 = vadd.f32 %v3877_v38, %v3572_v15  ;;  %v3965_v46 = vld [vmem:[#allocation3 + $0x68] sm:$0xff] }
 0x39c   : > { %v4124_v11 = vadd.f32 %v4042_v0, %v3963_v59  ;;  %v3881_v23 = vpop.f32.mrf.mxu1 }
 0x39d   : > { %v4044_v51 = vsel %vm4016_vm4, %v4039_v50, %v4043_v61  ;;  %v4045_v53 = vrot.slane %v3935_v21, 1  ;;  %v3936_v33 = vadd.f32 %v3881_v23, %v10629_v41  ;;  %v3582_v50 = vadd.f32 %v11512_v12, %v10642_v22  ;;  %v10803_v21 = vpop.f32.mrf.mxu0  ;;  %v11513_v23 = vld [vmem:[#allocation57_spill] sm:$0xff] }
 0x39e   : > { %4156 = vst.msk [vmem:[#allocation3 + $0x58] sm:$0xff] %vm2970_vm0, %v4124_v11  ;;  %v10797_v27 = vadd.f32 %v4044_v51, %v11511_v28  ;;  %v3883_v43 = vpop.f32.mrf.mxu1 }
 0x39f   : > { %v4046_v15 = vsel %vm4016_vm4, %v4041_v32, %v4045_v53  ;;  %v4047_v42 = vrot.slane %v3936_v33, 1  ;;  %v3937_v38 = vadd.f32 %v3883_v43, %v3578_v57  ;;  %v3967_v33 = vld [vmem:[#allocation3 + $0x78] sm:$0xff] }
 0x3a0   : > { %v4126_v59 = vadd.f32 %v4046_v15, %v3965_v46  ;;  %v3885_v18 = vpop.f32.mrf.mxu1  ;;  %v10813_v15 = vpop.f32.mrf.mxu0 }
 0x3a1   : > { %v4048_v0 = vsel %vm4016_vm4, %v4043_v61, %v4047_v42  ;;  %v4049_v41 = vrot.slane %v3937_v38, 1  ;;  %v3938_v11 = vadd.f32 %v3885_v18, %v10638_v17  ;;  %v3588_v61 = vadd.f32 %v10459_v9, %v10651_v16  ;;  %v11514_v18 = vld [vmem:[#allocation4_spill] sm:$0xff] }
 0x3a2   : > { %4158 = vst.msk [vmem:[#allocation3 + $0x68] sm:$0xff] %vm2970_vm0, %v4126_v59  ;;  %v10808_v51 = vadd.f32 %v4048_v0, %v11513_v23  ;;  %v3887_v32 = vpop.f32.mrf.mxu1  ;;  %v3969_v0 = vld [vmem:[#allocation3 + $0x88] sm:$0xff]  ;;  %v3592_v16 = vadd.f32 %v10485_v63, %v10660_v10  ;;  %v3598_v10 = vadd.f32 %v10512_v25, %v10669_v40  ;;  %v3602_v40 = vadd.f32 %v10533_v54, %v10678_v58 }
 0x3a3   : > { %v4050_v57 = vsel %vm4016_vm4, %v4045_v53, %v4049_v41  ;;  %v4051_v28 = vrot.slane %v3938_v11, 1  ;;  %v3939_v43 = vadd.f32 %v3887_v32, %v3582_v50  ;;  %v3608_v58 = vadd.f32 %v10556_v55, %v10687_v2 }
 0x3a4   : > { %v4128_v46 = vadd.f32 %v4050_v57, %v3967_v33  ;;  %v3891_v22 = vpop.f32.mrf.mxu1  ;;  %v3612_v2 = vadd.f32 %v10577_v7, %v10696_v39 }
 0x3a5   : > { %v4052_v17 = vsel %vm4016_vm4, %v4047_v42, %v4051_v28  ;;  %v4053_v38 = vrot.slane %v3939_v43, 1  ;;  %v3940_v59 = vadd.f32 %v3891_v22, %v10647_v31  ;;  %v10824_v42 = vpop.f32.mrf.mxu0  ;;  %v11515_v43 = vld [vmem:[#allocation15_spill] sm:$0xff] }
 0x3a6   : > { %4160 = vst.msk [vmem:[#allocation3 + $0x78] sm:$0xff] %vm2970_vm0, %v4128_v46  ;;  %v10819_v12 = vadd.f32 %v4052_v17, %v11514_v18  ;;  %v3893_v53 = vpop.f32.mrf.mxu1  ;;  %v3971_v22 = vld [vmem:[#allocation3 + $0x98] sm:$0xff] }
 0x3a7   : > { %v4054_v50 = vsel %vm4016_vm4, %v4049_v41, %v4053_v38  ;;  %v4055_v11 = vrot.slane %v3940_v59, 1  ;;  %v3941_v23 = vadd.f32 %v3893_v53, %v3588_v61 }
 0x3a8   : > { %v4130_v32 = vadd.f32 %v4054_v50, %v3969_v0  ;;  %v3895_v9 = vpop.f32.mrf.mxu1  ;;  %v11516_v50 = vld [vmem:[#allocation51_spill] sm:$0xff] }
 0x3a9   : > { %v4056_v31 = vsel %vm4016_vm4, %v4051_v28, %v4055_v11  ;;  %v4057_v33 = vrot.slane %v3941_v23, 1  ;;  %v3942_v57 = vadd.f32 %v3895_v9, %v10656_v5  ;;  %v10835_v28 = vpop.f32.mrf.mxu0 }
 0x3aa   : > { %4162 = vst.msk [vmem:[#allocation3 + $0x88] sm:$0xff] %vm2970_vm0, %v4130_v32  ;;  %v10830_v46 = vadd.f32 %v4056_v31, %v11515_v43  ;;  %v3897_v41 = vpop.f32.mrf.mxu1  ;;  %v3973_v32 = vld [vmem:[#allocation3 + $0xa8] sm:$0xff] }
 0x3ab   : > { %v4058_v61 = vsel %vm4016_vm4, %v4053_v38, %v4057_v33  ;;  %v4059_v17 = vrot.slane %v3942_v57, 1  ;;  %v3943_v59 = vadd.f32 %v3897_v41, %v3592_v16 }
 0x3ac   : > { %v4132_v18 = vadd.f32 %v4058_v61, %v3971_v22  ;;  %v3901_v63 = vpop.f32.mrf.mxu1  ;;  %v11517_v22 = vld [vmem:[#allocation25_spill] sm:$0xff] }
 0x3ad   : > { %v4060_v5 = vsel %vm4016_vm4, %v4055_v11, %v4059_v17  ;;  %v4061_v53 = vrot.slane %v3943_v59, 1  ;;  %v3944_v0 = vadd.f32 %v3901_v63, %v10665_v44  ;;  %v10846_v11 = vpop.f32.mrf.mxu0  ;;  %v3975_v59 = vld [vmem:[#allocation3 + $0xb8] sm:$0xff] }
 0x3ae   : > { %4164 = vst.msk [vmem:[#allocation3 + $0x98] sm:$0xff] %vm2970_vm0, %v4132_v18  ;;  %v10841_v23 = vadd.f32 %v4060_v5, %v11516_v50  ;;  %v3903_v38 = vpop.f32.mrf.mxu1 }
 0x3af   : > { %v4062_v9 = vsel %vm4016_vm4, %v4057_v33, %v4061_v53  ;;  %v4063_v16 = vrot.slane %v3944_v0, 1  ;;  %v3945_v31 = vadd.f32 %v3903_v38, %v3598_v10  ;;  %v11518_v38 = vld [vmem:[#allocation59_spill] sm:$0xff] }
 0x3b0   : > { %v4134_v57 = vadd.f32 %v4062_v9, %v3973_v32  ;;  %v3905_v25 = vpop.f32.mrf.mxu1  ;;  %v3977_v9 = vld [vmem:[#allocation3 + $0xc8] sm:$0xff] }
 0x3b1   : > { %v4064_v44 = vsel %vm4016_vm4, %v4059_v17, %v4063_v16  ;;  %v4065_v43 = vrot.slane %v3945_v31, 1  ;;  %v3946_v41 = vadd.f32 %v3905_v25, %v10674_v30  ;;  %v10857_v17 = vpop.f32.mrf.mxu0 }
 0x3b2   : > { %4166 = vst.msk [vmem:[#allocation3 + $0xa8] sm:$0xff] %vm2970_vm0, %v4134_v57  ;;  %v10852_v61 = vadd.f32 %v4064_v44, %v11517_v22  ;;  %v3907_v33 = vpop.f32.mrf.mxu1  ;;  %v11519_v22 = vld [vmem:[#allocation27_spill] sm:$0xff] }
 0x3b3   : > { %v4066_v18 = vsel %vm4016_vm4, %v4061_v53, %v4065_v43  ;;  %v4067_v63 = vrot.slane %v3946_v41, 1  ;;  %v3947_v10 = vadd.f32 %v3907_v33, %v3602_v40 }
 0x3b4   : > { %v4136_v5 = vadd.f32 %v4066_v18, %v3975_v59  ;;  %v3911_v54 = vpop.f32.mrf.mxu1  ;;  %v3979_v59 = vld [vmem:[#allocation3 + $0xd8] sm:$0xff] }
 0x3b5   : > { %v4068_v30 = vsel %vm4016_vm4, %v4063_v16, %v4067_v63  ;;  %v4069_v0 = vrot.slane %v3947_v10, 1  ;;  %v3948_v50 = vadd.f32 %v3911_v54, %v10683_v62  ;;  %v10868_v16 = vpop.f32.mrf.mxu0 }
 0x3b6   : > { %4168 = vst.msk [vmem:[#allocation3 + $0xb8] sm:$0xff] %vm2970_vm0, %v4136_v5  ;;  %v10863_v32 = vadd.f32 %v4068_v30, %v11518_v38  ;;  %v3913_v53 = vpop.f32.mrf.mxu1  ;;  %v6185_v30 = vlaneseq }
 0x3b7   : > { %v4070_v31 = vsel %vm4016_vm4, %v4065_v43, %v4069_v0  ;;  %v4071_v57 = vrot.slane %v3948_v50, 1  ;;  %v3949_v25 = vadd.f32 %v3913_v53, %v3608_v58  ;;  %v10877_v7 = vpop.f32.mrf.mxu0  ;;  %v3981_v53 = vld [vmem:[#allocation3 + $0xe8] sm:$0xff] }
 0x3b8   : > { %v4138_v40 = vadd.f32 %v4070_v31, %v3977_v9  ;;  %v3915_v55 = vpop.f32.mrf.mxu1  ;;  %v3983_v9 = vld [vmem:[#allocation3 + $0xf8] sm:$0xff] }
 0x3b9   : > { %v4072_v62 = vsel %vm4016_vm4, %v4067_v63, %v4071_v57  ;;  %v4073_v44 = vrot.slane %v3949_v25, 1  ;;  %v3950_v41 = vadd.f32 %v3915_v55, %v10692_v35 }
 0x3ba   : > { %4170 = vst.msk [vmem:[#allocation3 + $0xc8] sm:$0xff] %vm2970_vm0, %v4138_v40  ;;  %v10874_v33 = vadd.f32 %v4072_v62, %v11519_v22  ;;  %v3917_v43 = vpop.f32.mrf.mxu1  ;;  %v10892_v62 = vpop.f32.mrf.mxu0 }
 0x3bb   : > { %v4074_v18 = vsel %vm4016_vm4, %v4069_v0, %v4073_v44  ;;  %v4075_v10 = vrot.slane %v3950_v41, 1  ;;  %v3951_v5 = vadd.f32 %v3917_v43, %v3612_v2  ;;  %v10894_v41 = vshrl.u32 %v6185_v30, 7 }
 0x3bc   : > { %v4140_v54 = vadd.f32 %v4074_v18, %v3979_v59  ;;  %v4710_v35 = vpop.f32.mrf.mxu1  ;;  %v10903_v59 = vpop.f32.mrf.mxu0 }
 0x3bd   : > { %v4076_v39 = vsel %vm4016_vm4, %v4071_v57, %v4075_v10  ;;  %v4111_v63 = vsel %vm4016_vm4, %v4075_v10, 0.0  ;;  %v4077_v58 = vrot.slane %v3951_v5, 1  ;;  %v4711_v0 = vadd.f32 %v4710_v35, %v10588_v19 }
 0x3be   : > { %4172 = vst.msk [vmem:[#allocation3 + $0xd8] sm:$0xff] %vm2970_vm0, %v4140_v54  ;;  %v10883_v50 = vadd.f32 %v4076_v39, %v10456_v8  ;;  %v10886_v38 = vadd.f32 %v4111_v63, %v10482_v37  ;;  %v4712_v25 = vpop.f32.mrf.mxu1  ;;  %v6187_v10 = vsub.s32 0, %v10894_v41  ;;  %v10916_v30 = vpop.f32.mrf.mxu0 }
 0x3bf   : > { %v4078_v31 = vsel %vm4016_vm4, %v4073_v44, %v4077_v58  ;;  %v4112_v57 = vsel %vm4016_vm4, %v4077_v58, 0.0  ;;  %v4713_v2 = vadd.f32 %v4712_v25, %v10598_v45  ;;  %v5095_v37 = vadd.f32 %v10743_v14, %v4711_v0  ;;  %v11520_v25 = vld [vmem:[#allocation6_spill] sm:$0xff] }
 0x3c0   : > { %v4142_v40 = vadd.f32 %v4078_v31, %v3981_v53  ;;  %v4144_v55 = vadd.f32 %v4112_v57, %v3983_v9  ;;  %v4714_v8 = vpop.f32.mrf.mxu1  ;;  %v5128_v53 = vld [vmem:[#allocation3 + $0x8] sm:$0xff] }
 0x3c1   : > { %v4715_v19 = vadd.f32 %v4714_v8, %v10603_v3  ;;  %v5096_v44 = vadd.f32 %v10750_v47, %v4713_v2  ;;  %v5192_v5 = vrot.slane %v5095_v37, 2  ;;  %v10911_v3 = vld [vmem:[%s11221_s4] sm:$0x3] }
 0x3c2   : > { %4174 = vst.msk [vmem:[#allocation3 + $0xe8] sm:$0xff] %vm2970_vm0, %v4142_v40  ;;  %4176 = vst.msk [vmem:[#allocation3 + $0xf8] sm:$0xff] %vm2970_vm0, %v4144_v55  ;;  %v4716_v22 = vpop.f32.mrf.mxu1 }
 0x3c3   : > { %v5097_v43 = vadd.f32 %v10756_v36, %v4715_v19  ;;  %v4717_v45 = vadd.f32 %v4716_v22, %v10607_v6  ;;  %v5195_v47 = vrot.slane %v5096_v44, 2  ;;  %v10928_v19 = vpop.f32.mrf.mxu0 }
 0x3c4   : > { %v4720_v18 = vpop.f32.mrf.mxu1 }
 0x3c5   : > { %v5193_v54 = vrot.slane %v5097_v43, 2  ;;  %v5098_v39 = vadd.f32 %v10763_v56, %v4717_v45  ;;  %v4721_v14 = vadd.f32 %v4720_v18, %v10612_v52  ;;  %v10920_v52 = vrot.slane %v10911_v3, %v6187_v10  ;;  %v5130_v43 = vld [vmem:[#allocation3 + $0x18] sm:$0xff] }
 0x3c6   : > { %v4722_v36 = vpop.f32.mrf.mxu1 }
 0x3c7   : > { %v5194_v6 = vsel %vm5191_vm5, %v5192_v5, %v5193_v54  ;;  %v5196_v63 = vrot.slane %v5098_v39, 2  ;;  %v5099_v58 = vadd.f32 %v10769_v29, %v4721_v14  ;;  %v4723_v35 = vadd.f32 %v4722_v36, %v10617_v1  ;;  %v11522_v5 = vld [vmem:[#allocation29_spill] sm:$0xff] }
 0x3c8   : > { %v5288_v56 = vadd.f32 %v5194_v6, %v10721_v26  ;;  %v4724_v0 = vpop.f32.mrf.mxu1  ;;  %v11521_v26 = vld [vmem:[#allocation7_spill] sm:$0xff]  ;;  %v11523_v6 = vld [vmem:[#allocation22_spill] sm:$0xff] }
 0x3c9   : > { %v5197_v9 = vsel %vm5191_vm5, %v5195_v47, %v5196_v63  ;;  %v5198_v31 = vrot.slane %v5099_v58, 2  ;;  %v5100_v57 = vadd.f32 %v10776_v49, %v4723_v35  ;;  %v4725_v40 = vadd.f32 %v4724_v0, %v11520_v25  ;;  %v10940_v35 = vpop.f32.mrf.mxu0  ;;  %v11524_v25 = vld [vmem:[#allocation61_spill] sm:$0xff] }
 0x3ca   : > { %v5289_v55 = vadd.f32 %v5197_v9, %v5128_v53  ;;  %v4726_v29 = vpop.f32.mrf.mxu1  ;;  %v6195_v49 = vadd.f32 %v10920_v52, %v5288_v56  ;;  %v5132_v53 = vld [vmem:[#allocation3 + $0x28] sm:$0xff] }
 0x3cb   : > { %v5199_v1 = vsel %vm5191_vm5, %v5193_v54, %v5198_v31  ;;  %v5200_v2 = vrot.slane %v5100_v57, 2  ;;  %v5101_v8 = vadd.f32 %v10782_v13, %v4725_v40  ;;  %v4727_v37 = vadd.f32 %v4726_v29, %v11521_v26  ;;  %v11525_v26 = vld [vmem:[#allocation55_spill] sm:$0xff] }
 0x3cc   : > { %5321 = vst.msk [vmem:[#allocation3 + $0x8] sm:$0xff] %vm2970_vm0, %v5289_v55  ;;  %v5290_v44 = vadd.f32 %v5199_v1, %v10734_v60  ;;  %v4730_v22 = vpop.f32.mrf.mxu1  ;;  %v6227_v56 = vmax.f32 %v6195_v49, 0.0  ;;  %v5134_v49 = vld [vmem:[#allocation3 + $0x38] sm:$0xff] }
 0x3cd   : > { %v5201_v45 = vsel %vm5191_vm5, %v5196_v63, %v5200_v2  ;;  %v5202_v18 = vrot.slane %v5101_v8, 2  ;;  %v5102_v10 = vadd.f32 %v10792_v4, %v4727_v37  ;;  %v4731_v54 = vadd.f32 %v4730_v22, %v11522_v5 }
 0x3ce   : > { %v5291_v13 = vadd.f32 %v5201_v45, %v5130_v43  ;;  %v4732_v39 = vpop.f32.mrf.mxu1  ;;  %v6197_v14 = vadd.f32 %v10920_v52, %v5290_v44  ;;  %v10952_v44 = vpop.f32.mrf.mxu0 }
 0x3cf   : > { %v5203_v47 = vsel %vm5191_vm5, %v5198_v31, %v5202_v18  ;;  %v5204_v36 = vrot.slane %v5102_v10, 2  ;;  %v5103_v60 = vadd.f32 %v10803_v21, %v4731_v54  ;;  %v4733_v58 = vadd.f32 %v4732_v39, %v11523_v6  ;;  %v11526_v10 = vld [vmem:[#allocation31_spill] sm:$0xff] }
 0x3d0   : > { %5323 = vst.msk [vmem:[#allocation3 + $0x18] sm:$0xff] %vm2970_vm0, %v5291_v13  ;;  %v5292_v63 = vadd.f32 %v5203_v47, %v10747_v48  ;;  %v4734_v4 = vpop.f32.mrf.mxu1  ;;  %v6229_v0 = vmax.f32 %v6197_v14, 0.0  ;;  %v11527_v47 = vld [vmem:[#allocation24_spill] sm:$0xff]  ;;  %v10964_v6 = vpop.f32.mrf.mxu0 }
 0x3d1   : > { %v5205_v9 = vsel %vm5191_vm5, %v5200_v2, %v5204_v36  ;;  %v5206_v57 = vrot.slane %v5103_v60, 2  ;;  %v5104_v31 = vadd.f32 %v10813_v15, %v4733_v58  ;;  %v4735_v40 = vadd.f32 %v4734_v4, %v11524_v25  ;;  %v5136_v4 = vld [vmem:[#allocation3 + $0x48] sm:$0xff] }
 0x3d2   : > { %v5293_v21 = vadd.f32 %v5205_v9, %v5132_v53  ;;  %v4736_v55 = vpop.f32.mrf.mxu1  ;;  %v10947_v29 = vpack.c.bf16 %v6229_v0, %v6227_v56  ;;  %v6199_v22 = vadd.f32 %v10920_v52, %v5292_v63  ;;  %v11528_v9 = vld [vmem:[#allocation33_spill] sm:$0xff] }
 0x3d3   : > { %v5207_v1 = vsel %vm5191_vm5, %v5202_v18, %v5206_v57  ;;  %v5208_v8 = vrot.slane %v5104_v31, 2  ;;  %v5105_v48 = vadd.f32 %v10824_v42, %v4735_v40  ;;  %v4737_v37 = vadd.f32 %v4736_v55, %v11525_v26  ;;  %v11529_v55 = vld [vmem:[#allocation26_spill] sm:$0xff] }
 0x3d4   : > { %5325 = vst.msk [vmem:[#allocation3 + $0x28] sm:$0xff] %vm2970_vm0, %v5293_v21  ;;  %v5294_v2 = vadd.f32 %v5207_v1, %v10760_v34  ;;  %v4740_v15 = vpop.f32.mrf.mxu1  ;;  %v6231_v58 = vmax.f32 %v6199_v22, 0.0 }
 0x3d5   : > { %v5209_v43 = vsel %vm5191_vm5, %v5204_v36, %v5208_v8  ;;  %v5210_v45 = vrot.slane %v5105_v48, 2  ;;  %v5106_v18 = vadd.f32 %v10835_v28, %v4737_v37  ;;  %v4741_v5 = vadd.f32 %v4740_v15, %v11526_v10  ;;  %v10976_v48 = vpop.f32.mrf.mxu0  ;;  %v5138_v37 = vld [vmem:[#allocation3 + $0x58] sm:$0xff] }
 0x3d6   : > { %v5295_v42 = vadd.f32 %v5209_v43, %v5134_v49  ;;  %v4742_v54 = vpop.f32.mrf.mxu1  ;;  %v6201_v13 = vadd.f32 %v10920_v52, %v5294_v2  ;;  %v11530_v49 = vld [vmem:[#allocation35_spill] sm:$0xff] }
 0x3d7   : > { %v5211_v39 = vsel %vm5191_vm5, %v5206_v57, %v5210_v45  ;;  %v5212_v14 = vrot.slane %v5106_v18, 2  ;;  %v5107_v34 = vadd.f32 %v10846_v11, %v4741_v5  ;;  %v4743_v60 = vadd.f32 %v4742_v54, %v11527_v47  ;;  %v5140_v47 = vld [vmem:[#allocation3 + $0x68] sm:$0xff] }
 0x3d8   : > { %5327 = vst.msk [vmem:[#allocation3 + $0x38] sm:$0xff] %vm2970_vm0, %v5295_v42  ;;  %v5296_v36 = vadd.f32 %v5211_v39, %v10773_v20  ;;  %v4744_v28 = vpop.f32.mrf.mxu1  ;;  %v6233_v63 = vmax.f32 %v6201_v13, 0.0  ;;  %v11531_v42 = vld [vmem:[#allocation28_spill] sm:$0xff]  ;;  %v10988_v13 = vpop.f32.mrf.mxu0 }
 0x3d9   : > { %v5213_v56 = vsel %vm5191_vm5, %v5208_v8, %v5212_v14  ;;  %v5214_v0 = vrot.slane %v5107_v34, 2  ;;  %v5108_v53 = vadd.f32 %v10857_v17, %v4743_v60  ;;  %v4745_v57 = vadd.f32 %v4744_v28, %v11528_v9  ;;  %v11533_v9 = vld [vmem:[#allocation9_spill] sm:$0xff] }
 0x3da   : > { %v5297_v11 = vadd.f32 %v5213_v56, %v5136_v4  ;;  %v4746_v31 = vpop.f32.mrf.mxu1  ;;  %v10971_v25 = vpack.c.bf16 %v6233_v63, %v6231_v58  ;;  %v6203_v26 = vadd.f32 %v10920_v52, %v5296_v36  ;;  %v11532_v58 = vld [vmem:[#allocation8_spill] sm:$0xff] }
 0x3db   : > { %v5215_v40 = vsel %vm5191_vm5, %v5210_v45, %v5214_v0  ;;  %v5216_v21 = vrot.slane %v5108_v53, 2  ;;  %v5109_v20 = vadd.f32 %v10868_v16, %v4745_v57  ;;  %v4747_v1 = vadd.f32 %v4746_v31, %v11529_v55 }
 0x3dc   : > { %5329 = vst.msk [vmem:[#allocation3 + $0x48] sm:$0xff] %vm2970_vm0, %v5297_v11  ;;  %v5298_v8 = vadd.f32 %v5215_v40, %v10786_v24  ;;  %v4750_v17 = vpop.f32.mrf.mxu1  ;;  %v5078_v11 = vpop.f32.mrf.mxu0 }
 0x3dd   : > { %v5217_v2 = vsel %vm5191_vm5, %v5212_v14, %v5216_v21  ;;  %v5218_v15 = vrot.slane %v5109_v20, 2  ;;  %v5110_v22 = vadd.f32 %v10877_v7, %v4747_v1  ;;  %v4751_v43 = vadd.f32 %v4750_v17, %v11530_v49 }
 0x3de   : > { %v5299_v16 = vadd.f32 %v5217_v2, %v5138_v37  ;;  %v4752_v45 = vpop.f32.mrf.mxu1  ;;  %v6205_v18 = vadd.f32 %v10920_v52, %v5298_v8  ;;  %v6235_v14 = vmax.f32 %v6203_v26, 0.0  ;;  %v11534_v8 = vld [vmem:[#allocation37_spill] sm:$0xff] }
 0x3df   : > { %v5219_v10 = vsel %vm5191_vm5, %v5214_v0, %v5218_v15  ;;  %v5220_v5 = vrot.slane %v5110_v22, 2  ;;  %v5111_v24 = vadd.f32 %v10892_v62, %v4751_v43  ;;  %v4753_v54 = vadd.f32 %v4752_v45, %v11531_v42  ;;  %v11535_v22 = vld [vmem:[#allocation30_spill] sm:$0xff]  ;;  %v5080_v43 = vpop.f32.mrf.mxu0 }
 0x3e0   : > { %5331 = vst.msk [vmem:[#allocation3 + $0x58] sm:$0xff] %vm2970_vm0, %v5299_v16  ;;  %v5300_v39 = vadd.f32 %v5219_v10, %v10797_v27  ;;  %v4754_v7 = vpop.f32.mrf.mxu1  ;;  %v6237_v34 = vmax.f32 %v6205_v18, 0.0  ;;  %v5144_v10 = vld [vmem:[#allocation3 + $0x88] sm:$0xff] }
 0x3e1   : > { %v5221_v60 = vsel %vm5191_vm5, %v5216_v21, %v5220_v5  ;;  %v5222_v36 = vrot.slane %v5111_v24, 2  ;;  %v5112_v28 = vadd.f32 %v10903_v59, %v4753_v54  ;;  %v4755_v63 = vadd.f32 %v4754_v7, %v11532_v58  ;;  %v5142_v21 = vld [vmem:[#allocation3 + $0x78] sm:$0xff]  ;;  %v11536_v54 = vld [vmem:[#allocation40_spill] sm:$0xff] }
 0x3e2   : > { %v5301_v62 = vadd.f32 %v5221_v60, %v5140_v47  ;;  %v4756_v4 = vpop.f32.mrf.mxu1  ;;  %v10995_v56 = vpack.c.bf16 %v6237_v34, %v6235_v14  ;;  %v6207_v59 = vadd.f32 %v10920_v52, %v5300_v39  ;;  %v11537_v60 = vld [vmem:[#allocation32_spill] sm:$0xff] }
 0x3e3   : > { %v5223_v0 = vsel %vm5191_vm5, %v5218_v15, %v5222_v36  ;;  %v5224_v53 = vrot.slane %v5112_v28, 2  ;;  %v5113_v27 = vadd.f32 %v10916_v30, %v4755_v63  ;;  %v4757_v57 = vadd.f32 %v4756_v4, %v11533_v9  ;;  %v5082_v28 = vpop.f32.mrf.mxu0 }
 0x3e4   : > { %5333 = vst.msk [vmem:[#allocation3 + $0x68] sm:$0xff] %vm2970_vm0, %v5301_v62  ;;  %v5302_v31 = vadd.f32 %v5223_v0, %v10808_v51  ;;  %v5146_v62 = vld [vmem:[#allocation3 + $0x98] sm:$0xff] }
 0x3e5   : > { %v5225_v20 = vsel %vm5191_vm5, %v5220_v5, %v5224_v53  ;;  %v5226_v55 = vrot.slane %v5113_v27, 2  ;;  %v5114_v1 = vadd.f32 %v10928_v19, %v4757_v57  ;;  %v6239_v19 = vmax.f32 %v6207_v59, 0.0  ;;  %v11538_v27 = vld [vmem:[#allocation42_spill] sm:$0xff] }
 0x3e6   : > { %v5303_v26 = vadd.f32 %v5225_v20, %v5142_v21  ;;  %v6209_v37 = vadd.f32 %v10920_v52, %v5302_v31  ;;  %v5086_v31 = vpop.f32.mrf.mxu0  ;;  %v11539_v20 = vld [vmem:[#allocation34_spill] sm:$0xff] }
 0x3e7   : > { %v4760_v40 = vpop.f32.mrf.mxu1  ;;  %v5227_v2 = vsel %vm5191_vm5, %v5222_v36, %v5226_v55  ;;  %v5228_v15 = vrot.slane %v5114_v1, 2 }
 0x3e8   : > { %v4761_v17 = vadd.f32 %v4760_v40, %v11534_v8  ;;  %5335 = vst.msk [vmem:[#allocation3 + $0x78] sm:$0xff] %vm2970_vm0, %v5303_v26  ;;  %v5304_v16 = vadd.f32 %v5227_v2, %v10819_v12  ;;  %v6241_v18 = vmax.f32 %v6209_v37, 0.0  ;;  %v5148_v26 = vld [vmem:[#allocation3 + $0xa8] sm:$0xff] }
 0x3e9   : > { %v4762_v30 = vpop.f32.mrf.mxu1  ;;  %v5229_v5 = vsel %vm5191_vm5, %v5224_v53, %v5228_v15 }
 0x3ea   : > { %v5115_v51 = vadd.f32 %v10940_v35, %v4761_v17  ;;  %v4763_v49 = vadd.f32 %v4762_v30, %v11535_v22  ;;  %v5305_v7 = vadd.f32 %v5229_v5, %v5144_v10  ;;  %v11015_v14 = vpack.c.bf16 %v6241_v18, %v6239_v19 }
 0x3eb   : > { %v4764_v45 = vpop.f32.mrf.mxu1 }
 0x3ec   : > { %v5230_v24 = vrot.slane %v5115_v51, 2  ;;  %v5116_v42 = vadd.f32 %v10952_v44, %v4763_v49  ;;  %v4765_v39 = vadd.f32 %v4764_v45, %v11536_v54  ;;  %5337 = vst.msk [vmem:[#allocation3 + $0x88] sm:$0xff] %vm2970_vm0, %v5305_v7  ;;  %v6211_v44 = vadd.f32 %v10920_v52, %v5304_v16  ;;  %v5088_v16 = vpop.f32.mrf.mxu0 }
 0x3ed   : > { %v4766_v35 = vpop.f32.mrf.mxu1 }
 0x3ee   : > { %v5231_v34 = vsel %vm5191_vm5, %v5226_v55, %v5230_v24  ;;  %v5232_v47 = vrot.slane %v5116_v42, 2  ;;  %v5117_v12 = vadd.f32 %v10964_v6, %v4765_v39  ;;  %v4767_v36 = vadd.f32 %v4766_v35, %v11537_v60  ;;  %v5150_v42 = vld [vmem:[#allocation3 + $0xb8] sm:$0xff]  ;;  %v11542_v35 = vld [vmem:[#allocation10_spill] sm:$0xff]  ;;  %v5090_v60 = vpop.f32.mrf.mxu0 }
 0x3ef   : > { %v5306_v58 = vadd.f32 %v5231_v34, %v10830_v46  ;;  %v4770_v63 = vpop.f32.mrf.mxu1 }
 0x3f0   : > { %v5233_v4 = vsel %vm5191_vm5, %v5228_v15, %v5232_v47  ;;  %v5234_v0 = vrot.slane %v5117_v12, 2  ;;  %v5118_v53 = vadd.f32 %v10976_v48, %v4767_v36  ;;  %v4771_v9 = vadd.f32 %v4770_v63, %v11538_v27  ;;  %v11540_v15 = vld [vmem:[#allocation44_spill] sm:$0xff]  ;;  %v11543_v63 = vld [vmem:[#allocation11_spill] sm:$0xff] }
 0x3f1   : > { %v5307_v57 = vadd.f32 %v5233_v4, %v5146_v62  ;;  %v4772_v6 = vpop.f32.mrf.mxu1  ;;  %v6213_v40 = vadd.f32 %v10920_v52, %v5306_v58  ;;  %v6243_v48 = vmax.f32 %v6211_v44, 0.0 }
 0x3f2   : > { %v5235_v59 = vsel %vm5191_vm5, %v5230_v24, %v5234_v0  ;;  %v5236_v21 = vrot.slane %v5118_v53, 2  ;;  %v5119_v46 = vadd.f32 %v10988_v13, %v4771_v9  ;;  %v4773_v55 = vadd.f32 %v4772_v6, %v11539_v20  ;;  %v5152_v53 = vld [vmem:[#allocation3 + $0xc8] sm:$0xff] }
 0x3f3   : > { %5339 = vst.msk [vmem:[#allocation3 + $0x98] sm:$0xff] %vm2970_vm0, %v5307_v57  ;;  %v5308_v1 = vadd.f32 %v5235_v59, %v10841_v23  ;;  %v4774_v8 = vpop.f32.mrf.mxu1  ;;  %v6245_v17 = vmax.f32 %v6213_v40, 0.0  ;;  %v11541_v23 = vld [vmem:[#allocation36_spill] sm:$0xff]  ;;  %v11544_v57 = vld [vmem:[#allocation46_spill] sm:$0xff] }
 0x3f4   : > { %v5237_v30 = vsel %vm5191_vm5, %v5232_v47, %v5236_v21  ;;  %v5238_v37 = vrot.slane %v5119_v46, 2  ;;  %v5120_v2 = vadd.f32 %v5078_v11, %v4773_v55  ;;  %v4775_v51 = vadd.f32 %v4774_v8, %v11540_v15  ;;  %v5092_v46 = vpop.f32.mrf.mxu0 }
 0x3f5   : > { %v5309_v22 = vadd.f32 %v5237_v30, %v5148_v26  ;;  %v4776_v49 = vpop.f32.mrf.mxu1  ;;  %v11034_v13 = vpack.c.bf16 %v6245_v17, %v6243_v48  ;;  %v6215_v11 = vadd.f32 %v10920_v52, %v5308_v1  ;;  %v11545_v1 = vld [vmem:[#allocation39_spill] sm:$0xff] }
 0x3f6   : > { %v5239_v45 = vsel %vm5191_vm5, %v5234_v0, %v5238_v37  ;;  %v5240_v19 = vrot.slane %v5120_v2, 2  ;;  %v5121_v18 = vadd.f32 %v5080_v43, %v4775_v51  ;;  %v4777_v10 = vadd.f32 %v4776_v49, %v11541_v23  ;;  %v5154_v26 = vld [vmem:[#allocation3 + $0xd8] sm:$0xff] }
 0x3f7   : > { %5341 = vst.msk [vmem:[#allocation3 + $0xa8] sm:$0xff] %vm2970_vm0, %v5309_v22  ;;  %v5310_v5 = vadd.f32 %v5239_v45, %v10852_v61  ;;  %v4780_v24 = vpop.f32.mrf.mxu1  ;;  %v6247_v0 = vmax.f32 %v6215_v11, 0.0 }
 0x3f8   : > { %v5241_v54 = vsel %vm5191_vm5, %v5236_v21, %v5240_v19  ;;  %v5242_v39 = vrot.slane %v5121_v18, 2  ;;  %v5122_v7 = vadd.f32 %v5082_v28, %v4777_v10  ;;  %v4781_v34 = vadd.f32 %v4780_v24, %v11542_v35  ;;  %v5158_v24 = vld [vmem:[#allocation3 + $0xf8] sm:$0xff] }
 0x3f9   : > { %v5311_v47 = vadd.f32 %v5241_v54, %v5150_v42  ;;  %v4782_v12 = vpop.f32.mrf.mxu1  ;;  %v6217_v43 = vadd.f32 %v10920_v52, %v5310_v5  ;;  %v5156_v5 = vld [vmem:[#allocation3 + $0xe8] sm:$0xff] }
 0x3fa   : > { %v5243_v36 = vsel %vm5191_vm5, %v5238_v37, %v5242_v39  ;;  %v5244_v58 = vrot.slane %v5122_v7, 2  ;;  %v4783_v61 = vadd.f32 %v4782_v12, %v11543_v63  ;;  %v5123_v44 = vadd.f32 %v5086_v31, %v4781_v34 }
 0x3fb   : > { %5343 = vst.msk [vmem:[#allocation3 + $0xb8] sm:$0xff] %vm2970_vm0, %v5311_v47  ;;  %v5312_v62 = vadd.f32 %v5243_v36, %v10863_v32  ;;  %v4784_v4 = vpop.f32.mrf.mxu1  ;;  %v6249_v28 = vmax.f32 %v6217_v43, 0.0 }
 0x3fc   : > { %v5245_v27 = vsel %vm5191_vm5, %v5240_v19, %v5244_v58  ;;  %v5246_v9 = vrot.slane %v5123_v44, 2  ;;  %v4785_v6 = vadd.f32 %v4784_v4, %v11544_v57  ;;  %v5124_v40 = vadd.f32 %v5088_v16, %v4783_v61  ;;  %v6283_v57 = vld [vmem:[%s11224_s7] sm:$0xff] }
 0x3fd   : > { %v5313_v59 = vadd.f32 %v5245_v27, %v5152_v53  ;;  %v4786_v21 = vpop.f32.mrf.mxu1  ;;  %v11050_v20 = vpack.c.bf16 %v6249_v28, %v6247_v0  ;;  %v6219_v15 = vadd.f32 %v10920_v52, %v5312_v62  ;;  %v8163_v27 = vld [vmem:[%s11223_s6 + $0x4] ss:$8 sps:$4 sm:$0xff]  }
 0x3fe   : > { %v5247_v31 = vsel %vm5191_vm5, %v5242_v39, %v5246_v9  ;;  %v5248_v55 = vrot.slane %v5124_v40, 2  ;;  %v4787_v32 = vadd.f32 %v4786_v21, %v11545_v1  ;;  %v5125_v8 = vadd.f32 %v5090_v60, %v4785_v6  ;;  %7359 = vmatprep.mubr.msk.bf16.mxu0 %vm2970_vm0, %v8163_v27  ;;  %v6285_v6 = vld [vmem:[%s11224_s7 + $0x10] sm:$0xff]  ;;  %v6284_v40 = vld [vmem:[%s11224_s7 + $0x8] sm:$0xff]  ;;  %v6286_v21 = vld [vmem:[%s11224_s7 + $0x18] sm:$0xff] }
 0x3ff   : > { %5345 = vst.msk [vmem:[#allocation3 + $0xc8] sm:$0xff] %vm2970_vm0, %v5313_v59  ;;  %v5314_v48 = vadd.f32 %v5247_v31, %v10874_v33  ;;  %v7612_v17 = vpop.f32.mrf.mxu1  ;;  %v6251_v54 = vmax.f32 %v6219_v15, 0.0  ;;  %v6287_v59 = vld [vmem:[%s11224_s7 + $0x20] sm:$0xff]  ;;  %v6288_v31 = vld [vmem:[%s11224_s7 + $0x28] sm:$0xff] }
 0x400   : > { %v5249_v30 = vsel %vm5191_vm5, %v5244_v58, %v5248_v55  ;;  %v5250_v37 = vrot.slane %v5125_v8, 2  ;;  %v5126_v2 = vadd.f32 %v5092_v46, %v4787_v32  ;;  %v6289_v46 = vld [vmem:[%s11224_s7 + $0x30] sm:$0xff] }
 0x401   : > { %v5315_v51 = vadd.f32 %v5249_v30, %v5154_v26  ;;  %v5991_v22 = vpop.f32.mrf.mxu1  ;;  %v6221_v49 = vadd.f32 %v10920_v52, %v5314_v48 }
 0x402   : > { %v5251_v16 = vsel %vm5191_vm5, %v5246_v9, %v5250_v37  ;;  %v5286_v45 = vsel %vm5191_vm5, %v5250_v37, 0.0  ;;  %v5252_v19 = vrot.slane %v5126_v2, 2  ;;  %v8166_v9 = vld [vmem:[%s11223_s6 + $0x24] ss:$8 sps:$4 sm:$0xff]   ;;  %v6191_v37 = vsub.s32 1, %v10894_v41 }
 0x403   : > { %5347 = vst.msk [vmem:[#allocation3 + $0xd8] sm:$0xff] %vm2970_vm0, %v5315_v51  ;;  %v5316_v33 = vadd.f32 %v5251_v16, %v10883_v50  ;;  %v5318_v18 = vadd.f32 %v5286_v45, %v10886_v38  ;;  %v7613_v23 = vpop.f32.mrf.mxu1  ;;  %v6253_v10 = vmax.f32 %v6221_v49, 0.0  ;;  %7361 = vmatprep.mubr.msk.bf16.mxu1 %vm2970_vm0, %v8166_v9 }
 0x404   : > { %v5253_v11 = vsel %vm5191_vm5, %v5248_v55, %v5252_v19  ;;  %v5287_v42 = vsel %vm5191_vm5, %v5252_v19, 0.0  ;;  %v6290_v55 = vld [vmem:[%s11224_s7 + $0x38] sm:$0xff]  ;;  %v11111_v45 = vrot.slane %v10911_v3, %v6191_v37 }
 0x405   : > { %v5317_v39 = vadd.f32 %v5253_v11, %v5156_v5  ;;  %v5319_v7 = vadd.f32 %v5287_v42, %v5158_v24  ;;  %v5994_v35 = vpop.f32.mrf.mxu1  ;;  %v6223_v34 = vadd.f32 %v10920_v52, %v5316_v33  ;;  %v6225_v47 = vadd.f32 %v10920_v52, %v5318_v18  ;;  %v5856_v5 = vld [vmem:[#allocation3 + $0xb8] sm:$0xff] }
 0x406   : > { %v11068_v12 = vpack.c.bf16 %v6253_v10, %v6251_v54 }
 0x407   : > { %5351 = vst.msk [vmem:[#allocation3 + $0xf8] sm:$0xff] %vm2970_vm0, %v5319_v7  ;;  %5349 = vst.msk [vmem:[#allocation3 + $0xe8] sm:$0xff] %vm2970_vm0, %v5317_v39  ;;  %v6255_v38 = vmax.f32 %v6223_v34, 0.0  ;;  %v6257_v60 = vmax.f32 %v6225_v47, 0.0  ;;  %v5854_v47 = vld [vmem:[#allocation3 + $0x98] sm:$0xff] }
 0x408   : > { %v7616_v50 = vpop.f32.mrf.mxu1 }
 0x409   : > { %v11072_v36 = vpack.c.bf16 %v6257_v60, %v6255_v38 }
 0x40a   : > { %v6007_v43 = vpop.f32.mrf.mxu1  ;;  %v5858_v16 = vld [vmem:[#allocation3 + $0xd8] sm:$0xff] }
 0x40c   : > { %v7617_v58 = vpop.f32.mrf.mxu1 }
 0x40e   : > { %v6010_v63 = vpop.f32.mrf.mxu1  ;;  %v5859_v32 = vld [vmem:[#allocation3 + $0xe8] sm:$0xff]  ;;  %v5860_v30 = vld [vmem:[#allocation3 + $0xf8] sm:$0xff] }
 0x411   : > { %v7620_v61 = vpop.f32.mrf.mxu1 }
 0x413   : > { %v6023_v44 = vpop.f32.mrf.mxu1 }
 0x415   : > { %v7621_v62 = vpop.f32.mrf.mxu1 }
 0x417   : > { %v6026_v4 = vpop.f32.mrf.mxu1 }
 0x419   : > { %v7624_v0 = vpop.f32.mrf.mxu1 }
 0x41a   : > { %6098 = vrot.lane.b32.xlu1 %v7624_v0, %s8217_s25 }
 0x41b   : > { %v6039_v52 = vpop.f32.mrf.mxu1 }
 0x41d   : > { %v7625_v28 = vpop.f32.mrf.mxu1 }
 0x41e   : > { %6094 = vrot.lane.b32.xlu1 %v6039_v52, %s8217_s25  ;;  %6100 = vrot.lane.b32.xlu0 %v7625_v28, %s8217_s25  ;;  %v5852_v52 = vld [vmem:[#allocation3 + $0x78] sm:$0xff] }
 0x41f   : > { %v6042_v53 = vpop.f32.mrf.mxu1 }
 0x422   : > { %6090 = vrot.lane.b32.xlu1 %v7620_v61, %s8217_s25  ;;  %6096 = vrot.lane.b32.xlu0 %v6042_v53, %s8217_s25 }
 0x426   : > { %6086 = vrot.lane.b32.xlu1 %v6023_v44, %s8217_s25  ;;  %6092 = vrot.lane.b32.xlu0 %v7621_v62, %s8217_s25 }
 0x42a   : > { %6082 = vrot.lane.b32.xlu1 %v7616_v50, %s8217_s25  ;;  %6088 = vrot.lane.b32.xlu0 %v6026_v4, %s8217_s25  ;;  %v5849_v4 = vld [vmem:[#allocation3 + $0x48] sm:$0xff] }
 0x42e   : > { %6078 = vrot.lane.b32.xlu1 %v6007_v43, %s8217_s25  ;;  %6084 = vrot.lane.b32.xlu0 %v7617_v58, %s8217_s25 }
 0x432   : > { %6074 = vrot.lane.b32.xlu1 %v7612_v17, %s8217_s25  ;;  %6080 = vrot.lane.b32.xlu0 %v6010_v63, %s8217_s25  ;;  %v5857_v17 = vld [vmem:[#allocation3 + $0xc8] sm:$0xff] }
 0x436   : > { %6070 = vrot.lane.b32.xlu1 %v5991_v22, %s8217_s25  ;;  %6076 = vrot.lane.b32.xlu0 %v7613_v23, %s8217_s25  ;;  %v5855_v22 = vld [vmem:[#allocation3 + $0xa8] sm:$0xff] }
 0x437   : > { %v5853_v23 = vld [vmem:[#allocation3 + $0x88] sm:$0xff] }
 0x43a   : > { %6072 = vrot.lane.b32.xlu0 %v5994_v35, %s8217_s25  ;;  %6293 = vperm.xlu1 %7675, %v6283_v57   ;;  %v5851_v35 = vld [vmem:[#allocation3 + $0x68] sm:$0xff]  ;;  %s11198_s25 = scalar_lea.vmem %s11225_s8, %s7365_s23 }
 0x43e   : > { %6298 = vperm.xlu0 %7676, %v6284_v40   ;;  %6303 = vperm.xlu1 %7675, %v6285_v6  }
 0x442   : > { %6313 = vperm.xlu0 %7676, %v6287_v59   ;;  %6308 = vperm.xlu1 %7675, %v6286_v21  }
 0x446   : > { %6323 = vperm.xlu0 %7676, %v6289_v46   ;;  %6318 = vperm.xlu1 %7675, %v6288_v31   ;;  %v5847_v31 = vld [vmem:[#allocation3 + $0x28] sm:$0xff] }
 0x44a   : > { %6328 = vperm.xlu1 %7675, %v6290_v55  }
 0x48c   : > { %v6099_v1 = vpop.permute.xlu1 %6098 }
 0x48d   : > { %v6132_v8 = vadd.f32 %v6099_v1, %v5859_v32  ;;  %v5850_v1 = vld [vmem:[#allocation3 + $0x58] sm:$0xff] }
 0x48f   : > { %6149 = vst.msk [vmem:[#allocation3 + $0xe8] sm:$0xff] %vm6134_vm6, %v6132_v8 }
 0x490   : > { %v6095_v48 = vpop.permute.xlu1 %6094  ;;  %v6101_v26 = vpop.permute.xlu0 %6100 }
 0x491   : > { %v6130_v2 = vadd.f32 %v6095_v48, %v5857_v17  ;;  %v6133_v15 = vadd.f32 %v6101_v26, %v5860_v30  ;;  %v5845_v30 = vld [vmem:[#allocation3 + $0x8] sm:$0xff] }
 0x493   : > { %6147 = vst.msk [vmem:[#allocation3 + $0xc8] sm:$0xff] %vm6134_vm6, %v6130_v2  ;;  %6150 = vst.msk [vmem:[#allocation3 + $0xf8] sm:$0xff] %vm6134_vm6, %v6133_v15  ;;  %v5848_v2 = vld [vmem:[#allocation3 + $0x38] sm:$0xff] }
 0x494   : > { %v6091_v51 = vpop.permute.xlu1 %6090  ;;  %v6097_v49 = vpop.permute.xlu0 %6096 }
 0x495   : > { %v6128_v19 = vadd.f32 %v6091_v51, %v5855_v22  ;;  %v6131_v33 = vadd.f32 %v6097_v49, %v5858_v16 }
 0x496   : > { %v6180_v18 = vld [vmem:[#allocation3 + $0xe8] sm:$0xff] }
 0x497   : > { %6145 = vst.msk [vmem:[#allocation3 + $0xa8] sm:$0xff] %vm6134_vm6, %v6128_v19  ;;  %6148 = vst.msk [vmem:[#allocation3 + $0xd8] sm:$0xff] %vm6134_vm6, %v6131_v33  ;;  %v6224_v24 = vadd.f32 %v11111_v45, %v6180_v18  ;;  %v5846_v18 = vld [vmem:[#allocation3 + $0x18] sm:$0xff] }
 0x498   : > { %v6087_v41 = vpop.permute.xlu1 %6086  ;;  %v6093_v10 = vpop.permute.xlu0 %6092 }
 0x499   : > { %v6126_v11 = vadd.f32 %v6087_v41, %v5853_v23  ;;  %v6129_v42 = vadd.f32 %v6093_v10, %v5856_v5  ;;  %v6256_v50 = vmax.f32 %v6224_v24, 0.0 }
 0x49a   : > { %v6182_v54 = vld [vmem:[#allocation3 + $0xf8] sm:$0xff]  ;;  %v6176_v39 = vld [vmem:[#allocation3 + $0xc8] sm:$0xff] }
 0x49b   : > { %6143 = vst.msk [vmem:[#allocation3 + $0x88] sm:$0xff] %vm6134_vm6, %v6126_v11  ;;  %6146 = vst.msk [vmem:[#allocation3 + $0xb8] sm:$0xff] %vm6134_vm6, %v6129_v42  ;;  %v6226_v3 = vadd.f32 %v11111_v45, %v6182_v54  ;;  %v6220_v58 = vadd.f32 %v11111_v45, %v6176_v39 }
 0x49c   : > { %v6083_v7 = vpop.permute.xlu1 %6082  ;;  %v6089_v34 = vpop.permute.xlu0 %6088 }
 0x49d   : > { %v6124_v38 = vadd.f32 %v6083_v7, %v5851_v35  ;;  %v6127_v60 = vadd.f32 %v6089_v34, %v5854_v47  ;;  %v6258_v43 = vmax.f32 %v6226_v3, 0.0  ;;  %v6252_v9 = vmax.f32 %v6220_v58, 0.0 }
 0x49e   : > { %v6178_v63 = vld [vmem:[#allocation3 + $0xd8] sm:$0xff]  ;;  %v6172_v28 = vld [vmem:[#allocation3 + $0xa8] sm:$0xff] }
 0x49f   : > { %6141 = vst.msk [vmem:[#allocation3 + $0x68] sm:$0xff] %vm6134_vm6, %v6124_v38  ;;  %6144 = vst.msk [vmem:[#allocation3 + $0x98] sm:$0xff] %vm6134_vm6, %v6127_v60  ;;  %v6274_v61 = vpack.c.bf16 %v6258_v43, %v6256_v50  ;;  %v6222_v44 = vadd.f32 %v11111_v45, %v6178_v63  ;;  %v6216_v59 = vadd.f32 %v11111_v45, %v6172_v28 }
 0x4a0   : > { %v6079_v62 = vpop.permute.xlu1 %6078  ;;  %v6085_v0 = vpop.permute.xlu0 %6084 }
 0x4a1   : > { %v6122_v53 = vadd.f32 %v6079_v62, %v5849_v4  ;;  %v6125_v27 = vadd.f32 %v6085_v0, %v5852_v52  ;;  %7351 = vmatprep.subr.msk.bf16.mxu0 %vm2970_vm0, %v6274_v61  ;;  %7626 = vmatprep.subr.msk.bf16.mxu1 %vm2970_vm0, %v6274_v61  ;;  %v6254_v57 = vmax.f32 %v6222_v44, 0.0  ;;  %v6248_v17 = vmax.f32 %v6216_v59, 0.0 }
 0x4a2   : > { %6404 = vmatpush1.bf16.xpose.msra.mxu0 %v11072_v36  ;;  %7634 = vmatpush1.bf16.xpose.msra.mxu1 %v11072_v36  ;;  %v6174_v6 = vld [vmem:[#allocation3 + $0xb8] sm:$0xff]  ;;  %v6168_v15 = vld [vmem:[#allocation3 + $0x88] sm:$0xff] }
 0x4a3   : > { %6139 = vst.msk [vmem:[#allocation3 + $0x48] sm:$0xff] %vm6134_vm6, %v6122_v53  ;;  %6142 = vst.msk [vmem:[#allocation3 + $0x78] sm:$0xff] %vm6134_vm6, %v6125_v27  ;;  %v6272_v40 = vpack.c.bf16 %v6254_v57, %v6252_v9  ;;  %v6218_v21 = vadd.f32 %v11111_v45, %v6174_v6  ;;  %v6212_v19 = vadd.f32 %v11111_v45, %v6168_v15  ;;  %v8169_v27 = vld [vmem:[%s11223_s6 + $0x34] ss:$8 sps:$4 sm:$0xff]   ;;  %v8172_v9 = vld [vmem:[%s11223_s6 + $0x30] ss:$8 sps:$4 sm:$0xff]  }
 0x4a4   : > { %v6075_v46 = vpop.permute.xlu1 %6074  ;;  %v6081_v55 = vpop.permute.xlu0 %6080 }
 0x4a5   : > { %v6120_v32 = vadd.f32 %v6075_v46, %v5847_v31  ;;  %v6123_v8 = vadd.f32 %v6081_v55, %v5850_v1  ;;  %7352 = vmatprep.subr.msk.bf16.mxu0 %vm2970_vm0, %v6272_v40  ;;  %7627 = vmatprep.subr.msk.bf16.mxu1 %vm2970_vm0, %v6272_v40  ;;  %v6250_v36 = vmax.f32 %v6218_v21, 0.0  ;;  %v6244_v5 = vmax.f32 %v6212_v19, 0.0 }
 0x4a6   : > { %v6170_v48 = vld [vmem:[#allocation3 + $0x98] sm:$0xff]  ;;  %v6164_v24 = vld [vmem:[#allocation3 + $0x68] sm:$0xff] }
 0x4a7   : > { %6137 = vst.msk [vmem:[#allocation3 + $0x28] sm:$0xff] %vm6134_vm6, %v6120_v32  ;;  %6140 = vst.msk [vmem:[#allocation3 + $0x58] sm:$0xff] %vm6134_vm6, %v6123_v8  ;;  %v6270_v49 = vpack.c.bf16 %v6250_v36, %v6248_v17  ;;  %v6214_v16 = vadd.f32 %v11111_v45, %v6170_v48  ;;  %v6208_v42 = vadd.f32 %v11111_v45, %v6164_v24 }
 0x4a8   : > { %v6071_v26 = vpop.permute.xlu1 %6070  ;;  %v6077_v37 = vpop.permute.xlu0 %6076 }
 0x4a9   : > { %v6118_v51 = vadd.f32 %v6071_v26, %v5845_v30  ;;  %v6121_v22 = vadd.f32 %v6077_v37, %v5848_v2  ;;  %v6246_v23 = vmax.f32 %v6214_v16, 0.0  ;;  %v6240_v3 = vmax.f32 %v6208_v42, 0.0 }
 0x4aa   : > { %6406 = vmatpush1.bf16.xpose.msra.mxu0 %v11068_v12  ;;  %7635 = vmatpush1.bf16.xpose.msra.mxu1 %v11068_v12  ;;  %v6166_v10 = vld [vmem:[#allocation3 + $0x78] sm:$0xff]  ;;  %v6160_v7 = vld [vmem:[#allocation3 + $0x48] sm:$0xff] }
 0x4ab   : > { %6135 = vst.msk [vmem:[#allocation3 + $0x8] sm:$0xff] %vm6134_vm6, %v6118_v51  ;;  %6138 = vst.msk [vmem:[#allocation3 + $0x38] sm:$0xff] %vm6134_vm6, %v6121_v22  ;;  %7353 = vmatprep.subr.msk.bf16.mxu0 %vm2970_vm0, %v6270_v49  ;;  %7628 = vmatprep.subr.msk.bf16.mxu1 %vm2970_vm0, %v6270_v49  ;;  %v6268_v12 = vpack.c.bf16 %v6246_v23, %v6244_v5  ;;  %v6210_v11 = vadd.f32 %v11111_v45, %v6166_v10 }
 0x4ac   : > { %v6073_v33 = vpop.permute.xlu0 %6072 }
 0x4ad   : > { %v6119_v41 = vadd.f32 %v6073_v33, %v5846_v18  ;;  %v6242_v54 = vmax.f32 %v6210_v11, 0.0 }
 0x4ae   : > { %v6162_v39 = vld [vmem:[#allocation3 + $0x58] sm:$0xff]  ;;  %v6156_v60 = vld [vmem:[#allocation3 + $0x28] sm:$0xff] }
 0x4af   : > { %6136 = vst.msk [vmem:[#allocation3 + $0x18] sm:$0xff] %vm6134_vm6, %v6119_v41  ;;  %v6266_v35 = vpack.c.bf16 %v6242_v54, %v6240_v3  ;;  %v6206_v34 = vadd.f32 %v11111_v45, %v6162_v39 }
 0x4b1   : > { %v6238_v47 = vmax.f32 %v6206_v34, 0.0 }
 0x4b2   : > { %6408 = vmatpush1.bf16.xpose.msra.mxu0 %v11050_v20  ;;  %7636 = vmatpush1.bf16.xpose.msra.mxu1 %v11050_v20  ;;  %v6204_v20 = vadd.f32 %v11111_v45, %v6160_v7  ;;  %v6158_v50 = vld [vmem:[#allocation3 + $0x38] sm:$0xff]  ;;  %v6152_v62 = vld [vmem:[#allocation3 + $0x8] sm:$0xff] }
 0x4b3   : > { %7354 = vmatprep.subr.msk.bf16.mxu0 %vm2970_vm0, %v6268_v12  ;;  %7629 = vmatprep.subr.msk.bf16.mxu1 %vm2970_vm0, %v6268_v12  ;;  %v6202_v58 = vadd.f32 %v11111_v45, %v6158_v50 }
 0x4b4   : > { %v6236_v38 = vmax.f32 %v6204_v20, 0.0 }
 0x4b5   : > { %v6234_v63 = vmax.f32 %v6202_v58, 0.0  ;;  %v6294_v57 = vpop.permute.xlu1 %6293 }
 0x4b6   : > { %v6264_v43 = vpack.c.bf16 %v6238_v47, %v6236_v38  ;;  %v6154_v61 = vld [vmem:[#allocation3 + $0x18] sm:$0xff] }
 0x4b7   : > { %v6198_v0 = vadd.f32 %v11111_v45, %v6154_v61 }
 0x4b9   : > { %v6230_v52 = vmax.f32 %v6198_v0, 0.0  ;;  %v6304_v6 = vpop.permute.xlu1 %6303  ;;  %v6299_v40 = vpop.permute.xlu0 %6298 }
 0x4ba   : > { %6410 = vmatpush1.bf16.xpose.msra.mxu0 %v11034_v13  ;;  %7637 = vmatpush1.bf16.xpose.msra.mxu1 %v11034_v13  ;;  %v6200_v13 = vadd.f32 %v11111_v45, %v6156_v60 }
 0x4bb   : > { %7355 = vmatprep.subr.msk.bf16.mxu0 %vm2970_vm0, %v6266_v35  ;;  %7630 = vmatprep.subr.msk.bf16.mxu1 %vm2970_vm0, %v6266_v35 }
 0x4bc   : > { %v6232_v44 = vmax.f32 %v6200_v13, 0.0 }
 0x4bd   : > { %v6309_v59 = vpop.permute.xlu1 %6308  ;;  %v6314_v21 = vpop.permute.xlu0 %6313 }
 0x4be   : > { %v6262_v4 = vpack.c.bf16 %v6234_v63, %v6232_v44 }
 0x4c1   : > { %v6319_v36 = vpop.permute.xlu1 %6318  ;;  %v6324_v16 = vpop.permute.xlu0 %6323 }
 0x4c2   : > { %6412 = vmatpush1.bf16.xpose.msra.mxu0 %v11015_v14  ;;  %7638 = vmatpush1.bf16.xpose.msra.mxu1 %v11015_v14  ;;  %v6196_v14 = vadd.f32 %v11111_v45, %v6152_v62  ;;  %v8164_v45 = vld [vmem:[%s11223_s6 + $0x20] ss:$8 sps:$4 sm:$0xff]  }
 0x4c3   : > { %7356 = vmatprep.subr.msk.bf16.mxu0 %vm2970_vm0, %v6264_v43  ;;  %7631 = vmatprep.subr.msk.bf16.mxu1 %vm2970_vm0, %v6264_v43 }
 0x4c4   : > { %v6228_v28 = vmax.f32 %v6196_v14, 0.0 }
 0x4c5   : > { %v6329_v5 = vpop.permute.xlu1 %6328 }
 0x4c6   : > { %v6260_v53 = vpack.c.bf16 %v6230_v52, %v6228_v28 }
 0x4ca   : > { %6414 = vmatpush1.bf16.xpose.msra.mxu0 %v10995_v56  ;;  %7639 = vmatpush1.bf16.xpose.msra.mxu1 %v10995_v56  ;;  %v8161_v56 = vld [vmem:[%s11223_s6] ss:$8 sps:$4 sm:$0xff]  }
 0x4cb   : > { %7357 = vmatprep.subr.msk.bf16.mxu0 %vm2970_vm0, %v6262_v4  ;;  %7632 = vmatprep.subr.msk.bf16.mxu1 %vm2970_vm0, %v6262_v4 }
 0x4d2   : > { %6416 = vmatpush1.bf16.xpose.msra.mxu0 %v10971_v25  ;;  %7640 = vmatpush1.bf16.xpose.msra.mxu1 %v10971_v25  ;;  %v8167_v25 = vld [vmem:[%s11223_s6 + $0x14] ss:$8 sps:$4 sm:$0xff]  }
 0x4d3   : > { %7358 = vmatprep.subr.msk.bf16.mxu0 %vm2970_vm0, %v6260_v53  ;;  %7633 = vmatprep.subr.msk.bf16.mxu1 %vm2970_vm0, %v6260_v53 }
 0x4da   : > { %6418 = vmatpush1.bf16.xpose.msra.mxu0 %v10947_v29  ;;  %7641 = vmatpush1.bf16.xpose.msra.mxu1 %v10947_v29  ;;  %v8171_v29 = vld [vmem:[%s11223_s6 + $0x10] ss:$8 sps:$4 sm:$0xff]  }
 0x4e1   : > { %6436 = vmatmul.mubr.bf16.vlgmr.msra.gmra.mxu0 %v8161_v56  ;;  %6452 = vmatmul.mubr.bf16.vlgmr.msra.gmra.mxu1 %v8164_v45 }
 0x4e2   : > { %7360 = vmatprep.mubr.msk.bf16.mxu0 %vm2970_vm0, %v8167_v25  ;;  %7362 = vmatprep.mubr.msk.bf16.mxu1 %vm2970_vm0, %v8169_v27 }
 0x4e9   : > { %6444 = vmatmul.mubr.bf16.gmra.mxu0 %v8171_v29  ;;  %6460 = vmatmul.mubr.bf16.gmra.mxu1 %v8172_v9 }
 0x5a1   : > { %v6437_v46 = vpop.f32.mrf.mxu0  ;;  %v6453_v31 = vpop.f32.mrf.mxu1 }
 0x5a2   : > { %v6438_v55 = vadd.f32 %v6437_v46, %v6294_v57  ;;  %v6454_v1 = vadd.f32 %v6453_v31, %v6314_v21 }
 0x5a3   : > { %v6439_v32 = vpop.f32.mrf.mxu0  ;;  %v6455_v8 = vpop.f32.mrf.mxu1 }
 0x5a4   : > { %v6468_v48 = vmax.f32 %v6438_v55, 0.0  ;;  %v6472_v17 = vmax.f32 %v6454_v1, 0.0 }
 0x5a5   : > { %v6440_v26 = vpop.f32.mrf.mxu0  ;;  %v6456_v30 = vpop.f32.mrf.mxu1 }
 0x5a6   : > { %6476 = vst [vmem:[%s11198_s25] sm:$0xff] %v6468_v48  ;;  %6480 = vst [vmem:[%s11198_s25 + $0x20] sm:$0xff] %v6472_v17  ;;  %v6441_v37 = vadd.f32 %v6440_v26, %v6299_v40  ;;  %v6457_v2 = vadd.f32 %v6456_v30, %v6319_v36 }
 0x5a7   : > { %v6442_v15 = vpop.f32.mrf.mxu0  ;;  %v6458_v51 = vpop.f32.mrf.mxu1 }
 0x5a8   : > { %v6469_v22 = vmax.f32 %v6441_v37, 0.0  ;;  %v6473_v49 = vmax.f32 %v6457_v2, 0.0 }
 0x5a9   : > { %v6445_v19 = vpop.f32.mrf.mxu0  ;;  %v6461_v33 = vpop.f32.mrf.mxu1 }
 0x5aa   : > { %6477 = vst [vmem:[%s11198_s25 + $0x8] sm:$0xff] %v6469_v22  ;;  %6481 = vst [vmem:[%s11198_s25 + $0x28] sm:$0xff] %v6473_v49  ;;  %v6446_v18 = vadd.f32 %v6445_v19, %v6304_v6  ;;  %v6462_v41 = vadd.f32 %v6461_v33, %v6324_v16 }
 0x5ab   : > { %v6447_v23 = vpop.f32.mrf.mxu0  ;;  %v6463_v10 = vpop.f32.mrf.mxu1 }
 0x5ac   : > { %v6470_v24 = vmax.f32 %v6446_v18, 0.0  ;;  %v6474_v12 = vmax.f32 %v6462_v41, 0.0 }
 0x5ad   : > { %v6448_v11 = vpop.f32.mrf.mxu0  ;;  %v6464_v42 = vpop.f32.mrf.mxu1 }
 0x5ae   : > { %6478 = vst [vmem:[%s11198_s25 + $0x10] sm:$0xff] %v6470_v24  ;;  %6482 = vst [vmem:[%s11198_s25 + $0x30] sm:$0xff] %v6474_v12  ;;  %v6449_v54 = vadd.f32 %v6448_v11, %v6309_v59  ;;  %v6465_v39 = vadd.f32 %v6464_v42, %v6329_v5 }
 0x5af   : > { %v6450_v3 = vpop.f32.mrf.mxu0  ;;  %v6466_v7 = vpop.f32.mrf.mxu1 }
 0x5b0   : > { %v6471_v35 = vmax.f32 %v6449_v54, 0.0  ;;  %v6475_v34 = vmax.f32 %v6465_v39, 0.0 }
 0x5b2   : > { %6479 = vst [vmem:[%s11198_s25 + $0x18] sm:$0xff] %v6471_v35  ;;  %6483 = vst [vmem:[%s11198_s25 + $0x38] sm:$0xff] %v6475_v34 }
 0x5b3 PF: > { %s18_s29 = sadd.s32 1, %s8213_s29   ;;  %s11546_s27 = smov %s8209_s28 }
 0x5b4   : > { %p15_p5 = scmp.ge.s32.totalorder %s18_s29, 4   ;;  %s11547_s28 = smov %s11549_s30 }
 0x5b6   :  { %17 = sbr.rel (!%p15_p5) target bundleno = 2 (0x2), region = 97 }

</bundles_post_ra>
